<compile_context>
chip_gen: v7x
topology: tpu7x:2x2x1
jax: 0.10.0
libtpu: 0.0.40
codegen_flags: <defaults>
</compile_context>

<pallas_src>
import math

import jax
import jax.numpy as jnp
from jax import lax
from jax.experimental import pallas as pl
from jax.experimental.pallas import tpu as pltpu

N_EMBD = 768
EPS = 1e-5


# ------------------------------------------------------------------ kernel

def _rmsnorm_kernel(x_ref, w_ref, o_ref):
    # x_ref: (tm, C) tile, w_ref: (1, C) broadcast row, o_ref: (tm, C) tile.
    x = x_ref[...].astype(jnp.float32)                       # torch: x.float()
    ms = jnp.mean(x * x, axis=-1, keepdims=True)             # (tm, 1), strictly per-row
    normed = (x * lax.rsqrt(ms + EPS)).astype(o_ref.dtype)   # .type_as(x)
    o_ref[...] = normed * w_ref[...].astype(o_ref.dtype)     # * weight


# ------------------------------------------------------------------ wrapper

def pallas_rmsnorm(x, weight, *, block_rows=None):
    """RMSNorm over the last axis of x (any leading shape)."""
    orig_shape = x.shape
    c = orig_shape[-1]
    m = math.prod(orig_shape[:-1]) if len(orig_shape) > 1 else 1
    x2 = x.reshape(m, c)

    itemsize = x2.dtype.itemsize
    # Sublane multiple: 8 for 32-bit, 16 for bf16, 32 for 8-bit dtypes.
    sub = 8 * max(1, 4 // itemsize)
    # Default row-tile target keeps the per-step tile ~3 MiB in + ~3 MiB out
    # regardless of dtype width (bigger row counts for narrower dtypes).
    if block_rows is None:
        block_rows = 1024 * max(1, 4 // itemsize)

    if m <= sub:
        tm = m                                   # full-extent block is always legal
    else:
        # Guarantee >= 2 grid steps (feeds both v7x TensorCores, exercises the
        # DMA pipeline) while capping the tile at block_rows.
        half = pl.cdiv(m, 2)
        half = ((half + sub - 1) // sub) * sub   # round up to sublane multiple
        tm = max(sub, min(block_rows, half))

    grid = (pl.cdiv(m, tm),)

    # Double-buffered in-tile + out-tile footprint, plus weight row + headroom.
    tile_bytes = tm * c * itemsize
    needed = 2 * (tile_bytes + tile_bytes) + 2 * c * weight.dtype.itemsize
    vmem_limit = int(min(max(needed + (4 << 20), 32 << 20), 48 << 20))

    cost = pl.CostEstimate(
        flops=5 * m * c,                                     # square, mean, rsqrt-mul, weight-mul
        transcendentals=m,                                   # one rsqrt per row
        bytes_accessed=2 * m * c * itemsize + c * weight.dtype.itemsize,
    )

    out = pl.pallas_call(
        _rmsnorm_kernel,
        out_shape=jax.ShapeDtypeStruct((m, c), x.dtype),
        grid=grid,
        in_specs=[
            pl.BlockSpec((tm, c), lambda i: (i, 0)),   # row tile of activations
            pl.BlockSpec((1, c), lambda i: (0, 0)),    # weight row, resident across steps
        ],
        out_specs=pl.BlockSpec((tm, c), lambda i: (i, 0)),
        compiler_params=pltpu.CompilerParams(
            # "parallel" lets the runtime shard row tiles across v7x's two TCs;
            # no-op on single-TC v5e/v6e.
            dimension_semantics=("parallel",),
            vmem_limit_bytes=vmem_limit,
        ),
        cost_estimate=cost,
    )(x2, weight.reshape(1, c))
    return out.reshape(orig_shape)


# ------------------------------------------------------------------ reference

def rmsnorm_ref(x, weight):
    xf = x.astype(jnp.float32)
    ms = jnp.mean(xf * xf, axis=-1, keepdims=True)
    return (xf * lax.rsqrt(ms + EPS)).astype(x.dtype) * weight


# ------------------------------------------------------------------ main

if __name__ == "__main__":
    key = jax.random.PRNGKey(0)
    kx, kw = jax.random.split(key)

    # M = 1024 rows -> tm = 512, grid = (2,): exercises the pipelined multi-step
    # path (and the 2-TC split on v7x) while staying a small test shape.
    B, T = 2, 512
    x = jax.random.normal(kx, (B, T, N_EMBD), jnp.float32)
    weight = 1.0 + 0.02 * jax.random.normal(kw, (N_EMBD,), jnp.float32)

    fwd = jax.jit(pallas_rmsnorm)
    y = fwd(x, weight)
    jax.block_until_ready(y)

    y_ref = rmsnorm_ref(x, weight)
    assert y.shape == x.shape
    assert bool(jnp.all(jnp.isfinite(y)))
    assert bool(jnp.allclose(y, y_ref, atol=1e-5, rtol=1e-5))
    print("KERNEL_OK")
</pallas_src>

<mosaic_0001>
module attributes {stable_mosaic.version = 11 : i64} {
  func.func @_rmsnorm_kernel(%arg0: i32, %arg1: memref<512x768xf32, #tpu.memory_space<vmem>>, %arg2: memref<1x768xf32, #tpu.memory_space<vmem>>, %arg3: memref<512x768xf32, #tpu.memory_space<vmem>>) attributes {dimension_semantics = [#tpu.dimension_semantics<parallel>], iteration_bounds = array<i64: 2>, scalar_prefetch = 0 : i64, scratch_operands = 0 : i64, tpu.core_type = #tpu.core_type<tc>, window_params = [{transform_indices = @transform_0, window_bounds = array<i64: 512, 768>}, {pipeline_mode = #tpu.pipeline_mode<synchronous>, transform_indices = @transform_1, window_bounds = array<i64: 1, 768>}, {transform_indices = @transform_2, window_bounds = array<i64: 512, 768>}]} {
    %c0 = arith.constant 0 : index
    %c0_0 = arith.constant 0 : index
    %0 = vector.load %arg1[%c0, %c0_0] : memref<512x768xf32, #tpu.memory_space<vmem>>, vector<512x768xf32>
    %1 = arith.mulf %0, %0 : vector<512x768xf32>
    %cst = arith.constant dense<0.000000e+00> : vector<512xf32>
    %2 = vector.multi_reduction <add>, %1, %cst [1] : vector<512x768xf32> to vector<512xf32>
    %3 = vector.shape_cast %2 : vector<512xf32> to vector<512x1xf32>
    %cst_1 = arith.constant 7.680000e+02 : f32
    %4 = vector.broadcast %cst_1 : f32 to vector<512x1xf32>
    %5 = arith.divf %3, %4 : vector<512x1xf32>
    %cst_2 = arith.constant 9.99999974E-6 : f32
    %6 = vector.broadcast %cst_2 : f32 to vector<512x1xf32>
    %7 = arith.addf %5, %6 : vector<512x1xf32>
    %8 = math.rsqrt %7 : vector<512x1xf32>
    %9 = vector.broadcast %8 : vector<512x1xf32> to vector<512x768xf32>
    %10 = arith.mulf %0, %9 : vector<512x768xf32>
    %c0_3 = arith.constant 0 : index
    %c0_4 = arith.constant 0 : index
    %11 = vector.load %arg2[%c0_3, %c0_4] : memref<1x768xf32, #tpu.memory_space<vmem>>, vector<1x768xf32>
    %12 = vector.broadcast %11 : vector<1x768xf32> to vector<512x768xf32>
    %13 = arith.mulf %10, %12 : vector<512x768xf32>
    %c0_5 = arith.constant 0 : index
    %c0_6 = arith.constant 0 : index
    %14 = vector.load %arg3[%c0_5, %c0_6] : memref<512x768xf32, #tpu.memory_space<vmem>>, vector<512x768xf32>
    tpu.vector_store %arg3[%c0_5, %c0_6], %13 {strides = array<i32>} : memref<512x768xf32, #tpu.memory_space<vmem>>, vector<512x768xf32>,
    return
  }
  func.func @transform_0(%arg0: i32) -> (i32, i32) {
    %c0_i32 = arith.constant 0 : i32
    %c0_i32_0 = arith.constant 0 : i32
    return %arg0, %c0_i32 : i32, i32
  }
  func.func @transform_1(%arg0: i32) -> (i32, i32) {
    %c0_i32 = arith.constant 0 : i32
    %c0_i32_0 = arith.constant 0 : i32
    %c0_i32_1 = arith.constant 0 : i32
    return %c0_i32, %c0_i32_0 : i32, i32
  }
  func.func @transform_2(%arg0: i32) -> (i32, i32) {
    %c0_i32 = arith.constant 0 : i32
    %c0_i32_0 = arith.constant 0 : i32
    return %arg0, %c0_i32 : i32, i32
  }
}

</mosaic_0001>

<bundles_post_ra>
// kernel: pallas_rmsnorm.1
= control target key start
LH: loop header
LB: loop body
LE: loop exit
PB: predicated region body
PF: predicated region fallthrough
CT: control target
= control target key end

     0   :  { %7 = vsyncpa [#allocation3], 0  ;;  %s5845_s0 = inlined_call_operand.hbm [shape: f32[1024,768], index: 0, kind: input, shape index: {}]   ;;  %s5846_s1 = inlined_call_operand.vmem [shape: f32[1,768], index: 1, kind: input, shape index: {}]   ;;  %s5847_s2 = inlined_call_operand.hbm [shape: f32[1024,768], index: 2, kind: output, shape index: {}]  }
   0x1   :  { %9 = vsyncpa [#allocation3 + $0x1], 0 }
   0x2   :  { %10 = vsyncpa [#allocation4], 0 }
   0x3   :  { %12 = vsyncpa [#allocation4 + $0x1], 0  ;;  %s3543_s9 = smov 0   ;;  %s3545_s10 = smov 0  }
   0x4   :  { %s3547_s11 = smov 0   ;;  %s3549_s12 = smov 0  }
   0x5 LB: > { %s3564_s13 = sadd.s32 4294967295, %s3520_s12   ;;  %s2846_s14 = sadd.s32 4294967294, %s3520_s12   ;;  %s3520_s12 = sphi %s3549_s12, %s5859_s12   ;;  %s3516_s11 = sphi %s3547_s11, %s5858_s11   ;;  %s3512_s10 = sphi %s3545_s10, %s5857_s10   ;;  %s3508_s9 = sphi %s3543_s9, %s5856_s9  }
   0x6   : > { %s3568_s15 = sadd.s32 1, %s3520_s12   ;;  %s25_s16 = sadd.s32 1, %s3516_s11 }
   0x7   : > { %s22_s17 = ssub.s32 %s3520_s12, %s3568_s15  ;;  %p32_p0 = scmp.ne.s32.totalorder %s3516_s11, %s3512_s10 }
   0x8   : > { %p23_p1 = scmp.eq.s32.totalorder %s22_s17, 0  ;;  %p33_p2 = scmp.eq.s32.totalorder %s3520_s12, 0 }
   0x9   : > { %p38_p3 = scmp.ne.s32.totalorder %s3512_s10, %s3508_s9  ;;  %p39_p4 = scmp.eq.s32.totalorder %s3564_s13, 0 }
   0xa   : > { %s3580_s18 = scalar_select %p23_p1, %s3516_s11, %s25_s16  }
   0xb   : > { %p34_p5 = por %p33_p2, %p32_p0  ;;  %p3582_p6 = por %p39_p4, %p38_p3 }
   0xc   : > { %p83_p7 = scmp.eq.s32.totalorder %s3564_s13, 1  ;;  %p89_p8 = scmp.eq.s32.totalorder %s2846_s14, 1 }
   0xd   : > { %p2874_p10 = scmp.lt.s32.totalorder %s3520_s12, 2  ;;  %s112_s22 = sand.u32 1, %s3516_s11  }
   0xe   : > { %p3589_p11 = por %p83_p7, %p32_p0  ;;  %p3593_p12 = por %p89_p8, %p38_p3 }
   0xf   : > { %s2859_s23 = smul.u32 49152, %s3520_s12  ;;  %p3604_p13 = pnand %p2874_p10, %p34_p5 }
  0x10   : > { %s5850_s20 = scalar_select %p3589_p11, 1, 0 }
  0x11   : > { %s5851_s21 = scalar_select %p3593_p12, 1, 0 }
  0x12   : > { %s2858_s24 = smul.u32 3072, %s112_s22  ;;  %s3602_s27 = scalar_lea.hbm %s5845_s0, %s2859_s23 }
  0x13   : > { %s3610_s3 = scalar_lea.sflag [#allocation3], %s112_s22  ;;  %s3424_s4 = scalar_lea.hbm %s3602_s27, 49152 }
  0x14   : > { %s116_s29 = scalar_lea.vmem [#allocation2], %s2858_s24  ;;  %p3425_p0 = scmp.ne.s32.totalorder %s3602_s27, %s3424_s4 }
  0x15   : > { %s124_s30 = sshll.u32 %s116_s29, 4  ;;  %p3426_p1 = pneg %p3604_p13  ;;  %s3608_s30 = int_to_ptr.vmem [resolvable:$true] %s124_s30 }
  0x16   : > { %s3429_s7 = scalar_lea.hbm %s5845_s0, 98304  ;;  %p3430_p4 = scmp.lt.u32.totalorder %s3602_s27, %s5845_s0 }
  0x17   : > { %p3427_p2 = pnand %p3426_p1, %p3425_p0  ;;  %p3431_p5 = scmp.lt.u32.totalorder %s3429_s7, %s3424_s4 }
  0x18   : > { %p3433_p8 = scmp.lt.u32.totalorder %s3424_s4, %s3602_s27 }
  0x19   : > { %p3428_p3 = pneg %p3427_p2  ;;  %p3432_p7 = por %p3431_p5, %p3430_p4 }
  0x1b   : > { %p3434_p10 = por %p3433_p8, %p3432_p7 }
  0x1d   : > { %p3435_p9 = pnand %p3434_p10, %p3428_p3 }
  0x1f   : > { %3438 = shalt.err (!%p3435_p9)
}
  0x20   : > { %s3439_s16 = scalar_lea.vmem %s3608_s30, 49152  ;;  %s3522_s17 = smov [#allocation2]  }
  0x21   : > { %p3440_p0 = scmp.ne.s32.totalorder %s3608_s30, %s3439_s16  ;;  %s3444_s22 = sshll.u32 %s3522_s17, 4  ;;  %s3445_s22 = int_to_ptr.vmem [resolvable:$false] %s3444_s22 }
  0x22   : > { %s3446_s23 = scalar_lea.vmem %s3445_s22, 98304  ;;  %p3447_p11 = scmp.lt.s32.totalorder %s3608_s30, %s3445_s22 }
  0x23   : > { %p3442_p2 = pnand %p3440_p0, %p3426_p1  ;;  %p3448_p4 = scmp.lt.s32.totalorder %s3446_s23, %s3439_s16 }
  0x25   : > { %p3443_p12 = pneg %p3442_p2  ;;  %p3449_p5 = por %p3448_p4, %p3447_p11 }
  0x27   : > { %p3450_p7 = pnand %p3449_p5, %p3443_p12 }
  0x29   : > { %3453 = shalt.err (!%p3450_p7)
}
  0x2a   : > { %s3523_s24 = smov 768   ;;  %s3524_s25 = smov 48  }
  0x2b   : > { %2869 = dma.hbm_to_vmem [thread:$0]  (!%p3604_p13), %s3602_s27, 49152, %s3608_s30, %s3610_s3, %s3523_s24, %s3523_s24, %s3524_s25  }
  0x2c   : > { %p2852_p9 = scmp.ge.s32.totalorder %s3520_s12, 1  ;;  %p132_p1 = scmp.lt.s32.totalorder %s3520_s12, 3 }
  0x2e   : > { %p133_p3 = pnand %p2852_p9, %p132_p1 }
  0x2f   : > { %s3641_s26 = sand.u32 (!%p133_p3), 1, %s3512_s10  }
  0x30   : > { %136 = sbr.rel (%p133_p3) target bundleno = 517 (0x205), region = 28  ;;  %s139_s4 = scalar_lea.sflag (!%p133_p3), [#allocation3], %s3641_s26 }
  0x31   : > { %s2860_s29 = smul.u32 (!%p133_p3), 3072, %s3641_s26 }
  0x33   : > { %s3647_s5 = scalar_lea.vmem (!%p133_p3), [#allocation2], %s2860_s29 }
  0x37   : > { %3499 = dma.done.wait (%p3582_p6), %s139_s4, 49152  }
  0x38   : > { %3501 = vsyncadd (%p3582_p6), %s139_s4, 4294918144  ;;  %v177_v0 = vld [vmem:[%s3647_s5 + $0x60] sm:$0xff]  ;;  %v178_v1 = vld [vmem:[%s3647_s5 + $0x68] sm:$0xff]  ;;  %s4107_s28 = scalar_lea.vmem [#allocation5], %s2860_s29  ;;  %s2861_s30 = smul.u32 49152, %s3564_s13 }
  0x39   : > { %v179_v2 = vld [vmem:[%s3647_s5 + $0x70] sm:$0xff]  ;;  %v180_v3 = vld [vmem:[%s3647_s5 + $0x78] sm:$0xff]  ;;  %v181_v4 = vld [vmem:[%s3647_s5 + $0x80] sm:$0xff]  ;;  %v561_v6 = vmul.f32 %v177_v0, %v177_v0  ;;  %v562_v7 = vmul.f32 %v178_v1, %v178_v1  ;;  %s2773_s3 = sshll.u32 %s4107_s28, 4  ;;  %s2759_s13 = scalar_lea.sflag [#allocation4], %s3641_s26  ;;  %s5793_s3 = int_to_ptr.vmem [resolvable:$true] %s2773_s3 }
  0x3a   : > { %v182_v5 = vld [vmem:[%s3647_s5 + $0x88] sm:$0xff]  ;;  %v563_v8 = vmul.f32 %v179_v2, %v179_v2  ;;  %v564_v9 = vmul.f32 %v180_v3, %v180_v3  ;;  %v165_v10 = vld [vmem:[%s3647_s5] sm:$0xff]  ;;  %v167_v12 = vld [vmem:[%s3647_s5 + $0x10] sm:$0xff]  ;;  %v565_v20 = vmul.f32 %v181_v4, %v181_v4  ;;  %s5791_s8 = scalar_lea.hbm %s5847_s2, %s2861_s30  ;;  %s3454_s14 = scalar_lea.vmem %s5793_s3, 49152 }
  0x3b   : > { %v166_v11 = vld [vmem:[%s3647_s5 + $0x8] sm:$0xff]  ;;  %v947_v13 = vadd.f32 %v562_v7, %v561_v6  ;;  %v168_v14 = vld [vmem:[%s3647_s5 + $0x18] sm:$0xff]  ;;  %v169_v15 = vld [vmem:[%s3647_s5 + $0x20] sm:$0xff]  ;;  %v549_v17 = vmul.f32 %v165_v10, %v165_v10  ;;  %v551_v19 = vmul.f32 %v167_v12, %v167_v12  ;;  %v566_v21 = vmul.f32 %v182_v5, %v182_v5  ;;  %p3455_p6 = scmp.ne.s32.totalorder %s5793_s3, %s3454_s14  ;;  %p5853_p11 = scmp.ne.s32.totalorder %s5850_s20, 0 }
  0x3c   : > { %v170_v16 = vld [vmem:[%s3647_s5 + $0x28] sm:$0xff]  ;;  %v550_v18 = vmul.f32 %v166_v11, %v166_v11  ;;  %v552_v22 = vmul.f32 %v168_v14, %v168_v14  ;;  %v183_v23 = vld [vmem:[%s3647_s5 + $0x90] sm:$0xff]  ;;  %v184_v24 = vld [vmem:[%s3647_s5 + $0x98] sm:$0xff]  ;;  %v553_v33 = vmul.f32 %v169_v15, %v169_v15  ;;  %s3525_s16 = smov [#allocation5]  }
  0x3d   : > { %v185_v25 = vld [vmem:[%s3647_s5 + $0xa0] sm:$0xff]  ;;  %v948_v26 = vadd.f32 %v947_v13, %v563_v8  ;;  %v186_v28 = vld [vmem:[%s3647_s5 + $0xa8] sm:$0xff]  ;;  %v187_v29 = vld [vmem:[%s3647_s5 + $0xb0] sm:$0xff]  ;;  %v567_v31 = vmul.f32 %v183_v23, %v183_v23  ;;  %v568_v32 = vmul.f32 %v184_v24, %v184_v24  ;;  %v554_v34 = vmul.f32 %v170_v16, %v170_v16  ;;  %p3456_p12 = pnand %p3455_p6, %p5853_p11  ;;  %s3458_s17 = sshll.u32 %s3525_s16, 4  ;;  %s3459_s17 = int_to_ptr.vmem [resolvable:$false] %s3458_s17 }
  0x3e   : > { %v933_v27 = vadd.f32 %v550_v18, %v549_v17  ;;  %v188_v30 = vld [vmem:[%s3647_s5 + $0xb8] sm:$0xff]  ;;  %v569_v35 = vmul.f32 %v185_v25, %v185_v25  ;;  %v570_v36 = vmul.f32 %v186_v28, %v186_v28  ;;  %v171_v37 = vld [vmem:[%s3647_s5 + $0x30] sm:$0xff]  ;;  %v173_v39 = vld [vmem:[%s3647_s5 + $0x40] sm:$0xff]  ;;  %v571_v46 = vmul.f32 %v187_v29, %v187_v29  ;;  %s3460_s22 = scalar_lea.vmem %s3459_s17, 98304  ;;  %p3461_p8 = scmp.lt.s32.totalorder %s5793_s3, %s3459_s17 }
  0x3f   : > { %v172_v38 = vld [vmem:[%s3647_s5 + $0x38] sm:$0xff]  ;;  %v949_v40 = vadd.f32 %v948_v26, %v564_v9  ;;  %v954_v42 = vadd.f32 %v568_v32, %v567_v31  ;;  %v174_v43 = vld [vmem:[%s3647_s5 + $0x48] sm:$0xff]  ;;  %v175_v44 = vld [vmem:[%s3647_s5 + $0x50] sm:$0xff]  ;;  %v555_v45 = vmul.f32 %v171_v37, %v171_v37  ;;  %v572_v47 = vmul.f32 %v188_v30, %v188_v30  ;;  %p3457_p13 = pneg %p3456_p12  ;;  %p3462_p10 = scmp.lt.s32.totalorder %s3460_s22, %s3454_s14 }
  0x40   : > { %v934_v41 = vadd.f32 %v933_v27, %v551_v19  ;;  %v556_v48 = vmul.f32 %v172_v38, %v172_v38  ;;  %v557_v49 = vmul.f32 %v173_v39, %v173_v39  ;;  %v195_v50 = vld [vmem:[%s3647_s5 + $0xf0] sm:$0xff]  ;;  %v196_v51 = vld [vmem:[%s3647_s5 + $0xf8] sm:$0xff]  ;;  %v197_v52 = vld [vmem:[%s3647_s5 + $0x100] sm:$0xff]  ;;  %v558_v57 = vmul.f32 %v174_v43, %v174_v43 }
  0x41   : > { %v950_v53 = vadd.f32 %v949_v40, %v565_v20  ;;  %v955_v55 = vadd.f32 %v954_v42, %v569_v35  ;;  %v176_v56 = vld [vmem:[%s3647_s5 + $0x58] sm:$0xff]  ;;  %v198_v58 = vld [vmem:[%s3647_s5 + $0x108] sm:$0xff]  ;;  %v579_v60 = vmul.f32 %v195_v50, %v195_v50  ;;  %v580_v61 = vmul.f32 %v196_v51, %v196_v51  ;;  %v189_v63 = vld [vmem:[%s3647_s5 + $0xc0] sm:$0xff]  ;;  %p3463_p0 = por %p3462_p10, %p3461_p8 }
  0x42   : > { %v935_v54 = vadd.f32 %v934_v41, %v552_v22  ;;  %v940_v59 = vadd.f32 %v556_v48, %v555_v45  ;;  %v581_v62 = vmul.f32 %v197_v52, %v197_v52  ;;  %v190_v0 = vld [vmem:[%s3647_s5 + $0xc8] sm:$0xff]  ;;  %v559_v4 = vmul.f32 %v175_v44, %v175_v44  ;;  %v199_v5 = vld [vmem:[%s3647_s5 + $0x110] sm:$0xff]  ;;  %v200_v9 = vld [vmem:[%s3647_s5 + $0x118] sm:$0xff] }
  0x43   : > { %v951_v1 = vadd.f32 %v950_v53, %v566_v21  ;;  %v956_v3 = vadd.f32 %v955_v55, %v570_v36  ;;  %v191_v6 = vld [vmem:[%s3647_s5 + $0xd0] sm:$0xff]  ;;  %v560_v7 = vmul.f32 %v176_v56, %v176_v56  ;;  %v582_v10 = vmul.f32 %v198_v58, %v198_v58  ;;  %v192_v12 = vld [vmem:[%s3647_s5 + $0xd8] sm:$0xff]  ;;  %v193_v22 = vld [vmem:[%s3647_s5 + $0xe0] sm:$0xff]  ;;  %p3464_p2 = pnand %p3463_p0, %p3457_p13 }
  0x44   : > { %v936_v2 = vadd.f32 %v935_v54, %v553_v33  ;;  %v941_v8 = vadd.f32 %v940_v59, %v557_v49  ;;  %v968_v11 = vadd.f32 %v580_v61, %v579_v60  ;;  %v573_v15 = vmul.f32 %v189_v63, %v189_v63  ;;  %v207_v17 = vld [vmem:[%s3647_s5 + $0x150] sm:$0xff]  ;;  %v208_v18 = vld [vmem:[%s3647_s5 + $0x158] sm:$0xff]  ;;  %v194_v23 = vld [vmem:[%s3647_s5 + $0xe8] sm:$0xff] }
  0x45   : > { %952 = vadd.xlane.f32.xlu1 %v951_v1  ;;  %v957_v14 = vadd.f32 %v956_v3, %v571_v46  ;;  %v574_v16 = vmul.f32 %v190_v0, %v190_v0  ;;  %v583_v20 = vmul.f32 %v199_v5, %v199_v5  ;;  %v575_v24 = vmul.f32 %v191_v6, %v191_v6  ;;  %v209_v25 = vld [vmem:[%s3647_s5 + $0x160] sm:$0xff]  ;;  %v210_v30 = vld [vmem:[%s3647_s5 + $0x168] sm:$0xff]  ;;  %v203_v37 = vld [vmem:[%s3647_s5 + $0x130] sm:$0xff] }
  0x46   : > { %v937_v13 = vadd.f32 %v936_v2, %v554_v34  ;;  %v942_v19 = vadd.f32 %v941_v8, %v558_v57  ;;  %v969_v21 = vadd.f32 %v968_v11, %v581_v62  ;;  %v584_v27 = vmul.f32 %v200_v9, %v200_v9  ;;  %v201_v35 = vld [vmem:[%s3647_s5 + $0x120] sm:$0xff]  ;;  %v202_v36 = vld [vmem:[%s3647_s5 + $0x128] sm:$0xff]  ;;  %v211_v41 = vld [vmem:[%s3647_s5 + $0x170] sm:$0xff] }
  0x47   : > { %v958_v26 = vadd.f32 %v957_v14, %v572_v47  ;;  %v576_v28 = vmul.f32 %v192_v12, %v192_v12  ;;  %v961_v29 = vadd.f32 %v574_v16, %v573_v15  ;;  %v591_v33 = vmul.f32 %v207_v17, %v207_v17  ;;  %v212_v42 = vld [vmem:[%s3647_s5 + $0x178] sm:$0xff]  ;;  %v219_v49 = vld [vmem:[%s3647_s5 + $0x1b0] sm:$0xff]  ;;  %v205_v51 = vld [vmem:[%s3647_s5 + $0x140] sm:$0xff] }
  0x48   : > { %938 = vadd.xlane.f32.xlu0 %v937_v13  ;;  %v943_v31 = vadd.f32 %v942_v19, %v559_v4  ;;  %v970_v32 = vadd.f32 %v969_v21, %v582_v10  ;;  %v592_v34 = vmul.f32 %v208_v18, %v208_v18  ;;  %v577_v38 = vmul.f32 %v193_v22, %v193_v22  ;;  %v204_v48 = vld [vmem:[%s3647_s5 + $0x138] sm:$0xff]  ;;  %v221_v56 = vld [vmem:[%s3647_s5 + $0x1c0] sm:$0xff]  ;;  %v206_v61 = vld [vmem:[%s3647_s5 + $0x148] sm:$0xff] }
  0x49   : > { %959 = vadd.xlane.f32.xlu1 %v958_v26  ;;  %v578_v39 = vmul.f32 %v194_v23, %v194_v23  ;;  %v962_v40 = vadd.f32 %v961_v29, %v575_v24  ;;  %v593_v43 = vmul.f32 %v209_v25, %v209_v25  ;;  %v594_v46 = vmul.f32 %v210_v30, %v210_v30  ;;  %v220_v55 = vld [vmem:[%s3647_s5 + $0x1b8] sm:$0xff]  ;;  %v222_v62 = vld [vmem:[%s3647_s5 + $0x1c8] sm:$0xff]  ;;  %v213_v3 = vld [vmem:[%s3647_s5 + $0x180] sm:$0xff] }
  0x4a   : > { %v944_v44 = vadd.f32 %v943_v31, %v560_v7  ;;  %v971_v45 = vadd.f32 %v970_v32, %v583_v20  ;;  %v982_v47 = vadd.f32 %v592_v34, %v591_v33  ;;  %v585_v52 = vmul.f32 %v201_v35, %v201_v35  ;;  %v214_v4 = vld [vmem:[%s3647_s5 + $0x188] sm:$0xff]  ;;  %v223_v7 = vld [vmem:[%s3647_s5 + $0x1d0] sm:$0xff]  ;;  %v224_v8 = vld [vmem:[%s3647_s5 + $0x1d8] sm:$0xff] }
  0x4b   : > { %v963_v50 = vadd.f32 %v962_v40, %v576_v28  ;;  %v586_v53 = vmul.f32 %v202_v36, %v202_v36  ;;  %v587_v54 = vmul.f32 %v203_v37, %v203_v37  ;;  %v595_v58 = vmul.f32 %v211_v41, %v211_v41  ;;  %v215_v11 = vld [vmem:[%s3647_s5 + $0x190] sm:$0xff]  ;;  %v216_v16 = vld [vmem:[%s3647_s5 + $0x198] sm:$0xff]  ;;  %v233_v23 = vld [vmem:[%s3647_s5 + $0x220] sm:$0xff] }
  0x4c   : > { %945 = vadd.xlane.f32.xlu0 %v944_v44  ;;  %v972_v57 = vadd.f32 %v971_v45, %v584_v27  ;;  %v596_v59 = vmul.f32 %v212_v42, %v212_v42  ;;  %v983_v60 = vadd.f32 %v982_v47, %v593_v43  ;;  %v588_v0 = vmul.f32 %v204_v48, %v204_v48  ;;  %v231_v21 = vld [vmem:[%s3647_s5 + $0x210] sm:$0xff]  ;;  %v232_v22 = vld [vmem:[%s3647_s5 + $0x218] sm:$0xff]  ;;  %v217_v27 = vld [vmem:[%s3647_s5 + $0x1a0] sm:$0xff] }
  0x4d   : > { %v964_v63 = vadd.f32 %v963_v50, %v577_v38  ;;  %v975_v1 = vadd.f32 %v586_v53, %v585_v52  ;;  %v603_v2 = vmul.f32 %v219_v49, %v219_v49  ;;  %v589_v6 = vmul.f32 %v205_v51, %v205_v51  ;;  %v218_v28 = vld [vmem:[%s3647_s5 + $0x1a8] sm:$0xff]  ;;  %v225_v35 = vld [vmem:[%s3647_s5 + $0x1e0] sm:$0xff]  ;;  %v227_v41 = vld [vmem:[%s3647_s5 + $0x1f0] sm:$0xff] }
  0x4e   : > { %973 = vadd.xlane.f32.xlu1 %v972_v57  ;;  %v984_v5 = vadd.f32 %v983_v60, %v594_v46  ;;  %v604_v9 = vmul.f32 %v220_v55, %v220_v55  ;;  %v605_v10 = vmul.f32 %v221_v56, %v221_v56  ;;  %v590_v13 = vmul.f32 %v206_v61, %v206_v61  ;;  %v234_v34 = vld [vmem:[%s3647_s5 + $0x228] sm:$0xff]  ;;  %v235_v46 = vld [vmem:[%s3647_s5 + $0x230] sm:$0xff]  ;;  %v236_v47 = vld [vmem:[%s3647_s5 + $0x238] sm:$0xff] }
  0x4f   : > { %v965_v12 = vadd.f32 %v964_v63, %v578_v39  ;;  %v976_v14 = vadd.f32 %v975_v1, %v587_v54  ;;  %v606_v15 = vmul.f32 %v222_v62, %v222_v62  ;;  %v597_v19 = vmul.f32 %v213_v3, %v213_v3  ;;  %v226_v40 = vld [vmem:[%s3647_s5 + $0x1e8] sm:$0xff]  ;;  %v228_v48 = vld [vmem:[%s3647_s5 + $0x1f8] sm:$0xff]  ;;  %v243_v53 = vld [vmem:[%s3647_s5 + $0x270] sm:$0xff] }
  0x50   : > { %v985_v17 = vadd.f32 %v984_v5, %v595_v58  ;;  %v996_v18 = vadd.f32 %v604_v9, %v603_v2  ;;  %v598_v20 = vmul.f32 %v214_v4, %v214_v4  ;;  %v607_v25 = vmul.f32 %v223_v7, %v223_v7  ;;  %v229_v56 = vld [vmem:[%s3647_s5 + $0x200] sm:$0xff]  ;;  %v246_v2 = vld [vmem:[%s3647_s5 + $0x288] sm:$0xff] }
  0x51   : > { %966 = vadd.xlane.f32.xlu0 %v965_v12  ;;  %v977_v24 = vadd.f32 %v976_v14, %v588_v0  ;;  %v608_v26 = vmul.f32 %v224_v8, %v224_v8  ;;  %v599_v29 = vmul.f32 %v215_v11, %v215_v11  ;;  %v600_v32 = vmul.f32 %v216_v16, %v216_v16  ;;  %v245_v60 = vld [vmem:[%s3647_s5 + $0x280] sm:$0xff]  ;;  %v230_v0 = vld [vmem:[%s3647_s5 + $0x208] sm:$0xff]  ;;  %v247_v11 = vld [vmem:[%s3647_s5 + $0x290] sm:$0xff] }
  0x52   : > { %v986_v30 = vadd.f32 %v985_v17, %v596_v59  ;;  %v997_v31 = vadd.f32 %v996_v18, %v605_v10  ;;  %v989_v33 = vadd.f32 %v598_v20, %v597_v19  ;;  %v615_v37 = vmul.f32 %v231_v21, %v231_v21  ;;  %v244_v59 = vld [vmem:[%s3647_s5 + $0x278] sm:$0xff]  ;;  %v237_v7 = vld [vmem:[%s3647_s5 + $0x240] sm:$0xff]  ;;  %v238_v8 = vld [vmem:[%s3647_s5 + $0x248] sm:$0xff] }
  0x53   : > { %v978_v36 = vadd.f32 %v977_v24, %v589_v6  ;;  %v616_v38 = vmul.f32 %v232_v22, %v232_v22  ;;  %v617_v39 = vmul.f32 %v233_v23, %v233_v23  ;;  %v601_v43 = vmul.f32 %v217_v27, %v217_v27  ;;  %v248_v12 = vld [vmem:[%s3647_s5 + $0x298] sm:$0xff]  ;;  %v257_v27 = vld [vmem:[%s3647_s5 + $0x2e0] sm:$0xff] }
  0x54   : > { %987 = vadd.xlane.f32.xlu1 %v986_v30  ;;  %v998_v42 = vadd.f32 %v997_v31, %v606_v15  ;;  %v602_v44 = vmul.f32 %v218_v28, %v218_v28  ;;  %v990_v45 = vadd.f32 %v989_v33, %v599_v29  ;;  %v618_v50 = vmul.f32 %v234_v34, %v234_v34  ;;  %v239_v15 = vld [vmem:[%s3647_s5 + $0x250] sm:$0xff]  ;;  %v240_v20 = vld [vmem:[%s3647_s5 + $0x258] sm:$0xff]  ;;  %v241_v31 = vld [vmem:[%s3647_s5 + $0x260] sm:$0xff] }
  0x55   : > { %v979_v49 = vadd.f32 %v978_v36, %v590_v13  ;;  %v1010_v51 = vadd.f32 %v616_v38, %v615_v37  ;;  %v609_v52 = vmul.f32 %v225_v35, %v225_v35  ;;  %v610_v57 = vmul.f32 %v226_v40, %v226_v40  ;;  %v258_v38 = vld [vmem:[%s3647_s5 + $0x2e8] sm:$0xff] }
  0x56   : > { %v999_v54 = vadd.f32 %v998_v42, %v607_v25  ;;  %v991_v55 = vadd.f32 %v990_v45, %v600_v32  ;;  %v611_v58 = vmul.f32 %v227_v41, %v227_v41  ;;  %v619_v61 = vmul.f32 %v235_v46, %v235_v46  ;;  %v255_v25 = vld [vmem:[%s3647_s5 + $0x2d0] sm:$0xff]  ;;  %v242_v32 = vld [vmem:[%s3647_s5 + $0x268] sm:$0xff] }
  0x57   : > { %980 = vadd.xlane.f32.xlu0 %v979_v49  ;;  %v620_v62 = vmul.f32 %v236_v47, %v236_v47  ;;  %v1011_v63 = vadd.f32 %v1010_v51, %v617_v39  ;;  %v612_v1 = vmul.f32 %v228_v48, %v228_v48  ;;  %v1003_v5 = vadd.f32 %v610_v57, %v609_v52  ;;  %v249_v39 = vld [vmem:[%s3647_s5 + $0x2a0] sm:$0xff]  ;;  %v251_v45 = vld [vmem:[%s3647_s5 + $0x2b0] sm:$0xff]  ;;  %v260_v51 = vld [vmem:[%s3647_s5 + $0x2f8] sm:$0xff] }
  0x58   : > { %v1000_v3 = vadd.f32 %v999_v54, %v608_v26  ;;  %v992_v4 = vadd.f32 %v991_v55, %v601_v43  ;;  %v627_v6 = vmul.f32 %v243_v53, %v243_v53  ;;  %v613_v10 = vmul.f32 %v229_v56, %v229_v56  ;;  %v256_v26 = vld [vmem:[%s3647_s5 + $0x2d8] sm:$0xff]  ;;  %v267_v57 = vld [vmem:[%s3647_s5 + $0x330] sm:$0xff] }
  0x59   : > { %v1012_v9 = vadd.f32 %v1011_v63, %v618_v50  ;;  %v628_v13 = vmul.f32 %v244_v59, %v244_v59  ;;  %v629_v14 = vmul.f32 %v245_v60, %v245_v60  ;;  %v614_v17 = vmul.f32 %v230_v0, %v230_v0  ;;  %v259_v50 = vld [vmem:[%s3647_s5 + $0x2f0] sm:$0xff]  ;;  %v252_v52 = vld [vmem:[%s3647_s5 + $0x2b8] sm:$0xff]  ;;  %v253_v60 = vld [vmem:[%s3647_s5 + $0x2c0] sm:$0xff] }
  0x5a   : > { %1001 = vadd.xlane.f32.xlu1 %v1000_v3  ;;  %v993_v16 = vadd.f32 %v992_v4, %v602_v44  ;;  %v1004_v18 = vadd.f32 %v1003_v5, %v611_v58  ;;  %v630_v19 = vmul.f32 %v246_v2, %v246_v2  ;;  %v621_v23 = vmul.f32 %v237_v7, %v237_v7  ;;  %v250_v44 = vld [vmem:[%s3647_s5 + $0x2a8] sm:$0xff]  ;;  %v268_v63 = vld [vmem:[%s3647_s5 + $0x338] sm:$0xff]  ;;  %v269_v0 = vld [vmem:[%s3647_s5 + $0x340] sm:$0xff] }
  0x5b   : > { %v1013_v21 = vadd.f32 %v1012_v9, %v619_v61  ;;  %v1024_v22 = vadd.f32 %v628_v13, %v627_v6  ;;  %v622_v24 = vmul.f32 %v238_v8, %v238_v8  ;;  %v631_v29 = vmul.f32 %v247_v11, %v247_v11  ;;  %v254_v4 = vld [vmem:[%s3647_s5 + $0x2c8] sm:$0xff]  ;;  %v261_v11 = vld [vmem:[%s3647_s5 + $0x300] sm:$0xff] }
  0x5c   : > { %994 = vadd.xlane.f32.xlu0 %v993_v16  ;;  %v1005_v28 = vadd.f32 %v1004_v18, %v612_v1  ;;  %v632_v30 = vmul.f32 %v248_v12, %v248_v12  ;;  %v623_v33 = vmul.f32 %v239_v15, %v239_v15  ;;  %v624_v36 = vmul.f32 %v240_v20, %v240_v20  ;;  %v270_v6 = vld [vmem:[%s3647_s5 + $0x348] sm:$0xff]  ;;  %v271_v15 = vld [vmem:[%s3647_s5 + $0x350] sm:$0xff]  ;;  %v272_v16 = vld [vmem:[%s3647_s5 + $0x358] sm:$0xff] }
  0x5d   : > { %v1014_v34 = vadd.f32 %v1013_v21, %v620_v62  ;;  %v1025_v35 = vadd.f32 %v1024_v22, %v629_v14  ;;  %v1017_v37 = vadd.f32 %v622_v24, %v621_v23  ;;  %v639_v41 = vmul.f32 %v255_v25, %v255_v25  ;;  %v262_v12 = vld [vmem:[%s3647_s5 + $0x308] sm:$0xff]  ;;  %v264_v24 = vld [vmem:[%s3647_s5 + $0x318] sm:$0xff] }
  0x5e   : > { %v1006_v40 = vadd.f32 %v1005_v28, %v613_v10  ;;  %v640_v42 = vmul.f32 %v256_v26, %v256_v26  ;;  %v641_v43 = vmul.f32 %v257_v27, %v257_v27  ;;  %v625_v47 = vmul.f32 %v241_v31, %v241_v31  ;;  %v281_v31 = vld [vmem:[%s3647_s5 + $0x3a0] sm:$0xff] }
  0x5f   : > { %1015 = vadd.xlane.f32.xlu1 %v1014_v34  ;;  %v1026_v46 = vadd.f32 %v1025_v35, %v630_v19  ;;  %v626_v48 = vmul.f32 %v242_v32, %v242_v32  ;;  %v1018_v49 = vadd.f32 %v1017_v37, %v623_v33  ;;  %v642_v54 = vmul.f32 %v258_v38, %v258_v38  ;;  %v263_v19 = vld [vmem:[%s3647_s5 + $0x310] sm:$0xff]  ;;  %v265_v35 = vld [vmem:[%s3647_s5 + $0x320] sm:$0xff] }
  0x60   : > { %v1007_v53 = vadd.f32 %v1006_v40, %v614_v17  ;;  %v1038_v55 = vadd.f32 %v640_v42, %v639_v41  ;;  %v633_v56 = vmul.f32 %v249_v39, %v249_v39  ;;  %v634_v61 = vmul.f32 %v250_v44, %v250_v44  ;;  %v282_v42 = vld [vmem:[%s3647_s5 + $0x3a8] sm:$0xff] }
  0x61   : > { %v1027_v58 = vadd.f32 %v1026_v46, %v631_v29  ;;  %v1019_v59 = vadd.f32 %v1018_v49, %v624_v36  ;;  %v635_v62 = vmul.f32 %v251_v45, %v251_v45  ;;  %v643_v1 = vmul.f32 %v259_v50, %v259_v50  ;;  %v279_v29 = vld [vmem:[%s3647_s5 + $0x390] sm:$0xff]  ;;  %v266_v36 = vld [vmem:[%s3647_s5 + $0x328] sm:$0xff] }
  0x62   : > { %1008 = vadd.xlane.f32.xlu0 %v1007_v53  ;;  %v644_v2 = vmul.f32 %v260_v51, %v260_v51  ;;  %v1039_v3 = vadd.f32 %v1038_v55, %v641_v43  ;;  %v636_v5 = vmul.f32 %v252_v52, %v252_v52  ;;  %v1031_v9 = vadd.f32 %v634_v61, %v633_v56  ;;  %v273_v43 = vld [vmem:[%s3647_s5 + $0x360] sm:$0xff]  ;;  %v275_v49 = vld [vmem:[%s3647_s5 + $0x370] sm:$0xff]  ;;  %v284_v55 = vld [vmem:[%s3647_s5 + $0x3b8] sm:$0xff] }
  0x63   : > { %v1028_v7 = vadd.f32 %v1027_v58, %v632_v30  ;;  %v1020_v8 = vadd.f32 %v1019_v59, %v625_v47  ;;  %v651_v10 = vmul.f32 %v267_v57, %v267_v57  ;;  %v637_v14 = vmul.f32 %v253_v60, %v253_v60  ;;  %v280_v30 = vld [vmem:[%s3647_s5 + $0x398] sm:$0xff]  ;;  %v291_v61 = vld [vmem:[%s3647_s5 + $0x3f0] sm:$0xff] }
  0x64   : > { %v1040_v13 = vadd.f32 %v1039_v3, %v642_v54  ;;  %v652_v17 = vmul.f32 %v268_v63, %v268_v63  ;;  %v653_v18 = vmul.f32 %v269_v0, %v269_v0  ;;  %v638_v21 = vmul.f32 %v254_v4, %v254_v4  ;;  %v283_v54 = vld [vmem:[%s3647_s5 + $0x3b0] sm:$0xff]  ;;  %v276_v56 = vld [vmem:[%s3647_s5 + $0x378] sm:$0xff]  ;;  %v277_v0 = vld [vmem:[%s3647_s5 + $0x380] sm:$0xff] }
  0x65   : > { %1029 = vadd.xlane.f32.xlu1 %v1028_v7  ;;  %v1021_v20 = vadd.f32 %v1020_v8, %v626_v48  ;;  %v1032_v22 = vadd.f32 %v1031_v9, %v635_v62  ;;  %v654_v23 = vmul.f32 %v270_v6, %v270_v6  ;;  %v645_v27 = vmul.f32 %v261_v11, %v261_v11  ;;  %v274_v48 = vld [vmem:[%s3647_s5 + $0x368] sm:$0xff]  ;;  %v292_v3 = vld [vmem:[%s3647_s5 + $0x3f8] sm:$0xff]  ;;  %v293_v4 = vld [vmem:[%s3647_s5 + $0x400] sm:$0xff] }
  0x66   : > { %v1041_v25 = vadd.f32 %v1040_v13, %v643_v1  ;;  %v1052_v26 = vadd.f32 %v652_v17, %v651_v10  ;;  %v646_v28 = vmul.f32 %v262_v12, %v262_v12  ;;  %v655_v33 = vmul.f32 %v271_v15, %v271_v15  ;;  %v278_v8 = vld [vmem:[%s3647_s5 + $0x388] sm:$0xff]  ;;  %v285_v15 = vld [vmem:[%s3647_s5 + $0x3c0] sm:$0xff] }
  0x67   : > { %1022 = vadd.xlane.f32.xlu0 %v1021_v20  ;;  %v1033_v32 = vadd.f32 %v1032_v22, %v636_v5  ;;  %v656_v34 = vmul.f32 %v272_v16, %v272_v16  ;;  %v647_v37 = vmul.f32 %v263_v19, %v263_v19  ;;  %v648_v40 = vmul.f32 %v264_v24, %v264_v24  ;;  %v294_v10 = vld [vmem:[%s3647_s5 + $0x408] sm:$0xff]  ;;  %v295_v19 = vld [vmem:[%s3647_s5 + $0x410] sm:$0xff]  ;;  %v296_v20 = vld [vmem:[%s3647_s5 + $0x418] sm:$0xff] }
  0x68   : > { %v1042_v38 = vadd.f32 %v1041_v25, %v644_v2  ;;  %v1053_v39 = vadd.f32 %v1052_v26, %v653_v18  ;;  %v1045_v41 = vadd.f32 %v646_v28, %v645_v27  ;;  %v663_v45 = vmul.f32 %v279_v29, %v279_v29  ;;  %v286_v16 = vld [vmem:[%s3647_s5 + $0x3c8] sm:$0xff]  ;;  %v288_v28 = vld [vmem:[%s3647_s5 + $0x3d8] sm:$0xff] }
  0x69   : > { %v1034_v44 = vadd.f32 %v1033_v32, %v637_v14  ;;  %v664_v46 = vmul.f32 %v280_v30, %v280_v30  ;;  %v665_v47 = vmul.f32 %v281_v31, %v281_v31  ;;  %v649_v51 = vmul.f32 %v265_v35, %v265_v35  ;;  %v305_v35 = vld [vmem:[%s3647_s5 + $0x460] sm:$0xff] }
  0x6a   : > { %1043 = vadd.xlane.f32.xlu1 %v1042_v38  ;;  %v1054_v50 = vadd.f32 %v1053_v39, %v654_v23  ;;  %v650_v52 = vmul.f32 %v266_v36, %v266_v36  ;;  %v1046_v53 = vadd.f32 %v1045_v41, %v647_v37  ;;  %v666_v58 = vmul.f32 %v282_v42, %v282_v42  ;;  %v287_v23 = vld [vmem:[%s3647_s5 + $0x3d0] sm:$0xff]  ;;  %v289_v39 = vld [vmem:[%s3647_s5 + $0x3e0] sm:$0xff] }
  0x6b   : > { %v1035_v57 = vadd.f32 %v1034_v44, %v638_v21  ;;  %v1066_v59 = vadd.f32 %v664_v46, %v663_v45  ;;  %v657_v60 = vmul.f32 %v273_v43, %v273_v43  ;;  %v658_v1 = vmul.f32 %v274_v48, %v274_v48  ;;  %v306_v46 = vld [vmem:[%s3647_s5 + $0x468] sm:$0xff] }
  0x6c   : > { %v1055_v62 = vadd.f32 %v1054_v50, %v655_v33  ;;  %v1047_v63 = vadd.f32 %v1046_v53, %v648_v40  ;;  %v659_v2 = vmul.f32 %v275_v49, %v275_v49  ;;  %v667_v5 = vmul.f32 %v283_v54, %v283_v54  ;;  %v303_v33 = vld [vmem:[%s3647_s5 + $0x450] sm:$0xff]  ;;  %v290_v40 = vld [vmem:[%s3647_s5 + $0x3e8] sm:$0xff] }
  0x6d   : > { %1036 = vadd.xlane.f32.xlu0 %v1035_v57  ;;  %v668_v6 = vmul.f32 %v284_v55, %v284_v55  ;;  %v1067_v7 = vadd.f32 %v1066_v59, %v665_v47  ;;  %v660_v9 = vmul.f32 %v276_v56, %v276_v56  ;;  %v1059_v13 = vadd.f32 %v658_v1, %v657_v60  ;;  %v297_v47 = vld [vmem:[%s3647_s5 + $0x420] sm:$0xff]  ;;  %v299_v53 = vld [vmem:[%s3647_s5 + $0x430] sm:$0xff]  ;;  %v308_v59 = vld [vmem:[%s3647_s5 + $0x478] sm:$0xff] }
  0x6e   : > { %v1056_v11 = vadd.f32 %v1055_v62, %v656_v34  ;;  %v1048_v12 = vadd.f32 %v1047_v63, %v649_v51  ;;  %v675_v14 = vmul.f32 %v291_v61, %v291_v61  ;;  %v661_v18 = vmul.f32 %v277_v0, %v277_v0  ;;  %v304_v34 = vld [vmem:[%s3647_s5 + $0x458] sm:$0xff]  ;;  %v315_v1 = vld [vmem:[%s3647_s5 + $0x4b0] sm:$0xff] }
  0x6f   : > { %v1068_v17 = vadd.f32 %v1067_v7, %v666_v58  ;;  %v676_v21 = vmul.f32 %v292_v3, %v292_v3  ;;  %v677_v22 = vmul.f32 %v293_v4, %v293_v4  ;;  %v662_v25 = vmul.f32 %v278_v8, %v278_v8  ;;  %v307_v58 = vld [vmem:[%s3647_s5 + $0x470] sm:$0xff]  ;;  %v300_v60 = vld [vmem:[%s3647_s5 + $0x438] sm:$0xff]  ;;  %v301_v4 = vld [vmem:[%s3647_s5 + $0x440] sm:$0xff] }
  0x70   : > { %1057 = vadd.xlane.f32.xlu1 %v1056_v11  ;;  %v1049_v24 = vadd.f32 %v1048_v12, %v650_v52  ;;  %v1060_v26 = vadd.f32 %v1059_v13, %v659_v2  ;;  %v678_v27 = vmul.f32 %v294_v10, %v294_v10  ;;  %v669_v31 = vmul.f32 %v285_v15, %v285_v15  ;;  %v298_v52 = vld [vmem:[%s3647_s5 + $0x428] sm:$0xff]  ;;  %v316_v7 = vld [vmem:[%s3647_s5 + $0x4b8] sm:$0xff]  ;;  %v317_v8 = vld [vmem:[%s3647_s5 + $0x4c0] sm:$0xff] }
  0x71   : > { %v1069_v29 = vadd.f32 %v1068_v17, %v667_v5  ;;  %v1080_v30 = vadd.f32 %v676_v21, %v675_v14  ;;  %v670_v32 = vmul.f32 %v286_v16, %v286_v16  ;;  %v679_v37 = vmul.f32 %v295_v19, %v295_v19  ;;  %v302_v12 = vld [vmem:[%s3647_s5 + $0x448] sm:$0xff]  ;;  %v309_v19 = vld [vmem:[%s3647_s5 + $0x480] sm:$0xff] }
  0x72   : > { %1050 = vadd.xlane.f32.xlu0 %v1049_v24  ;;  %v1061_v36 = vadd.f32 %v1060_v26, %v660_v9  ;;  %v680_v38 = vmul.f32 %v296_v20, %v296_v20  ;;  %v671_v41 = vmul.f32 %v287_v23, %v287_v23  ;;  %v672_v44 = vmul.f32 %v288_v28, %v288_v28  ;;  %v318_v14 = vld [vmem:[%s3647_s5 + $0x4c8] sm:$0xff]  ;;  %v319_v23 = vld [vmem:[%s3647_s5 + $0x4d0] sm:$0xff]  ;;  %v320_v24 = vld [vmem:[%s3647_s5 + $0x4d8] sm:$0xff] }
  0x73   : > { %v1070_v42 = vadd.f32 %v1069_v29, %v668_v6  ;;  %v1081_v43 = vadd.f32 %v1080_v30, %v677_v22  ;;  %v1073_v45 = vadd.f32 %v670_v32, %v669_v31  ;;  %v687_v49 = vmul.f32 %v303_v33, %v303_v33  ;;  %v310_v20 = vld [vmem:[%s3647_s5 + $0x488] sm:$0xff]  ;;  %v312_v32 = vld [vmem:[%s3647_s5 + $0x498] sm:$0xff] }
  0x74   : > { %v1062_v48 = vadd.f32 %v1061_v36, %v661_v18  ;;  %v688_v50 = vmul.f32 %v304_v34, %v304_v34  ;;  %v689_v51 = vmul.f32 %v305_v35, %v305_v35  ;;  %v673_v55 = vmul.f32 %v289_v39, %v289_v39  ;;  %v329_v39 = vld [vmem:[%s3647_s5 + $0x520] sm:$0xff] }
  0x75   : > { %1071 = vadd.xlane.f32.xlu1 %v1070_v42  ;;  %v1082_v54 = vadd.f32 %v1081_v43, %v678_v27  ;;  %v674_v56 = vmul.f32 %v290_v40, %v290_v40  ;;  %v1074_v57 = vadd.f32 %v1073_v45, %v671_v41  ;;  %v690_v62 = vmul.f32 %v306_v46, %v306_v46  ;;  %v311_v27 = vld [vmem:[%s3647_s5 + $0x490] sm:$0xff]  ;;  %v313_v43 = vld [vmem:[%s3647_s5 + $0x4a0] sm:$0xff] }
  0x76   : > { %v1063_v61 = vadd.f32 %v1062_v48, %v662_v25  ;;  %v1094_v63 = vadd.f32 %v688_v50, %v687_v49  ;;  %v681_v0 = vmul.f32 %v297_v47, %v297_v47  ;;  %v682_v5 = vmul.f32 %v298_v52, %v298_v52  ;;  %v330_v50 = vld [vmem:[%s3647_s5 + $0x528] sm:$0xff] }
  0x77   : > { %v1083_v2 = vadd.f32 %v1082_v54, %v679_v37  ;;  %v1075_v3 = vadd.f32 %v1074_v57, %v672_v44  ;;  %v683_v6 = vmul.f32 %v299_v53, %v299_v53  ;;  %v691_v9 = vmul.f32 %v307_v58, %v307_v58  ;;  %v327_v37 = vld [vmem:[%s3647_s5 + $0x510] sm:$0xff]  ;;  %v314_v44 = vld [vmem:[%s3647_s5 + $0x4a8] sm:$0xff] }
  0x78   : > { %1064 = vadd.xlane.f32.xlu0 %v1063_v61  ;;  %v692_v10 = vmul.f32 %v308_v59, %v308_v59  ;;  %v1095_v11 = vadd.f32 %v1094_v63, %v689_v51  ;;  %v684_v13 = vmul.f32 %v300_v60, %v300_v60  ;;  %v1087_v17 = vadd.f32 %v682_v5, %v681_v0  ;;  %v321_v51 = vld [vmem:[%s3647_s5 + $0x4e0] sm:$0xff]  ;;  %v323_v57 = vld [vmem:[%s3647_s5 + $0x4f0] sm:$0xff]  ;;  %v332_v63 = vld [vmem:[%s3647_s5 + $0x538] sm:$0xff] }
  0x79   : > { %v1084_v15 = vadd.f32 %v1083_v2, %v680_v38  ;;  %v1076_v16 = vadd.f32 %v1075_v3, %v673_v55  ;;  %v699_v18 = vmul.f32 %v315_v1, %v315_v1  ;;  %v685_v22 = vmul.f32 %v301_v4, %v301_v4  ;;  %v328_v38 = vld [vmem:[%s3647_s5 + $0x518] sm:$0xff]  ;;  %v339_v5 = vld [vmem:[%s3647_s5 + $0x570] sm:$0xff] }
  0x7a   : > { %v1096_v21 = vadd.f32 %v1095_v11, %v690_v62  ;;  %v700_v25 = vmul.f32 %v316_v7, %v316_v7  ;;  %v701_v26 = vmul.f32 %v317_v8, %v317_v8  ;;  %v686_v29 = vmul.f32 %v302_v12, %v302_v12  ;;  %v331_v62 = vld [vmem:[%s3647_s5 + $0x530] sm:$0xff]  ;;  %v324_v0 = vld [vmem:[%s3647_s5 + $0x4f8] sm:$0xff]  ;;  %v325_v8 = vld [vmem:[%s3647_s5 + $0x500] sm:$0xff] }
  0x7b   : > { %1085 = vadd.xlane.f32.xlu1 %v1084_v15  ;;  %v1077_v28 = vadd.f32 %v1076_v16, %v674_v56  ;;  %v1088_v30 = vadd.f32 %v1087_v17, %v683_v6  ;;  %v702_v31 = vmul.f32 %v318_v14, %v318_v14  ;;  %v693_v35 = vmul.f32 %v309_v19, %v309_v19  ;;  %v322_v56 = vld [vmem:[%s3647_s5 + $0x4e8] sm:$0xff]  ;;  %v340_v11 = vld [vmem:[%s3647_s5 + $0x578] sm:$0xff]  ;;  %v341_v12 = vld [vmem:[%s3647_s5 + $0x580] sm:$0xff] }
  0x7c   : > { %v1097_v33 = vadd.f32 %v1096_v21, %v691_v9  ;;  %v1108_v34 = vadd.f32 %v700_v25, %v699_v18  ;;  %v694_v36 = vmul.f32 %v310_v20, %v310_v20  ;;  %v703_v41 = vmul.f32 %v319_v23, %v319_v23  ;;  %v326_v16 = vld [vmem:[%s3647_s5 + $0x508] sm:$0xff]  ;;  %v333_v23 = vld [vmem:[%s3647_s5 + $0x540] sm:$0xff] }
  0x7d   : > { %1078 = vadd.xlane.f32.xlu0 %v1077_v28  ;;  %v1089_v40 = vadd.f32 %v1088_v30, %v684_v13  ;;  %v704_v42 = vmul.f32 %v320_v24, %v320_v24  ;;  %v695_v45 = vmul.f32 %v311_v27, %v311_v27  ;;  %v696_v48 = vmul.f32 %v312_v32, %v312_v32  ;;  %v342_v18 = vld [vmem:[%s3647_s5 + $0x588] sm:$0xff]  ;;  %v343_v27 = vld [vmem:[%s3647_s5 + $0x590] sm:$0xff]  ;;  %v344_v28 = vld [vmem:[%s3647_s5 + $0x598] sm:$0xff] }
  0x7e   : > { %v1098_v46 = vadd.f32 %v1097_v33, %v692_v10  ;;  %v1109_v47 = vadd.f32 %v1108_v34, %v701_v26  ;;  %v1101_v49 = vadd.f32 %v694_v36, %v693_v35  ;;  %v711_v53 = vmul.f32 %v327_v37, %v327_v37  ;;  %v334_v24 = vld [vmem:[%s3647_s5 + $0x548] sm:$0xff]  ;;  %v336_v36 = vld [vmem:[%s3647_s5 + $0x558] sm:$0xff] }
  0x7f   : > { %v1090_v52 = vadd.f32 %v1089_v40, %v685_v22  ;;  %v712_v54 = vmul.f32 %v328_v38, %v328_v38  ;;  %v713_v55 = vmul.f32 %v329_v39, %v329_v39  ;;  %v697_v59 = vmul.f32 %v313_v43, %v313_v43  ;;  %v353_v43 = vld [vmem:[%s3647_s5 + $0x5e0] sm:$0xff] }
  0x80   : > { %1099 = vadd.xlane.f32.xlu1 %v1098_v46  ;;  %v1110_v58 = vadd.f32 %v1109_v47, %v702_v31  ;;  %v698_v60 = vmul.f32 %v314_v44, %v314_v44  ;;  %v1102_v61 = vadd.f32 %v1101_v49, %v695_v45  ;;  %v714_v2 = vmul.f32 %v330_v50, %v330_v50  ;;  %v335_v31 = vld [vmem:[%s3647_s5 + $0x550] sm:$0xff]  ;;  %v337_v47 = vld [vmem:[%s3647_s5 + $0x560] sm:$0xff] }
  0x81   : > { %v1091_v1 = vadd.f32 %v1090_v52, %v686_v29  ;;  %v1122_v3 = vadd.f32 %v712_v54, %v711_v53  ;;  %v705_v4 = vmul.f32 %v321_v51, %v321_v51  ;;  %v706_v9 = vmul.f32 %v322_v56, %v322_v56  ;;  %v354_v54 = vld [vmem:[%s3647_s5 + $0x5e8] sm:$0xff] }
  0x82   : > { %v1111_v6 = vadd.f32 %v1110_v58, %v703_v41  ;;  %v1103_v7 = vadd.f32 %v1102_v61, %v696_v48  ;;  %v707_v10 = vmul.f32 %v323_v57, %v323_v57  ;;  %v715_v13 = vmul.f32 %v331_v62, %v331_v62  ;;  %v351_v41 = vld [vmem:[%s3647_s5 + $0x5d0] sm:$0xff]  ;;  %v338_v48 = vld [vmem:[%s3647_s5 + $0x568] sm:$0xff] }
  0x83   : > { %1092 = vadd.xlane.f32.xlu0 %v1091_v1  ;;  %v716_v14 = vmul.f32 %v332_v63, %v332_v63  ;;  %v1123_v15 = vadd.f32 %v1122_v3, %v713_v55  ;;  %v708_v17 = vmul.f32 %v324_v0, %v324_v0  ;;  %v1115_v21 = vadd.f32 %v706_v9, %v705_v4  ;;  %v345_v55 = vld [vmem:[%s3647_s5 + $0x5a0] sm:$0xff]  ;;  %v347_v61 = vld [vmem:[%s3647_s5 + $0x5b0] sm:$0xff]  ;;  %v356_v3 = vld [vmem:[%s3647_s5 + $0x5f8] sm:$0xff] }
  0x84   : > { %v1112_v19 = vadd.f32 %v1111_v6, %v704_v42  ;;  %v1104_v20 = vadd.f32 %v1103_v7, %v697_v59  ;;  %v723_v22 = vmul.f32 %v339_v5, %v339_v5  ;;  %v709_v26 = vmul.f32 %v325_v8, %v325_v8  ;;  %v352_v42 = vld [vmem:[%s3647_s5 + $0x5d8] sm:$0xff]  ;;  %v363_v9 = vld [vmem:[%s3647_s5 + $0x630] sm:$0xff] }
  0x85   : > { %v1124_v25 = vadd.f32 %v1123_v15, %v714_v2  ;;  %v724_v29 = vmul.f32 %v340_v11, %v340_v11  ;;  %v725_v30 = vmul.f32 %v341_v12, %v341_v12  ;;  %v710_v33 = vmul.f32 %v326_v16, %v326_v16  ;;  %v355_v2 = vld [vmem:[%s3647_s5 + $0x5f0] sm:$0xff]  ;;  %v348_v4 = vld [vmem:[%s3647_s5 + $0x5b8] sm:$0xff]  ;;  %v349_v12 = vld [vmem:[%s3647_s5 + $0x5c0] sm:$0xff] }
  0x86   : > { %1113 = vadd.xlane.f32.xlu1 %v1112_v19  ;;  %v1105_v32 = vadd.f32 %v1104_v20, %v698_v60  ;;  %v1116_v34 = vadd.f32 %v1115_v21, %v707_v10  ;;  %v726_v35 = vmul.f32 %v342_v18, %v342_v18  ;;  %v717_v39 = vmul.f32 %v333_v23, %v333_v23  ;;  %v346_v60 = vld [vmem:[%s3647_s5 + $0x5a8] sm:$0xff]  ;;  %v364_v15 = vld [vmem:[%s3647_s5 + $0x638] sm:$0xff]  ;;  %v365_v16 = vld [vmem:[%s3647_s5 + $0x640] sm:$0xff] }
  0x87   : > { %v1125_v37 = vadd.f32 %v1124_v25, %v715_v13  ;;  %v1136_v38 = vadd.f32 %v724_v29, %v723_v22  ;;  %v718_v40 = vmul.f32 %v334_v24, %v334_v24  ;;  %v727_v45 = vmul.f32 %v343_v27, %v343_v27  ;;  %v350_v20 = vld [vmem:[%s3647_s5 + $0x5c8] sm:$0xff]  ;;  %v357_v27 = vld [vmem:[%s3647_s5 + $0x600] sm:$0xff] }
  0x88   : > { %1106 = vadd.xlane.f32.xlu0 %v1105_v32  ;;  %v1117_v44 = vadd.f32 %v1116_v34, %v708_v17  ;;  %v728_v46 = vmul.f32 %v344_v28, %v344_v28  ;;  %v719_v49 = vmul.f32 %v335_v31, %v335_v31  ;;  %v720_v52 = vmul.f32 %v336_v36, %v336_v36  ;;  %v366_v22 = vld [vmem:[%s3647_s5 + $0x648] sm:$0xff]  ;;  %v367_v31 = vld [vmem:[%s3647_s5 + $0x650] sm:$0xff]  ;;  %v368_v32 = vld [vmem:[%s3647_s5 + $0x658] sm:$0xff] }
  0x89   : > { %v1126_v50 = vadd.f32 %v1125_v37, %v716_v14  ;;  %v1137_v51 = vadd.f32 %v1136_v38, %v725_v30  ;;  %v1129_v53 = vadd.f32 %v718_v40, %v717_v39  ;;  %v735_v57 = vmul.f32 %v351_v41, %v351_v41  ;;  %v358_v28 = vld [vmem:[%s3647_s5 + $0x608] sm:$0xff]  ;;  %v360_v40 = vld [vmem:[%s3647_s5 + $0x618] sm:$0xff] }
  0x8a   : > { %v1118_v56 = vadd.f32 %v1117_v44, %v709_v26  ;;  %v736_v58 = vmul.f32 %v352_v42, %v352_v42  ;;  %v737_v59 = vmul.f32 %v353_v43, %v353_v43  ;;  %v721_v63 = vmul.f32 %v337_v47, %v337_v47  ;;  %v377_v47 = vld [vmem:[%s3647_s5 + $0x6a0] sm:$0xff] }
  0x8b   : > { %1127 = vadd.xlane.f32.xlu1 %v1126_v50  ;;  %v1138_v62 = vadd.f32 %v1137_v51, %v726_v35  ;;  %v722_v0 = vmul.f32 %v338_v48, %v338_v48  ;;  %v1130_v1 = vadd.f32 %v1129_v53, %v719_v49  ;;  %v738_v6 = vmul.f32 %v354_v54, %v354_v54  ;;  %v359_v35 = vld [vmem:[%s3647_s5 + $0x610] sm:$0xff]  ;;  %v361_v51 = vld [vmem:[%s3647_s5 + $0x620] sm:$0xff] }
  0x8c   : > { %v1119_v5 = vadd.f32 %v1118_v56, %v710_v33  ;;  %v1150_v7 = vadd.f32 %v736_v58, %v735_v57  ;;  %v729_v8 = vmul.f32 %v345_v55, %v345_v55  ;;  %v730_v13 = vmul.f32 %v346_v60, %v346_v60  ;;  %v378_v58 = vld [vmem:[%s3647_s5 + $0x6a8] sm:$0xff] }
  0x8d   : > { %v1139_v10 = vadd.f32 %v1138_v62, %v727_v45  ;;  %v1131_v11 = vadd.f32 %v1130_v1, %v720_v52  ;;  %v731_v14 = vmul.f32 %v347_v61, %v347_v61  ;;  %v739_v17 = vmul.f32 %v355_v2, %v355_v2  ;;  %v375_v45 = vld [vmem:[%s3647_s5 + $0x690] sm:$0xff]  ;;  %v362_v52 = vld [vmem:[%s3647_s5 + $0x628] sm:$0xff] }
  0x8e   : > { %1120 = vadd.xlane.f32.xlu0 %v1119_v5  ;;  %v740_v18 = vmul.f32 %v356_v3, %v356_v3  ;;  %v1151_v19 = vadd.f32 %v1150_v7, %v737_v59  ;;  %v732_v21 = vmul.f32 %v348_v4, %v348_v4  ;;  %v1143_v25 = vadd.f32 %v730_v13, %v729_v8  ;;  %v369_v59 = vld [vmem:[%s3647_s5 + $0x660] sm:$0xff]  ;;  %v371_v1 = vld [vmem:[%s3647_s5 + $0x670] sm:$0xff]  ;;  %v380_v7 = vld [vmem:[%s3647_s5 + $0x6b8] sm:$0xff] }
  0x8f   : > { %v1140_v23 = vadd.f32 %v1139_v10, %v728_v46  ;;  %v1132_v24 = vadd.f32 %v1131_v11, %v721_v63  ;;  %v747_v26 = vmul.f32 %v363_v9, %v363_v9  ;;  %v733_v30 = vmul.f32 %v349_v12, %v349_v12  ;;  %v376_v46 = vld [vmem:[%s3647_s5 + $0x698] sm:$0xff]  ;;  %v387_v13 = vld [vmem:[%s3647_s5 + $0x6f0] sm:$0xff] }
  0x90   : > { %v1152_v29 = vadd.f32 %v1151_v19, %v738_v6  ;;  %v748_v33 = vmul.f32 %v364_v15, %v364_v15  ;;  %v749_v34 = vmul.f32 %v365_v16, %v365_v16  ;;  %v734_v37 = vmul.f32 %v350_v20, %v350_v20  ;;  %v379_v6 = vld [vmem:[%s3647_s5 + $0x6b0] sm:$0xff]  ;;  %v372_v8 = vld [vmem:[%s3647_s5 + $0x678] sm:$0xff]  ;;  %v373_v16 = vld [vmem:[%s3647_s5 + $0x680] sm:$0xff] }
  0x91   : > { %1141 = vadd.xlane.f32.xlu1 %v1140_v23  ;;  %v1133_v36 = vadd.f32 %v1132_v24, %v722_v0  ;;  %v1144_v38 = vadd.f32 %v1143_v25, %v731_v14  ;;  %v750_v39 = vmul.f32 %v366_v22, %v366_v22  ;;  %v741_v43 = vmul.f32 %v357_v27, %v357_v27  ;;  %v370_v0 = vld [vmem:[%s3647_s5 + $0x668] sm:$0xff]  ;;  %v388_v19 = vld [vmem:[%s3647_s5 + $0x6f8] sm:$0xff]  ;;  %v389_v20 = vld [vmem:[%s3647_s5 + $0x700] sm:$0xff] }
  0x92   : > { %v1153_v41 = vadd.f32 %v1152_v29, %v739_v17  ;;  %v1164_v42 = vadd.f32 %v748_v33, %v747_v26  ;;  %v742_v44 = vmul.f32 %v358_v28, %v358_v28  ;;  %v751_v49 = vmul.f32 %v367_v31, %v367_v31  ;;  %v374_v24 = vld [vmem:[%s3647_s5 + $0x688] sm:$0xff]  ;;  %v381_v31 = vld [vmem:[%s3647_s5 + $0x6c0] sm:$0xff] }
  0x93   : > { %1134 = vadd.xlane.f32.xlu0 %v1133_v36  ;;  %v1145_v48 = vadd.f32 %v1144_v38, %v732_v21  ;;  %v752_v50 = vmul.f32 %v368_v32, %v368_v32  ;;  %v743_v53 = vmul.f32 %v359_v35, %v359_v35  ;;  %v744_v56 = vmul.f32 %v360_v40, %v360_v40  ;;  %v390_v26 = vld [vmem:[%s3647_s5 + $0x708] sm:$0xff]  ;;  %v391_v35 = vld [vmem:[%s3647_s5 + $0x710] sm:$0xff]  ;;  %v392_v36 = vld [vmem:[%s3647_s5 + $0x718] sm:$0xff] }
  0x94   : > { %v1154_v54 = vadd.f32 %v1153_v41, %v740_v18  ;;  %v1165_v55 = vadd.f32 %v1164_v42, %v749_v34  ;;  %v1157_v57 = vadd.f32 %v742_v44, %v741_v43  ;;  %v759_v61 = vmul.f32 %v375_v45, %v375_v45  ;;  %v382_v32 = vld [vmem:[%s3647_s5 + $0x6c8] sm:$0xff]  ;;  %v384_v44 = vld [vmem:[%s3647_s5 + $0x6d8] sm:$0xff] }
  0x95   : > { %v1146_v60 = vadd.f32 %v1145_v48, %v733_v30  ;;  %v760_v62 = vmul.f32 %v376_v46, %v376_v46  ;;  %v761_v63 = vmul.f32 %v377_v47, %v377_v47  ;;  %v745_v3 = vmul.f32 %v361_v51, %v361_v51  ;;  %v401_v51 = vld [vmem:[%s3647_s5 + $0x760] sm:$0xff] }
  0x96   : > { %1155 = vadd.xlane.f32.xlu1 %v1154_v54  ;;  %v1166_v2 = vadd.f32 %v1165_v55, %v750_v39  ;;  %v746_v4 = vmul.f32 %v362_v52, %v362_v52  ;;  %v1158_v5 = vadd.f32 %v1157_v57, %v743_v53  ;;  %v762_v10 = vmul.f32 %v378_v58, %v378_v58  ;;  %v383_v39 = vld [vmem:[%s3647_s5 + $0x6d0] sm:$0xff]  ;;  %v385_v55 = vld [vmem:[%s3647_s5 + $0x6e0] sm:$0xff] }
  0x97   : > { %v1147_v9 = vadd.f32 %v1146_v60, %v734_v37  ;;  %v1178_v11 = vadd.f32 %v760_v62, %v759_v61  ;;  %v753_v12 = vmul.f32 %v369_v59, %v369_v59  ;;  %v754_v17 = vmul.f32 %v370_v0, %v370_v0  ;;  %v402_v62 = vld [vmem:[%s3647_s5 + $0x768] sm:$0xff] }
  0x98   : > { %v1167_v14 = vadd.f32 %v1166_v2, %v751_v49  ;;  %v1159_v15 = vadd.f32 %v1158_v5, %v744_v56  ;;  %v755_v18 = vmul.f32 %v371_v1, %v371_v1  ;;  %v763_v21 = vmul.f32 %v379_v6, %v379_v6  ;;  %v399_v49 = vld [vmem:[%s3647_s5 + $0x750] sm:$0xff]  ;;  %v386_v56 = vld [vmem:[%s3647_s5 + $0x6e8] sm:$0xff] }
  0x99   : > { %1148 = vadd.xlane.f32.xlu0 %v1147_v9  ;;  %v764_v22 = vmul.f32 %v380_v7, %v380_v7  ;;  %v1179_v23 = vadd.f32 %v1178_v11, %v761_v63  ;;  %v756_v25 = vmul.f32 %v372_v8, %v372_v8  ;;  %v1171_v29 = vadd.f32 %v754_v17, %v753_v12  ;;  %v393_v63 = vld [vmem:[%s3647_s5 + $0x720] sm:$0xff]  ;;  %v395_v5 = vld [vmem:[%s3647_s5 + $0x730] sm:$0xff]  ;;  %v404_v11 = vld [vmem:[%s3647_s5 + $0x778] sm:$0xff] }
  0x9a   : > { %v1168_v27 = vadd.f32 %v1167_v14, %v752_v50  ;;  %v1160_v28 = vadd.f32 %v1159_v15, %v745_v3  ;;  %v771_v30 = vmul.f32 %v387_v13, %v387_v13  ;;  %v757_v34 = vmul.f32 %v373_v16, %v373_v16  ;;  %v400_v50 = vld [vmem:[%s3647_s5 + $0x758] sm:$0xff]  ;;  %v411_v17 = vld [vmem:[%s3647_s5 + $0x7b0] sm:$0xff] }
  0x9b   : > { %v1180_v33 = vadd.f32 %v1179_v23, %v762_v10  ;;  %v772_v37 = vmul.f32 %v388_v19, %v388_v19  ;;  %v773_v38 = vmul.f32 %v389_v20, %v389_v20  ;;  %v758_v41 = vmul.f32 %v374_v24, %v374_v24  ;;  %v403_v10 = vld [vmem:[%s3647_s5 + $0x770] sm:$0xff]  ;;  %v396_v12 = vld [vmem:[%s3647_s5 + $0x738] sm:$0xff]  ;;  %v397_v20 = vld [vmem:[%s3647_s5 + $0x740] sm:$0xff] }
  0x9c   : > { %1169 = vadd.xlane.f32.xlu1 %v1168_v27  ;;  %v1161_v40 = vadd.f32 %v1160_v28, %v746_v4  ;;  %v1172_v42 = vadd.f32 %v1171_v29, %v755_v18  ;;  %v774_v43 = vmul.f32 %v390_v26, %v390_v26  ;;  %v765_v47 = vmul.f32 %v381_v31, %v381_v31  ;;  %v394_v4 = vld [vmem:[%s3647_s5 + $0x728] sm:$0xff]  ;;  %v412_v23 = vld [vmem:[%s3647_s5 + $0x7b8] sm:$0xff]  ;;  %v413_v24 = vld [vmem:[%s3647_s5 + $0x7c0] sm:$0xff] }
  0x9d   : > { %v1181_v45 = vadd.f32 %v1180_v33, %v763_v21  ;;  %v1192_v46 = vadd.f32 %v772_v37, %v771_v30  ;;  %v766_v48 = vmul.f32 %v382_v32, %v382_v32  ;;  %v775_v53 = vmul.f32 %v391_v35, %v391_v35  ;;  %v398_v28 = vld [vmem:[%s3647_s5 + $0x748] sm:$0xff]  ;;  %v405_v35 = vld [vmem:[%s3647_s5 + $0x780] sm:$0xff] }
  0x9e   : > { %1162 = vadd.xlane.f32.xlu0 %v1161_v40  ;;  %v1173_v52 = vadd.f32 %v1172_v42, %v756_v25  ;;  %v776_v54 = vmul.f32 %v392_v36, %v392_v36  ;;  %v767_v57 = vmul.f32 %v383_v39, %v383_v39  ;;  %v768_v60 = vmul.f32 %v384_v44, %v384_v44  ;;  %v414_v30 = vld [vmem:[%s3647_s5 + $0x7c8] sm:$0xff]  ;;  %v415_v39 = vld [vmem:[%s3647_s5 + $0x7d0] sm:$0xff]  ;;  %v416_v40 = vld [vmem:[%s3647_s5 + $0x7d8] sm:$0xff] }
  0x9f   : > { %v1182_v58 = vadd.f32 %v1181_v45, %v764_v22  ;;  %v1193_v59 = vadd.f32 %v1192_v46, %v773_v38  ;;  %v1185_v61 = vadd.f32 %v766_v48, %v765_v47  ;;  %v783_v1 = vmul.f32 %v399_v49, %v399_v49  ;;  %v406_v36 = vld [vmem:[%s3647_s5 + $0x788] sm:$0xff]  ;;  %v408_v48 = vld [vmem:[%s3647_s5 + $0x798] sm:$0xff] }
  0xa0   : > { %v1174_v0 = vadd.f32 %v1173_v52, %v757_v34  ;;  %v784_v2 = vmul.f32 %v400_v50, %v400_v50  ;;  %v785_v3 = vmul.f32 %v401_v51, %v401_v51  ;;  %v769_v7 = vmul.f32 %v385_v55, %v385_v55  ;;  %v425_v55 = vld [vmem:[%s3647_s5 + $0x820] sm:$0xff] }
  0xa1   : > { %1183 = vadd.xlane.f32.xlu1 %v1182_v58  ;;  %v1194_v6 = vadd.f32 %v1193_v59, %v774_v43  ;;  %v770_v8 = vmul.f32 %v386_v56, %v386_v56  ;;  %v1186_v9 = vadd.f32 %v1185_v61, %v767_v57  ;;  %v786_v14 = vmul.f32 %v402_v62, %v402_v62  ;;  %v407_v43 = vld [vmem:[%s3647_s5 + $0x790] sm:$0xff]  ;;  %v409_v59 = vld [vmem:[%s3647_s5 + $0x7a0] sm:$0xff] }
  0xa2   : > { %v1175_v13 = vadd.f32 %v1174_v0, %v758_v41  ;;  %v1206_v15 = vadd.f32 %v784_v2, %v783_v1  ;;  %v777_v16 = vmul.f32 %v393_v63, %v393_v63  ;;  %v778_v21 = vmul.f32 %v394_v4, %v394_v4  ;;  %v426_v2 = vld [vmem:[%s3647_s5 + $0x828] sm:$0xff] }
  0xa3   : > { %v1195_v18 = vadd.f32 %v1194_v6, %v775_v53  ;;  %v1187_v19 = vadd.f32 %v1186_v9, %v768_v60  ;;  %v779_v22 = vmul.f32 %v395_v5, %v395_v5  ;;  %v787_v25 = vmul.f32 %v403_v10, %v403_v10  ;;  %v423_v53 = vld [vmem:[%s3647_s5 + $0x810] sm:$0xff]  ;;  %v410_v60 = vld [vmem:[%s3647_s5 + $0x7a8] sm:$0xff] }
  0xa4   : > { %1176 = vadd.xlane.f32.xlu0 %v1175_v13  ;;  %v788_v26 = vmul.f32 %v404_v11, %v404_v11  ;;  %v1207_v27 = vadd.f32 %v1206_v15, %v785_v3  ;;  %v780_v29 = vmul.f32 %v396_v12, %v396_v12  ;;  %v1199_v33 = vadd.f32 %v778_v21, %v777_v16  ;;  %v417_v3 = vld [vmem:[%s3647_s5 + $0x7e0] sm:$0xff]  ;;  %v419_v9 = vld [vmem:[%s3647_s5 + $0x7f0] sm:$0xff]  ;;  %v428_v15 = vld [vmem:[%s3647_s5 + $0x838] sm:$0xff] }
  0xa5   : > { %v1196_v31 = vadd.f32 %v1195_v18, %v776_v54  ;;  %v1188_v32 = vadd.f32 %v1187_v19, %v769_v7  ;;  %v795_v34 = vmul.f32 %v411_v17, %v411_v17  ;;  %v781_v38 = vmul.f32 %v397_v20, %v397_v20  ;;  %v424_v54 = vld [vmem:[%s3647_s5 + $0x818] sm:$0xff]  ;;  %v435_v21 = vld [vmem:[%s3647_s5 + $0x870] sm:$0xff] }
  0xa6   : > { %v1208_v37 = vadd.f32 %v1207_v27, %v786_v14  ;;  %v796_v41 = vmul.f32 %v412_v23, %v412_v23  ;;  %v797_v42 = vmul.f32 %v413_v24, %v413_v24  ;;  %v782_v45 = vmul.f32 %v398_v28, %v398_v28  ;;  %v427_v14 = vld [vmem:[%s3647_s5 + $0x830] sm:$0xff]  ;;  %v420_v16 = vld [vmem:[%s3647_s5 + $0x7f8] sm:$0xff]  ;;  %v421_v24 = vld [vmem:[%s3647_s5 + $0x800] sm:$0xff] }
  0xa7   : > { %1197 = vadd.xlane.f32.xlu1 %v1196_v31  ;;  %v1189_v44 = vadd.f32 %v1188_v32, %v770_v8  ;;  %v1200_v46 = vadd.f32 %v1199_v33, %v779_v22  ;;  %v798_v47 = vmul.f32 %v414_v30, %v414_v30  ;;  %v789_v51 = vmul.f32 %v405_v35, %v405_v35  ;;  %v418_v8 = vld [vmem:[%s3647_s5 + $0x7e8] sm:$0xff]  ;;  %v436_v27 = vld [vmem:[%s3647_s5 + $0x878] sm:$0xff]  ;;  %v437_v28 = vld [vmem:[%s3647_s5 + $0x880] sm:$0xff] }
  0xa8   : > { %v1209_v49 = vadd.f32 %v1208_v37, %v787_v25  ;;  %v1220_v50 = vadd.f32 %v796_v41, %v795_v34  ;;  %v790_v52 = vmul.f32 %v406_v36, %v406_v36  ;;  %v799_v57 = vmul.f32 %v415_v39, %v415_v39  ;;  %v422_v32 = vld [vmem:[%s3647_s5 + $0x808] sm:$0xff]  ;;  %v429_v39 = vld [vmem:[%s3647_s5 + $0x840] sm:$0xff] }
  0xa9   : > { %1190 = vadd.xlane.f32.xlu0 %v1189_v44  ;;  %v1201_v56 = vadd.f32 %v1200_v46, %v780_v29  ;;  %v800_v58 = vmul.f32 %v416_v40, %v416_v40  ;;  %v791_v61 = vmul.f32 %v407_v43, %v407_v43  ;;  %v792_v0 = vmul.f32 %v408_v48, %v408_v48  ;;  %v438_v34 = vld [vmem:[%s3647_s5 + $0x888] sm:$0xff]  ;;  %v439_v43 = vld [vmem:[%s3647_s5 + $0x890] sm:$0xff]  ;;  %v440_v44 = vld [vmem:[%s3647_s5 + $0x898] sm:$0xff] }
  0xaa   : > { %v1210_v62 = vadd.f32 %v1209_v49, %v788_v26  ;;  %v1221_v63 = vadd.f32 %v1220_v50, %v797_v42  ;;  %v1213_v1 = vadd.f32 %v790_v52, %v789_v51  ;;  %v807_v5 = vmul.f32 %v423_v53, %v423_v53  ;;  %v430_v40 = vld [vmem:[%s3647_s5 + $0x848] sm:$0xff]  ;;  %v432_v52 = vld [vmem:[%s3647_s5 + $0x858] sm:$0xff] }
  0xab   : > { %v1202_v4 = vadd.f32 %v1201_v56, %v781_v38  ;;  %v808_v6 = vmul.f32 %v424_v54, %v424_v54  ;;  %v809_v7 = vmul.f32 %v425_v55, %v425_v55  ;;  %v793_v11 = vmul.f32 %v409_v59, %v409_v59  ;;  %v449_v59 = vld [vmem:[%s3647_s5 + $0x8e0] sm:$0xff] }
  0xac   : > { %1211 = vadd.xlane.f32.xlu1 %v1210_v62  ;;  %v1222_v10 = vadd.f32 %v1221_v63, %v798_v47  ;;  %v794_v12 = vmul.f32 %v410_v60, %v410_v60  ;;  %v1214_v13 = vadd.f32 %v1213_v1, %v791_v61  ;;  %v810_v18 = vmul.f32 %v426_v2, %v426_v2  ;;  %v431_v47 = vld [vmem:[%s3647_s5 + $0x850] sm:$0xff]  ;;  %v433_v63 = vld [vmem:[%s3647_s5 + $0x860] sm:$0xff] }
  0xad   : > { %v1203_v17 = vadd.f32 %v1202_v4, %v782_v45  ;;  %v1234_v19 = vadd.f32 %v808_v6, %v807_v5  ;;  %v801_v20 = vmul.f32 %v417_v3, %v417_v3  ;;  %v802_v25 = vmul.f32 %v418_v8, %v418_v8  ;;  %v450_v6 = vld [vmem:[%s3647_s5 + $0x8e8] sm:$0xff] }
  0xae   : > { %v1223_v22 = vadd.f32 %v1222_v10, %v799_v57  ;;  %v1215_v23 = vadd.f32 %v1214_v13, %v792_v0  ;;  %v803_v26 = vmul.f32 %v419_v9, %v419_v9  ;;  %v811_v29 = vmul.f32 %v427_v14, %v427_v14  ;;  %v447_v57 = vld [vmem:[%s3647_s5 + $0x8d0] sm:$0xff]  ;;  %v434_v0 = vld [vmem:[%s3647_s5 + $0x868] sm:$0xff] }
  0xaf   : > { %1204 = vadd.xlane.f32.xlu0 %v1203_v17  ;;  %v812_v30 = vmul.f32 %v428_v15, %v428_v15  ;;  %v1235_v31 = vadd.f32 %v1234_v19, %v809_v7  ;;  %v804_v33 = vmul.f32 %v420_v16, %v420_v16  ;;  %v1227_v37 = vadd.f32 %v802_v25, %v801_v20  ;;  %v441_v7 = vld [vmem:[%s3647_s5 + $0x8a0] sm:$0xff]  ;;  %v443_v13 = vld [vmem:[%s3647_s5 + $0x8b0] sm:$0xff]  ;;  %v452_v19 = vld [vmem:[%s3647_s5 + $0x8f8] sm:$0xff] }
  0xb0   : > { %v1224_v35 = vadd.f32 %v1223_v22, %v800_v58  ;;  %v1216_v36 = vadd.f32 %v1215_v23, %v793_v11  ;;  %v819_v38 = vmul.f32 %v435_v21, %v435_v21  ;;  %v805_v42 = vmul.f32 %v421_v24, %v421_v24  ;;  %v448_v58 = vld [vmem:[%s3647_s5 + $0x8d8] sm:$0xff]  ;;  %v459_v25 = vld [vmem:[%s3647_s5 + $0x930] sm:$0xff] }
  0xb1   : > { %v1236_v41 = vadd.f32 %v1235_v31, %v810_v18  ;;  %v820_v45 = vmul.f32 %v436_v27, %v436_v27  ;;  %v821_v46 = vmul.f32 %v437_v28, %v437_v28  ;;  %v806_v49 = vmul.f32 %v422_v32, %v422_v32  ;;  %v451_v18 = vld [vmem:[%s3647_s5 + $0x8f0] sm:$0xff]  ;;  %v444_v20 = vld [vmem:[%s3647_s5 + $0x8b8] sm:$0xff]  ;;  %v445_v28 = vld [vmem:[%s3647_s5 + $0x8c0] sm:$0xff] }
  0xb2   : > { %1225 = vadd.xlane.f32.xlu1 %v1224_v35  ;;  %v1217_v48 = vadd.f32 %v1216_v36, %v794_v12  ;;  %v1228_v50 = vadd.f32 %v1227_v37, %v803_v26  ;;  %v822_v51 = vmul.f32 %v438_v34, %v438_v34  ;;  %v813_v55 = vmul.f32 %v429_v39, %v429_v39  ;;  %v442_v12 = vld [vmem:[%s3647_s5 + $0x8a8] sm:$0xff]  ;;  %v460_v31 = vld [vmem:[%s3647_s5 + $0x938] sm:$0xff]  ;;  %v461_v32 = vld [vmem:[%s3647_s5 + $0x940] sm:$0xff] }
  0xb3   : > { %v1237_v53 = vadd.f32 %v1236_v41, %v811_v29  ;;  %v1248_v54 = vadd.f32 %v820_v45, %v819_v38  ;;  %v814_v56 = vmul.f32 %v430_v40, %v430_v40  ;;  %v823_v61 = vmul.f32 %v439_v43, %v439_v43  ;;  %v446_v36 = vld [vmem:[%s3647_s5 + $0x8c8] sm:$0xff]  ;;  %v453_v43 = vld [vmem:[%s3647_s5 + $0x900] sm:$0xff] }
  0xb4   : > { %1218 = vadd.xlane.f32.xlu0 %v1217_v48  ;;  %v1229_v60 = vadd.f32 %v1228_v50, %v804_v33  ;;  %v824_v62 = vmul.f32 %v440_v44, %v440_v44  ;;  %v815_v1 = vmul.f32 %v431_v47, %v431_v47  ;;  %v816_v4 = vmul.f32 %v432_v52, %v432_v52  ;;  %v462_v38 = vld [vmem:[%s3647_s5 + $0x948] sm:$0xff]  ;;  %v463_v47 = vld [vmem:[%s3647_s5 + $0x950] sm:$0xff]  ;;  %v464_v48 = vld [vmem:[%s3647_s5 + $0x958] sm:$0xff] }
  0xb5   : > { %v1238_v2 = vadd.f32 %v1237_v53, %v812_v30  ;;  %v1249_v3 = vadd.f32 %v1248_v54, %v821_v46  ;;  %v1241_v5 = vadd.f32 %v814_v56, %v813_v55  ;;  %v831_v9 = vmul.f32 %v447_v57, %v447_v57  ;;  %v454_v44 = vld [vmem:[%s3647_s5 + $0x908] sm:$0xff]  ;;  %v456_v56 = vld [vmem:[%s3647_s5 + $0x918] sm:$0xff] }
  0xb6   : > { %v1230_v8 = vadd.f32 %v1229_v60, %v805_v42  ;;  %v832_v10 = vmul.f32 %v448_v58, %v448_v58  ;;  %v833_v11 = vmul.f32 %v449_v59, %v449_v59  ;;  %v817_v15 = vmul.f32 %v433_v63, %v433_v63  ;;  %v473_v63 = vld [vmem:[%s3647_s5 + $0x9a0] sm:$0xff] }
  0xb7   : > { %1239 = vadd.xlane.f32.xlu1 %v1238_v2  ;;  %v1250_v14 = vadd.f32 %v1249_v3, %v822_v51  ;;  %v818_v16 = vmul.f32 %v434_v0, %v434_v0  ;;  %v1242_v17 = vadd.f32 %v1241_v5, %v815_v1  ;;  %v834_v22 = vmul.f32 %v450_v6, %v450_v6  ;;  %v455_v51 = vld [vmem:[%s3647_s5 + $0x910] sm:$0xff]  ;;  %v457_v3 = vld [vmem:[%s3647_s5 + $0x920] sm:$0xff] }
  0xb8   : > { %v1231_v21 = vadd.f32 %v1230_v8, %v806_v49  ;;  %v1262_v23 = vadd.f32 %v832_v10, %v831_v9  ;;  %v825_v24 = vmul.f32 %v441_v7, %v441_v7  ;;  %v826_v29 = vmul.f32 %v442_v12, %v442_v12  ;;  %v474_v10 = vld [vmem:[%s3647_s5 + $0x9a8] sm:$0xff] }
  0xb9   : > { %v1251_v26 = vadd.f32 %v1250_v14, %v823_v61  ;;  %v1243_v27 = vadd.f32 %v1242_v17, %v816_v4  ;;  %v827_v30 = vmul.f32 %v443_v13, %v443_v13  ;;  %v835_v33 = vmul.f32 %v451_v18, %v451_v18  ;;  %v471_v61 = vld [vmem:[%s3647_s5 + $0x990] sm:$0xff]  ;;  %v458_v4 = vld [vmem:[%s3647_s5 + $0x928] sm:$0xff] }
  0xba   : > { %1232 = vadd.xlane.f32.xlu0 %v1231_v21  ;;  %v836_v34 = vmul.f32 %v452_v19, %v452_v19  ;;  %v1263_v35 = vadd.f32 %v1262_v23, %v833_v11  ;;  %v828_v37 = vmul.f32 %v444_v20, %v444_v20  ;;  %v1255_v41 = vadd.f32 %v826_v29, %v825_v24  ;;  %v465_v11 = vld [vmem:[%s3647_s5 + $0x960] sm:$0xff]  ;;  %v467_v17 = vld [vmem:[%s3647_s5 + $0x970] sm:$0xff]  ;;  %v476_v23 = vld [vmem:[%s3647_s5 + $0x9b8] sm:$0xff] }
  0xbb   : > { %v1252_v39 = vadd.f32 %v1251_v26, %v824_v62  ;;  %v1244_v40 = vadd.f32 %v1243_v27, %v817_v15  ;;  %v843_v42 = vmul.f32 %v459_v25, %v459_v25  ;;  %v829_v46 = vmul.f32 %v445_v28, %v445_v28  ;;  %v472_v62 = vld [vmem:[%s3647_s5 + $0x998] sm:$0xff]  ;;  %v483_v29 = vld [vmem:[%s3647_s5 + $0x9f0] sm:$0xff] }
  0xbc   : > { %v1264_v45 = vadd.f32 %v1263_v35, %v834_v22  ;;  %v844_v49 = vmul.f32 %v460_v31, %v460_v31  ;;  %v845_v50 = vmul.f32 %v461_v32, %v461_v32  ;;  %v830_v53 = vmul.f32 %v446_v36, %v446_v36  ;;  %v475_v22 = vld [vmem:[%s3647_s5 + $0x9b0] sm:$0xff]  ;;  %v468_v24 = vld [vmem:[%s3647_s5 + $0x978] sm:$0xff]  ;;  %v469_v32 = vld [vmem:[%s3647_s5 + $0x980] sm:$0xff] }
  0xbd   : > { %1253 = vadd.xlane.f32.xlu1 %v1252_v39  ;;  %v1245_v52 = vadd.f32 %v1244_v40, %v818_v16  ;;  %v1256_v54 = vadd.f32 %v1255_v41, %v827_v30  ;;  %v846_v55 = vmul.f32 %v462_v38, %v462_v38  ;;  %v837_v59 = vmul.f32 %v453_v43, %v453_v43  ;;  %v466_v16 = vld [vmem:[%s3647_s5 + $0x968] sm:$0xff]  ;;  %v484_v35 = vld [vmem:[%s3647_s5 + $0x9f8] sm:$0xff]  ;;  %v485_v36 = vld [vmem:[%s3647_s5 + $0xa00] sm:$0xff] }
  0xbe   : > { %v1265_v57 = vadd.f32 %v1264_v45, %v835_v33  ;;  %v1276_v58 = vadd.f32 %v844_v49, %v843_v42  ;;  %v838_v60 = vmul.f32 %v454_v44, %v454_v44  ;;  %v847_v1 = vmul.f32 %v463_v47, %v463_v47  ;;  %v470_v40 = vld [vmem:[%s3647_s5 + $0x988] sm:$0xff]  ;;  %v477_v47 = vld [vmem:[%s3647_s5 + $0x9c0] sm:$0xff] }
  0xbf   : > { %1246 = vadd.xlane.f32.xlu0 %v1245_v52  ;;  %v1257_v0 = vadd.f32 %v1256_v54, %v828_v37  ;;  %v848_v2 = vmul.f32 %v464_v48, %v464_v48  ;;  %v839_v5 = vmul.f32 %v455_v51, %v455_v51  ;;  %v840_v8 = vmul.f32 %v456_v56, %v456_v56  ;;  %v486_v42 = vld [vmem:[%s3647_s5 + $0xa08] sm:$0xff]  ;;  %v487_v51 = vld [vmem:[%s3647_s5 + $0xa10] sm:$0xff]  ;;  %v488_v52 = vld [vmem:[%s3647_s5 + $0xa18] sm:$0xff] }
  0xc0   : > { %v1266_v6 = vadd.f32 %v1265_v57, %v836_v34  ;;  %v1277_v7 = vadd.f32 %v1276_v58, %v845_v50  ;;  %v1269_v9 = vadd.f32 %v838_v60, %v837_v59  ;;  %v855_v13 = vmul.f32 %v471_v61, %v471_v61  ;;  %v478_v48 = vld [vmem:[%s3647_s5 + $0x9c8] sm:$0xff]  ;;  %v480_v60 = vld [vmem:[%s3647_s5 + $0x9d8] sm:$0xff] }
  0xc1   : > { %v1258_v12 = vadd.f32 %v1257_v0, %v829_v46  ;;  %v856_v14 = vmul.f32 %v472_v62, %v472_v62  ;;  %v857_v15 = vmul.f32 %v473_v63, %v473_v63  ;;  %v841_v19 = vmul.f32 %v457_v3, %v457_v3  ;;  %v497_v3 = vld [vmem:[%s3647_s5 + $0xa60] sm:$0xff] }
  0xc2   : > { %1267 = vadd.xlane.f32.xlu1 %v1266_v6  ;;  %v1278_v18 = vadd.f32 %v1277_v7, %v846_v55  ;;  %v842_v20 = vmul.f32 %v458_v4, %v458_v4  ;;  %v1270_v21 = vadd.f32 %v1269_v9, %v839_v5  ;;  %v858_v26 = vmul.f32 %v474_v10, %v474_v10  ;;  %v479_v55 = vld [vmem:[%s3647_s5 + $0x9d0] sm:$0xff]  ;;  %v481_v7 = vld [vmem:[%s3647_s5 + $0x9e0] sm:$0xff] }
  0xc3   : > { %v1259_v25 = vadd.f32 %v1258_v12, %v830_v53  ;;  %v1290_v27 = vadd.f32 %v856_v14, %v855_v13  ;;  %v849_v28 = vmul.f32 %v465_v11, %v465_v11  ;;  %v850_v33 = vmul.f32 %v466_v16, %v466_v16  ;;  %v498_v14 = vld [vmem:[%s3647_s5 + $0xa68] sm:$0xff] }
  0xc4   : > { %v1279_v30 = vadd.f32 %v1278_v18, %v847_v1  ;;  %v1271_v31 = vadd.f32 %v1270_v21, %v840_v8  ;;  %v851_v34 = vmul.f32 %v467_v17, %v467_v17  ;;  %v859_v37 = vmul.f32 %v475_v22, %v475_v22  ;;  %v495_v1 = vld [vmem:[%s3647_s5 + $0xa50] sm:$0xff]  ;;  %v482_v8 = vld [vmem:[%s3647_s5 + $0x9e8] sm:$0xff] }
  0xc5   : > { %1260 = vadd.xlane.f32.xlu0 %v1259_v25  ;;  %v860_v38 = vmul.f32 %v476_v23, %v476_v23  ;;  %v1291_v39 = vadd.f32 %v1290_v27, %v857_v15  ;;  %v852_v41 = vmul.f32 %v468_v24, %v468_v24  ;;  %v1283_v45 = vadd.f32 %v850_v33, %v849_v28  ;;  %v489_v15 = vld [vmem:[%s3647_s5 + $0xa20] sm:$0xff]  ;;  %v491_v21 = vld [vmem:[%s3647_s5 + $0xa30] sm:$0xff]  ;;  %v500_v27 = vld [vmem:[%s3647_s5 + $0xa78] sm:$0xff] }
  0xc6   : > { %v1280_v43 = vadd.f32 %v1279_v30, %v848_v2  ;;  %v1272_v44 = vadd.f32 %v1271_v31, %v841_v19  ;;  %v867_v46 = vmul.f32 %v483_v29, %v483_v29  ;;  %v853_v50 = vmul.f32 %v469_v32, %v469_v32  ;;  %v496_v2 = vld [vmem:[%s3647_s5 + $0xa58] sm:$0xff]  ;;  %v507_v33 = vld [vmem:[%s3647_s5 + $0xab0] sm:$0xff] }
  0xc7   : > { %v1292_v49 = vadd.f32 %v1291_v39, %v858_v26  ;;  %v868_v53 = vmul.f32 %v484_v35, %v484_v35  ;;  %v869_v54 = vmul.f32 %v485_v36, %v485_v36  ;;  %v854_v57 = vmul.f32 %v470_v40, %v470_v40  ;;  %v499_v26 = vld [vmem:[%s3647_s5 + $0xa70] sm:$0xff]  ;;  %v492_v28 = vld [vmem:[%s3647_s5 + $0xa38] sm:$0xff]  ;;  %v493_v36 = vld [vmem:[%s3647_s5 + $0xa40] sm:$0xff] }
  0xc8   : > { %1281 = vadd.xlane.f32.xlu1 %v1280_v43  ;;  %v1273_v56 = vadd.f32 %v1272_v44, %v842_v20  ;;  %v1284_v58 = vadd.f32 %v1283_v45, %v851_v34  ;;  %v870_v59 = vmul.f32 %v486_v42, %v486_v42  ;;  %v861_v63 = vmul.f32 %v477_v47, %v477_v47  ;;  %v490_v20 = vld [vmem:[%s3647_s5 + $0xa28] sm:$0xff]  ;;  %v508_v39 = vld [vmem:[%s3647_s5 + $0xab8] sm:$0xff]  ;;  %v509_v40 = vld [vmem:[%s3647_s5 + $0xac0] sm:$0xff] }
  0xc9   : > { %v1293_v61 = vadd.f32 %v1292_v49, %v859_v37  ;;  %v1304_v62 = vadd.f32 %v868_v53, %v867_v46  ;;  %v862_v0 = vmul.f32 %v478_v48, %v478_v48  ;;  %v871_v5 = vmul.f32 %v487_v51, %v487_v51  ;;  %v494_v44 = vld [vmem:[%s3647_s5 + $0xa48] sm:$0xff]  ;;  %v501_v51 = vld [vmem:[%s3647_s5 + $0xa80] sm:$0xff] }
  0xca   : > { %1274 = vadd.xlane.f32.xlu0 %v1273_v56  ;;  %v1285_v4 = vadd.f32 %v1284_v58, %v852_v41  ;;  %v872_v6 = vmul.f32 %v488_v52, %v488_v52  ;;  %v863_v9 = vmul.f32 %v479_v55, %v479_v55  ;;  %v864_v12 = vmul.f32 %v480_v60, %v480_v60  ;;  %v510_v46 = vld [vmem:[%s3647_s5 + $0xac8] sm:$0xff]  ;;  %v511_v55 = vld [vmem:[%s3647_s5 + $0xad0] sm:$0xff]  ;;  %v512_v56 = vld [vmem:[%s3647_s5 + $0xad8] sm:$0xff] }
  0xcb   : > { %v1294_v10 = vadd.f32 %v1293_v61, %v860_v38  ;;  %v1305_v11 = vadd.f32 %v1304_v62, %v869_v54  ;;  %v1297_v13 = vadd.f32 %v862_v0, %v861_v63  ;;  %v879_v17 = vmul.f32 %v495_v1, %v495_v1  ;;  %v502_v52 = vld [vmem:[%s3647_s5 + $0xa88] sm:$0xff]  ;;  %v504_v1 = vld [vmem:[%s3647_s5 + $0xa98] sm:$0xff] }
  0xcc   : > { %v1286_v16 = vadd.f32 %v1285_v4, %v853_v50  ;;  %v880_v18 = vmul.f32 %v496_v2, %v496_v2  ;;  %v881_v19 = vmul.f32 %v497_v3, %v497_v3  ;;  %v865_v23 = vmul.f32 %v481_v7, %v481_v7  ;;  %v520_v7 = vld [vmem:[%s3647_s5 + $0xb18] sm:$0xff] }
  0xcd   : > { %1295 = vadd.xlane.f32.xlu1 %v1294_v10  ;;  %v1306_v22 = vadd.f32 %v1305_v11, %v870_v59  ;;  %v866_v24 = vmul.f32 %v482_v8, %v482_v8  ;;  %v1298_v25 = vadd.f32 %v1297_v13, %v863_v9  ;;  %v882_v30 = vmul.f32 %v498_v14, %v498_v14  ;;  %v503_v59 = vld [vmem:[%s3647_s5 + $0xa90] sm:$0xff]  ;;  %v521_v8 = vld [vmem:[%s3647_s5 + $0xb20] sm:$0xff]  ;;  %v506_v14 = vld [vmem:[%s3647_s5 + $0xaa8] sm:$0xff] }
  0xce   : > { %v1287_v29 = vadd.f32 %v1286_v16, %v854_v57  ;;  %v1318_v31 = vadd.f32 %v880_v18, %v879_v17  ;;  %v873_v32 = vmul.f32 %v489_v15, %v489_v15  ;;  %v874_v37 = vmul.f32 %v490_v20, %v490_v20  ;;  %v505_v13 = vld [vmem:[%s3647_s5 + $0xaa0] sm:$0xff]  ;;  %v522_v20 = vld [vmem:[%s3647_s5 + $0xb28] sm:$0xff] }
  0xcf   : > { %v1307_v34 = vadd.f32 %v1306_v22, %v871_v5  ;;  %v1299_v35 = vadd.f32 %v1298_v25, %v864_v12  ;;  %v875_v38 = vmul.f32 %v491_v21, %v491_v21  ;;  %v883_v41 = vmul.f32 %v499_v26, %v499_v26  ;;  %v513_v21 = vld [vmem:[%s3647_s5 + $0xae0] sm:$0xff] }
  0xd0   : > { %1288 = vadd.xlane.f32.xlu0 %v1287_v29  ;;  %v884_v42 = vmul.f32 %v500_v27, %v500_v27  ;;  %v1319_v43 = vadd.f32 %v1318_v31, %v881_v19  ;;  %v876_v45 = vmul.f32 %v492_v28, %v492_v28  ;;  %v1311_v49 = vadd.f32 %v874_v37, %v873_v32  ;;  %v514_v27 = vld [vmem:[%s3647_s5 + $0xae8] sm:$0xff]  ;;  %v515_v28 = vld [vmem:[%s3647_s5 + $0xaf0] sm:$0xff] }
  0xd1   : > { %v1308_v47 = vadd.f32 %v1307_v34, %v872_v6  ;;  %v1300_v48 = vadd.f32 %v1299_v35, %v865_v23  ;;  %v891_v50 = vmul.f32 %v507_v33, %v507_v33  ;;  %v877_v54 = vmul.f32 %v493_v36, %v493_v36  ;;  %v519_v6 = vld [vmem:[%s3647_s5 + $0xb10] sm:$0xff]  ;;  %v524_v34 = vld [vmem:[%s3647_s5 + $0xb38] sm:$0xff] }
  0xd2   : > { %v1320_v53 = vadd.f32 %v1319_v43, %v882_v30  ;;  %v892_v57 = vmul.f32 %v508_v39, %v508_v39  ;;  %v893_v58 = vmul.f32 %v509_v40, %v509_v40  ;;  %v3998_v60 = vpop.xlane.xlu1 %952  ;;  %v878_v62 = vmul.f32 %v494_v44, %v494_v44  ;;  %v523_v33 = vld [vmem:[%s3647_s5 + $0xb30] sm:$0xff]  ;;  %v516_v35 = vld [vmem:[%s3647_s5 + $0xaf8] sm:$0xff]  ;;  %v517_v44 = vld [vmem:[%s3647_s5 + $0xb00] sm:$0xff] }
  0xd3   : > { %1309 = vadd.xlane.f32.xlu1 %v1308_v47  ;;  %v1301_v61 = vadd.f32 %v1300_v48, %v866_v24  ;;  %v1312_v63 = vadd.f32 %v1311_v49, %v875_v38  ;;  %v894_v0 = vmul.f32 %v510_v46, %v510_v46  ;;  %v885_v4 = vmul.f32 %v501_v51, %v501_v51  ;;  %v531_v40 = vld [vmem:[%s3647_s5 + $0xb70] sm:$0xff]  ;;  %v532_v47 = vld [vmem:[%s3647_s5 + $0xb78] sm:$0xff]  ;;  %v533_v48 = vld [vmem:[%s3647_s5 + $0xb80] sm:$0xff] }
  0xd4   : > { %v1321_v2 = vadd.f32 %v1320_v53, %v883_v41  ;;  %v1332_v3 = vadd.f32 %v892_v57, %v891_v50  ;;  %v886_v5 = vmul.f32 %v502_v52, %v502_v52  ;;  %v895_v11 = vmul.f32 %v511_v55, %v511_v55  ;;  %v518_v52 = vld [vmem:[%s3647_s5 + $0xb08] sm:$0xff] }
  0xd5   : > { %v4004_v9 = vpop.xlane.xlu0 %938  ;;  %1302 = vadd.xlane.f32.xlu0 %v1301_v61  ;;  %v1313_v10 = vadd.f32 %v1312_v63, %v876_v45  ;;  %v896_v12 = vmul.f32 %v512_v56, %v512_v56  ;;  %v887_v15 = vmul.f32 %v503_v59, %v503_v59  ;;  %v888_v18 = vmul.f32 %v504_v1, %v504_v1  ;;  %v525_v61 = vld [vmem:[%s3647_s5 + $0xb40] sm:$0xff]  ;;  %v535_v1 = vld [vmem:[%s3647_s5 + $0xb90] sm:$0xff] }
  0xd6   : > { %v1322_v16 = vadd.f32 %v1321_v2, %v884_v42  ;;  %v1333_v17 = vadd.f32 %v1332_v3, %v893_v58  ;;  %v1325_v19 = vadd.f32 %v886_v5, %v885_v4  ;;  %v4010_v22 = vpop.xlane.xlu1 %959  ;;  %v903_v24 = vmul.f32 %v519_v6, %v519_v6  ;;  %v536_v2 = vld [vmem:[%s3647_s5 + $0xb98] sm:$0xff]  ;;  %v527_v5 = vld [vmem:[%s3647_s5 + $0xb50] sm:$0xff] }
  0xd7   : > { %v1314_v23 = vadd.f32 %v1313_v10, %v877_v54  ;;  %v904_v25 = vmul.f32 %v520_v7, %v520_v7  ;;  %v905_v26 = vmul.f32 %v521_v8, %v521_v8  ;;  %v889_v30 = vmul.f32 %v505_v13, %v505_v13  ;;  %v534_v54 = vld [vmem:[%s3647_s5 + $0xb88] sm:$0xff] }
  0xd8   : > { %1323 = vadd.xlane.f32.xlu1 %v1322_v16  ;;  %v1334_v29 = vadd.f32 %v1333_v17, %v894_v0  ;;  %v890_v31 = vmul.f32 %v506_v14, %v506_v14  ;;  %v1326_v32 = vadd.f32 %v1325_v19, %v887_v15  ;;  %v906_v37 = vmul.f32 %v522_v20, %v522_v20  ;;  %v543_v17 = vld [vmem:[%s3647_s5 + $0xbd0] sm:$0xff]  ;;  %v545_v19 = vld [vmem:[%s3647_s5 + $0xbe0] sm:$0xff] }
  0xd9   : > { %v1315_v36 = vadd.f32 %v1314_v23, %v878_v62  ;;  %v1346_v38 = vadd.f32 %v904_v25, %v903_v24  ;;  %v897_v39 = vmul.f32 %v513_v21, %v513_v21  ;;  %v4018_v41 = vpop.xlane.xlu0 %945  ;;  %v898_v45 = vmul.f32 %v514_v27, %v514_v27  ;;  %v526_v62 = vld [vmem:[%s3647_s5 + $0xb48] sm:$0xff]  ;;  %v529_v24 = vld [vmem:[%s3647_s5 + $0xb60] sm:$0xff] }
  0xda   : > { %v1335_v42 = vadd.f32 %v1334_v29, %v895_v11  ;;  %v1327_v43 = vadd.f32 %v1326_v32, %v888_v18  ;;  %v899_v46 = vmul.f32 %v515_v28, %v515_v28  ;;  %v907_v49 = vmul.f32 %v523_v33, %v523_v33  ;;  %v528_v11 = vld [vmem:[%s3647_s5 + $0xb58] sm:$0xff]  ;;  %v530_v25 = vld [vmem:[%s3647_s5 + $0xb68] sm:$0xff]  ;;  %v537_v32 = vld [vmem:[%s3647_s5 + $0xba0] sm:$0xff] }
  0xdb   : > { %1316 = vadd.xlane.f32.xlu0 %v1315_v36  ;;  %v908_v50 = vmul.f32 %v524_v34, %v524_v34  ;;  %v1347_v51 = vadd.f32 %v1346_v38, %v905_v26  ;;  %v900_v53 = vmul.f32 %v516_v35, %v516_v35  ;;  %v4025_v55 = vpop.xlane.xlu1 %973  ;;  %v1339_v58 = vadd.f32 %v898_v45, %v897_v39  ;;  %v544_v18 = vld [vmem:[%s3647_s5 + $0xbd8] sm:$0xff]  ;;  %v538_v38 = vld [vmem:[%s3647_s5 + $0xba8] sm:$0xff]  ;;  %v539_v39 = vld [vmem:[%s3647_s5 + $0xbb0] sm:$0xff] }
  0xdc   : > { %v1336_v56 = vadd.f32 %v1335_v42, %v896_v12  ;;  %v1328_v57 = vadd.f32 %v1327_v43, %v889_v30  ;;  %v915_v59 = vmul.f32 %v531_v40, %v531_v40  ;;  %v901_v0 = vmul.f32 %v517_v44, %v517_v44  ;;  %v547_v45 = vld [vmem:[%s3647_s5 + $0xbf0] sm:$0xff] }
  0xdd   : > { %v1348_v63 = vadd.f32 %v1347_v51, %v906_v37  ;;  %v916_v3 = vmul.f32 %v532_v47, %v532_v47  ;;  %v917_v4 = vmul.f32 %v533_v48, %v533_v48  ;;  %v902_v7 = vmul.f32 %v518_v52, %v518_v52  ;;  %v540_v47 = vld [vmem:[%s3647_s5 + $0xbb8] sm:$0xff] }
  0xde   : > { %1337 = vadd.xlane.f32.xlu1 %v1336_v56  ;;  %v1329_v6 = vadd.f32 %v1328_v57, %v890_v31  ;;  %v1340_v8 = vadd.f32 %v1339_v58, %v899_v46  ;;  %v918_v10 = vmul.f32 %v534_v54, %v534_v54  ;;  %v4033_v12 = vpop.xlane.xlu0 %966  ;;  %v909_v15 = vmul.f32 %v525_v61, %v525_v61  ;;  %v546_v31 = vld [vmem:[%s3647_s5 + $0xbe8] sm:$0xff]  ;;  %v548_v46 = vld [vmem:[%s3647_s5 + $0xbf8] sm:$0xff]  ;;  %v541_v56 = vld [vmem:[%s3647_s5 + $0xbc0] sm:$0xff] }
  0xdf   : > { %v1349_v13 = vadd.f32 %v1348_v63, %v907_v49  ;;  %v1360_v14 = vadd.f32 %v916_v3, %v915_v59  ;;  %v910_v16 = vmul.f32 %v526_v62, %v526_v62  ;;  %v919_v21 = vmul.f32 %v535_v1, %v535_v1 }
  0xe0   : > { %1330 = vadd.xlane.f32.xlu0 %v1329_v6  ;;  %v1341_v20 = vadd.f32 %v1340_v8, %v900_v53  ;;  %v920_v23 = vmul.f32 %v536_v2, %v536_v2  ;;  %v911_v26 = vmul.f32 %v527_v5, %v527_v5  ;;  %v912_v29 = vmul.f32 %v528_v11, %v528_v11  ;;  %v542_v6 = vld [vmem:[%s3647_s5 + $0xbc8] sm:$0xff] }
  0xe1   : > { %v1350_v27 = vadd.f32 %v1349_v13, %v908_v50  ;;  %v1361_v28 = vadd.f32 %v1360_v14, %v917_v4  ;;  %v1353_v30 = vadd.f32 %v910_v16, %v909_v15  ;;  %v4042_v33 = vpop.xlane.xlu1 %987  ;;  %v927_v35 = vmul.f32 %v543_v17, %v543_v17 }
  0xe2   : > { %v1342_v34 = vadd.f32 %v1341_v20, %v901_v0  ;;  %v928_v36 = vmul.f32 %v544_v18, %v544_v18  ;;  %v929_v37 = vmul.f32 %v545_v19, %v545_v19  ;;  %v913_v42 = vmul.f32 %v529_v24, %v529_v24 }
  0xe3   : > { %1351 = vadd.xlane.f32.xlu1 %v1350_v27  ;;  %v1362_v40 = vadd.f32 %v1361_v28, %v918_v10  ;;  %v914_v43 = vmul.f32 %v530_v25, %v530_v25  ;;  %v1354_v44 = vadd.f32 %v1353_v30, %v911_v26  ;;  %v930_v49 = vmul.f32 %v546_v31, %v546_v31 }
  0xe4   : > { %v1343_v48 = vadd.f32 %v1342_v34, %v902_v7  ;;  %v1374_v50 = vadd.f32 %v928_v36, %v927_v35  ;;  %v921_v51 = vmul.f32 %v537_v32, %v537_v32  ;;  %v981_v52 = vpop.xlane.xlu0 %980  ;;  %v922_v57 = vmul.f32 %v538_v38, %v538_v38 }
  0xe5   : > { %v1363_v53 = vadd.f32 %v1362_v40, %v919_v21  ;;  %v1355_v54 = vadd.f32 %v1354_v44, %v912_v29  ;;  %v923_v58 = vmul.f32 %v539_v39, %v539_v39  ;;  %v931_v59 = vmul.f32 %v547_v45, %v547_v45 }
  0xe6   : > { %1344 = vadd.xlane.f32.xlu0 %v1343_v48  ;;  %v932_v61 = vmul.f32 %v548_v46, %v548_v46  ;;  %v1375_v62 = vadd.f32 %v1374_v50, %v929_v37  ;;  %v924_v63 = vmul.f32 %v540_v47, %v540_v47  ;;  %v1367_v2 = vadd.f32 %v922_v57, %v921_v51 }
  0xe7   : > { %v1364_v0 = vadd.f32 %v1363_v53, %v920_v23  ;;  %v1356_v1 = vadd.f32 %v1355_v54, %v913_v42  ;;  %v1960_v3 = vlaneseq  ;;  %v1002_v4 = vpop.xlane.xlu1 %1001  ;;  %v925_v7 = vmul.f32 %v541_v56, %v541_v56 }
  0xe8   : > { %v1376_v5 = vadd.f32 %v1375_v62, %v930_v49  ;;  %v1384_v8 = vmul.f32 0.0013020834, %v3998_v60  ;;  %v1382_v10 = vmul.f32 0.0013020834, %v4004_v9  ;;  %v1368_v13 = vadd.f32 %v1367_v2, %v923_v58 }
  0xe9   : > { %1365 = vadd.xlane.f32.xlu1 %v1364_v0  ;;  %v1357_v11 = vadd.f32 %v1356_v1, %v914_v43  ;;  %v1961_v14 = vshrl.u32 %v1960_v3, 7  ;;  %v1385_v15 = vmul.f32 0.0013020834, %v4010_v22  ;;  %v995_v16 = vpop.xlane.xlu0 %994  ;;  %v926_v19 = vmul.f32 %v542_v6, %v542_v6  ;;  %v3040_v3 = vld [vmem:[%s3647_s5 + $0x60] sm:$0xff] }
  0xea   : > { %v1377_v17 = vadd.f32 %v1376_v5, %v931_v59  ;;  %v1448_v18 = vadd.f32 1e-05, %v1384_v8  ;;  %v1369_v20 = vadd.f32 %v1368_v13, %v924_v63  ;;  %v1446_v21 = vadd.f32 1e-05, %v1382_v10  ;;  %v3041_v5 = vld [vmem:[%s3647_s5 + $0x68] sm:$0xff]  ;;  %v3043_v10 = vld [vmem:[%s3647_s5 + $0x78] sm:$0xff] }
  0xeb   : > { %1358 = vadd.xlane.f32.xlu0 %v1357_v11  ;;  %v1383_v23 = vmul.f32 0.0013020834, %v4018_v41  ;;  %v1962_v26 = vsub.s32 0, %v1961_v14  ;;  %v1966_v9 = vsub.s32 1, %v1961_v14  ;;  %v1449_v27 = vadd.f32 1e-05, %v1385_v15 }
  0xec   : > { %v1378_v24 = vadd.f32 %v1377_v17, %v932_v61  ;;  %v1016_v25 = vpop.xlane.xlu1 %1015  ;;  %v1370_v60 = vadd.f32 %v1369_v20, %v925_v7  ;;  %v1970_v28 = vsub.s32 2, %v1961_v14  ;;  %v1974_v29 = vsub.s32 3, %v1961_v14  ;;  %v1958_v41 = vld [vmem:[%s5846_s1] sm:$0x3f]  ;;  %v3042_v7 = vld [vmem:[%s3647_s5 + $0x70] sm:$0xff]  ;;  %v3045_v15 = vld [vmem:[%s3647_s5 + $0x88] sm:$0xff] }
  0xed   : > { %v1978_v30 = vsub.s32 4, %v1961_v14  ;;  %2912 = vrsqrt.f32 %v1448_v18  ;;  %v1447_v31 = vadd.f32 1e-05, %v1383_v23  ;;  %v1387_v32 = vmul.f32 0.0013020834, %v4025_v55  ;;  %v3044_v13 = vld [vmem:[%s3647_s5 + $0x80] sm:$0xff] }
  0xee   : > { %1379 = vadd.xlane.f32.xlu1 %v1378_v24  ;;  %v1371_v22 = vadd.f32 %v1370_v60, %v926_v19  ;;  %2914 = vrsqrt.f32 %v1446_v21  ;;  %v1386_v35 = vmul.f32 0.0013020834, %v4033_v12  ;;  %v1389_v36 = vmul.f32 0.0013020834, %v4042_v33  ;;  %v3046_v17 = vld [vmem:[%s3647_s5] sm:$0xff]  ;;  %v3047_v19 = vld [vmem:[%s3647_s5 + $0x8] sm:$0xff] }
  0xef   : > { %v1009_v34 = vpop.xlane.xlu0 %1008  ;;  %v1388_v37 = vmul.f32 0.0013020834, %v981_v52  ;;  %2916 = vrsqrt.f32 %v1449_v27  ;;  %v1451_v38 = vadd.f32 1e-05, %v1387_v32  ;;  %v1391_v39 = vmul.f32 0.0013020834, %v1002_v4 }
  0xf0   : > { %1372 = vadd.xlane.f32.xlu0 %v1371_v22  ;;  %v1390_v40 = vmul.f32 0.0013020834, %v995_v16  ;;  %2918 = vrsqrt.f32 %v1447_v31  ;;  %v1450_v42 = vadd.f32 1e-05, %v1386_v35  ;;  %v1453_v43 = vadd.f32 1e-05, %v1389_v36 }
  0xf1   : > { %v1452_v44 = vadd.f32 1e-05, %v1388_v37  ;;  %v1982_v45 = vsub.s32 5, %v1961_v14  ;;  %2920 = vrsqrt.f32 %v1451_v38  ;;  %v1455_v46 = vadd.f32 1e-05, %v1391_v39  ;;  %v3049_v22 = vld [vmem:[%s3647_s5 + $0x18] sm:$0xff] }
  0xf2   : > { %v1030_v55 = vpop.xlane.xlu1 %1029  ;;  %v1393_v47 = vmul.f32 0.0013020834, %v1016_v25  ;;  %2922 = vrsqrt.f32 %v1450_v42  ;;  %v1454_v48 = vadd.f32 1e-05, %v1390_v40  ;;  %v1392_v12 = vmul.f32 0.0013020834, %v1009_v34 }
  0xf3   : > { %v1395_v49 = vmul.f32 0.0013020834, %v1030_v55  ;;  %v4061_v50 = vrot.slane %v1958_v41, %v1962_v26  ;;  %v4063_v51 = vrot.slane %v1958_v41, %v1966_v9  ;;  %2924 = vrsqrt.f32 %v1453_v43  ;;  %v3050_v34 = vld [vmem:[%s3647_s5 + $0x20] sm:$0xff]  ;;  %v3051_v35 = vld [vmem:[%s3647_s5 + $0x28] sm:$0xff] }
  0xf4   : > { %v1023_v33 = vpop.xlane.xlu0 %1022  ;;  %v4065_v53 = vrot.slane %v1958_v41, %v1970_v28  ;;  %v4067_v54 = vrot.slane %v1958_v41, %v1974_v29  ;;  %v4069_v56 = vrot.slane %v1958_v41, %v1978_v30  ;;  %2926 = vrsqrt.f32 %v1452_v44  ;;  %v3048_v29 = vld [vmem:[%s3647_s5 + $0x10] sm:$0xff] }
  0xf5   : > { %v1394_v52 = vmul.f32 0.0013020834, %v1023_v33  ;;  %v4071_v57 = vrot.slane %v1958_v41, %v1982_v45  ;;  %2928 = vrsqrt.f32 %v1455_v46  ;;  %v4073_v58 = vadd.f32 1e-05, %v1393_v47  ;;  %v3052_v44 = vld [vmem:[%s3647_s5 + $0x90] sm:$0xff]  ;;  %v3053_v45 = vld [vmem:[%s3647_s5 + $0x98] sm:$0xff] }
  0xf6   : > { %v4075_v59 = vadd.f32 1e-05, %v1392_v12  ;;  %2930 = vrsqrt.f32 %v1454_v48  ;;  %v4077_v63 = vadd.f32 1e-05, %v1395_v49  ;;  %v3054_v49 = vld [vmem:[%s3647_s5 + $0xa0] sm:$0xff] }
  0xf7   : > { %v1044_v61 = vpop.xlane.xlu1 %1043  ;;  %v2913_v62 = vpop.eup %2912  ;;  %v4079_v0 = vadd.f32 1e-05, %v1394_v52  ;;  %v3055_v52 = vld [vmem:[%s3647_s5 + $0xa8] sm:$0xff]  ;;  %2932 = vrsqrt.f32 %v4073_v58 }
  0xf8   : > { %v4081_v1 = vmul.f32 0.0013020834, %v1044_v61  ;;  %v2915_v2 = vpop.eup %2914  ;;  %v1586_v4 = vmul.f32 %v3040_v3, %v2913_v62  ;;  %v1587_v6 = vmul.f32 %v3041_v5, %v2913_v62  ;;  %v1588_v8 = vmul.f32 %v3042_v7, %v2913_v62  ;;  %v3056_v3 = vld [vmem:[%s3647_s5 + $0xb0] sm:$0xff]  ;;  %v3057_v5 = vld [vmem:[%s3647_s5 + $0xb8] sm:$0xff] }
  0xf9   : > { %v1589_v11 = vmul.f32 %v3043_v10, %v2913_v62  ;;  %v1590_v14 = vmul.f32 %v3044_v13, %v2913_v62  ;;  %v1591_v16 = vmul.f32 %v3045_v15, %v2913_v62  ;;  %v1574_v18 = vmul.f32 %v3046_v17, %v2915_v2  ;;  %v2917_v23 = vpop.eup %2916 }
  0xfa   : > { %v1575_v20 = vmul.f32 %v3047_v19, %v2915_v2  ;;  %v4091_v21 = vpop.xlane.xlu0 %1036  ;;  %v2002_v24 = vmul.f32 %v4061_v50, %v1586_v4  ;;  %v2003_v25 = vmul.f32 %v4063_v51, %v1587_v6  ;;  %v2004_v60 = vmul.f32 %v4065_v53, %v1588_v8  ;;  %v4097_v9 = vpop.eup %2918 }
  0xfb   : > { %v2005_v26 = vmul.f32 %v4067_v54, %v1589_v11  ;;  %v2006_v27 = vmul.f32 %v4069_v56, %v1590_v14  ;;  %v2007_v28 = vmul.f32 %v4071_v57, %v1591_v16  ;;  %v1576_v30 = vmul.f32 %v3048_v29, %v2915_v2  ;;  %v4103_v32 = vpop.eup %2920  ;;  %v3058_v14 = vld [vmem:[%s3647_s5 + $0x30] sm:$0xff]  ;;  %v3059_v16 = vld [vmem:[%s3647_s5 + $0x38] sm:$0xff] }
  0xfc   : > { %v1577_v31 = vmul.f32 %v3049_v22, %v2915_v2  ;;  %2386 = vst [vmem:[%s4107_s28 + $0x60] sm:$0xff] %v2002_v24  ;;  %2387 = vst [vmem:[%s4107_s28 + $0x68] sm:$0xff] %v2003_v25  ;;  %v1578_v41 = vmul.f32 %v3050_v34, %v2915_v2  ;;  %v1579_v36 = vmul.f32 %v3051_v35, %v2915_v2  ;;  %v4119_v40 = vpop.eup %2922  ;;  %v3061_v25 = vld [vmem:[%s3647_s5 + $0x48] sm:$0xff]  ;;  %v3063_v29 = vld [vmem:[%s3647_s5 + $0x58] sm:$0xff]  ;;  %2934 = vrsqrt.f32 %v4075_v59 }
  0xfd   : > { %2388 = vst [vmem:[%s4107_s28 + $0x70] sm:$0xff] %v2004_v60  ;;  %2389 = vst [vmem:[%s4107_s28 + $0x78] sm:$0xff] %v2005_v26  ;;  %v1990_v37 = vmul.f32 %v4061_v50, %v1574_v18  ;;  %v1991_v38 = vmul.f32 %v4063_v51, %v1575_v20  ;;  %v4117_v39 = vpop.xlane.xlu1 %1057  ;;  %v1992_v42 = vmul.f32 %v4065_v53, %v1576_v30  ;;  %v4127_v47 = vpop.eup %2924  ;;  %v3064_v35 = vld [vmem:[%s3647_s5 + $0xf0] sm:$0xff]  ;;  %2936 = vrsqrt.f32 %v4077_v63 }
  0xfe   : > { %2390 = vst [vmem:[%s4107_s28 + $0x80] sm:$0xff] %v2006_v27  ;;  %2391 = vst [vmem:[%s4107_s28 + $0x88] sm:$0xff] %v2007_v28  ;;  %v1993_v43 = vmul.f32 %v4067_v54, %v1577_v31  ;;  %v1592_v55 = vmul.f32 %v3052_v44, %v2917_v23  ;;  %v1593_v46 = vmul.f32 %v3053_v45, %v2917_v23  ;;  %v4137_v2 = vpop.eup %2926  ;;  %v3062_v27 = vld [vmem:[%s3647_s5 + $0x50] sm:$0xff]  ;;  %v1399_v58 = vmul.f32 0.0013020834, %v4117_v39 }
  0xff   : > { %v1994_v48 = vmul.f32 %v4069_v56, %v1578_v41  ;;  %v1995_v12 = vmul.f32 %v4071_v57, %v1579_v36  ;;  %2374 = vst [vmem:[%s4107_s28] sm:$0xff] %v1990_v37  ;;  %2375 = vst [vmem:[%s4107_s28 + $0x8] sm:$0xff] %v1991_v38  ;;  %v1594_v33 = vmul.f32 %v3054_v49, %v2917_v23  ;;  %v4135_v62 = vpop.xlane.xlu0 %1050  ;;  %v4145_v10 = vpop.eup %2928  ;;  %v3065_v37 = vld [vmem:[%s3647_s5 + $0xf8] sm:$0xff]  ;;  %2938 = vrsqrt.f32 %v4079_v0 }
 0x100   : > { %v1595_v61 = vmul.f32 %v3055_v52, %v2917_v23  ;;  %2376 = vst [vmem:[%s4107_s28 + $0x10] sm:$0xff] %v1992_v42  ;;  %2377 = vst [vmem:[%s4107_s28 + $0x18] sm:$0xff] %v1993_v43  ;;  %v1596_v4 = vmul.f32 %v3056_v3, %v2917_v23  ;;  %v1597_v6 = vmul.f32 %v3057_v5, %v2917_v23  ;;  %v4155_v18 = vpop.eup %2930  ;;  %v3060_v23 = vld [vmem:[%s3647_s5 + $0x40] sm:$0xff]  ;;  %v3069_v49 = vld [vmem:[%s3647_s5 + $0x118] sm:$0xff] }
 0x101   : > { %v2008_v7 = vmul.f32 %v4061_v50, %v1592_v55  ;;  %v2009_v8 = vmul.f32 %v4063_v51, %v1593_v46  ;;  %2378 = vst [vmem:[%s4107_s28 + $0x20] sm:$0xff] %v1994_v48  ;;  %2379 = vst [vmem:[%s4107_s28 + $0x28] sm:$0xff] %v1995_v12  ;;  %v2010_v11 = vmul.f32 %v4065_v53, %v1594_v33  ;;  %v3066_v43 = vld [vmem:[%s3647_s5 + $0x100] sm:$0xff]  ;;  %v3067_v55 = vld [vmem:[%s3647_s5 + $0x108] sm:$0xff] }
 0x102   : > { %v2011_v13 = vmul.f32 %v4067_v54, %v1595_v61  ;;  %v1580_v15 = vmul.f32 %v3058_v14, %v4097_v9  ;;  %v1581_v17 = vmul.f32 %v3059_v16, %v4097_v9  ;;  %v2012_v19 = vmul.f32 %v4069_v56, %v1596_v4  ;;  %v4165_v26 = vpop.xlane.xlu1 %1071  ;;  %v3068_v48 = vld [vmem:[%s3647_s5 + $0x110] sm:$0xff]  ;;  %v3070_v5 = vld [vmem:[%s3647_s5 + $0xc0] sm:$0xff] }
 0x103   : > { %v2013_v20 = vmul.f32 %v4071_v57, %v1597_v6  ;;  %2392 = vst [vmem:[%s4107_s28 + $0x90] sm:$0xff] %v2008_v7  ;;  %2393 = vst [vmem:[%s4107_s28 + $0x98] sm:$0xff] %v2009_v8  ;;  %v1582_v24 = vmul.f32 %v3060_v23, %v4097_v9  ;;  %v1583_v60 = vmul.f32 %v3061_v25, %v4097_v9  ;;  %v3071_v7 = vld [vmem:[%s3647_s5 + $0xc8] sm:$0xff] }
 0x104   : > { %2394 = vst [vmem:[%s4107_s28 + $0xa0] sm:$0xff] %v2010_v11  ;;  %2395 = vst [vmem:[%s4107_s28 + $0xa8] sm:$0xff] %v2011_v13  ;;  %v1584_v28 = vmul.f32 %v3062_v27, %v4097_v9  ;;  %v1585_v30 = vmul.f32 %v3063_v29, %v4097_v9  ;;  %v1996_v22 = vmul.f32 %v4061_v50, %v1580_v15  ;;  %v3072_v13 = vld [vmem:[%s3647_s5 + $0xd0] sm:$0xff]  ;;  %v3073_v15 = vld [vmem:[%s3647_s5 + $0xd8] sm:$0xff] }
 0x105   : > { %v1997_v31 = vmul.f32 %v4063_v51, %v1581_v17  ;;  %2396 = vst [vmem:[%s4107_s28 + $0xb0] sm:$0xff] %v2012_v19  ;;  %2397 = vst [vmem:[%s4107_s28 + $0xb8] sm:$0xff] %v2013_v20  ;;  %v1998_v34 = vmul.f32 %v4065_v53, %v1582_v24  ;;  %v1999_v41 = vmul.f32 %v4067_v54, %v1583_v60  ;;  %v4191_v46 = vpop.xlane.xlu0 %1064  ;;  %v3074_v19 = vld [vmem:[%s3647_s5 + $0xe0] sm:$0xff]  ;;  %v3075_v23 = vld [vmem:[%s3647_s5 + $0xe8] sm:$0xff] }
 0x106   : > { %v1604_v36 = vmul.f32 %v3064_v35, %v4103_v32  ;;  %v1605_v9 = vmul.f32 %v3065_v37, %v4103_v32  ;;  %v2000_v38 = vmul.f32 %v4069_v56, %v1584_v28  ;;  %v2001_v42 = vmul.f32 %v4071_v57, %v1585_v30  ;;  %2380 = vst [vmem:[%s4107_s28 + $0x30] sm:$0xff] %v1996_v22  ;;  %v3076_v29 = vld [vmem:[%s3647_s5 + $0x150] sm:$0xff]  ;;  %v3077_v22 = vld [vmem:[%s3647_s5 + $0x158] sm:$0xff] }
 0x107   : > { %2381 = vst [vmem:[%s4107_s28 + $0x38] sm:$0xff] %v1997_v31  ;;  %v1606_v44 = vmul.f32 %v3066_v43, %v4103_v32  ;;  %v1607_v45 = vmul.f32 %v3067_v55, %v4103_v32  ;;  %2382 = vst [vmem:[%s4107_s28 + $0x40] sm:$0xff] %v1998_v34  ;;  %v1608_v12 = vmul.f32 %v3068_v48, %v4103_v32  ;;  %v3081_v43 = vld [vmem:[%s3647_s5 + $0x178] sm:$0xff]  ;;  %v1400_v59 = vmul.f32 0.0013020834, %v4191_v46 }
 0x108   : > { %2383 = vst [vmem:[%s4107_s28 + $0x48] sm:$0xff] %v1999_v41  ;;  %v1609_v33 = vmul.f32 %v3069_v49, %v4103_v32  ;;  %v2020_v52 = vmul.f32 %v4061_v50, %v1604_v36  ;;  %v2021_v61 = vmul.f32 %v4063_v51, %v1605_v9  ;;  %2384 = vst [vmem:[%s4107_s28 + $0x50] sm:$0xff] %v2000_v38  ;;  %v4217_v17 = vpop.xlane.xlu1 %1085  ;;  %v3078_v41 = vld [vmem:[%s3647_s5 + $0x160] sm:$0xff]  ;;  %v3079_v36 = vld [vmem:[%s3647_s5 + $0x168] sm:$0xff] }
 0x109   : > { %2385 = vst [vmem:[%s4107_s28 + $0x58] sm:$0xff] %v2001_v42  ;;  %v2022_v3 = vmul.f32 %v4065_v53, %v1606_v44  ;;  %v2023_v4 = vmul.f32 %v4067_v54, %v1607_v45  ;;  %v1598_v6 = vmul.f32 %v3070_v5, %v4119_v40  ;;  %v1599_v32 = vmul.f32 %v3071_v7, %v4119_v40  ;;  %v3080_v38 = vld [vmem:[%s3647_s5 + $0x170] sm:$0xff]  ;;  %v3082_v49 = vld [vmem:[%s3647_s5 + $0x120] sm:$0xff]  ;;  %v3085_v7 = vld [vmem:[%s3647_s5 + $0x138] sm:$0xff] }
 0x10a   : > { %v2024_v8 = vmul.f32 %v4069_v56, %v1608_v12  ;;  %v2025_v11 = vmul.f32 %v4071_v57, %v1609_v33  ;;  %2404 = vst [vmem:[%s4107_s28 + $0xf0] sm:$0xff] %v2020_v52  ;;  %2405 = vst [vmem:[%s4107_s28 + $0xf8] sm:$0xff] %v2021_v61  ;;  %v1600_v14 = vmul.f32 %v3072_v13, %v4119_v40  ;;  %v4243_v9 = vpop.xlane.xlu0 %1078  ;;  %v3084_v5 = vld [vmem:[%s3647_s5 + $0x130] sm:$0xff]  ;;  %v3087_v13 = vld [vmem:[%s3647_s5 + $0x148] sm:$0xff]  ;;  %v1464_v39 = vadd.f32 1e-05, %v1400_v59 }
 0x10b   : > { %v1601_v16 = vmul.f32 %v3073_v15, %v4119_v40  ;;  %2406 = vst [vmem:[%s4107_s28 + $0x100] sm:$0xff] %v2022_v3  ;;  %2407 = vst [vmem:[%s4107_s28 + $0x108] sm:$0xff] %v2023_v4  ;;  %v1602_v20 = vmul.f32 %v3074_v19, %v4119_v40  ;;  %v1603_v24 = vmul.f32 %v3075_v23, %v4119_v40  ;;  %v3088_v23 = vld [vmem:[%s3647_s5 + $0x1b0] sm:$0xff] }
 0x10c   : > { %v2014_v25 = vmul.f32 %v4061_v50, %v1598_v6  ;;  %v2015_v60 = vmul.f32 %v4063_v51, %v1599_v32  ;;  %2408 = vst [vmem:[%s4107_s28 + $0x110] sm:$0xff] %v2024_v8  ;;  %2409 = vst [vmem:[%s4107_s28 + $0x118] sm:$0xff] %v2025_v11  ;;  %v2016_v27 = vmul.f32 %v4065_v53, %v1600_v14  ;;  %v3086_v8 = vld [vmem:[%s3647_s5 + $0x140] sm:$0xff] }
 0x10d   : > { %v2017_v28 = vmul.f32 %v4067_v54, %v1601_v16  ;;  %v1616_v30 = vmul.f32 %v3076_v29, %v4127_v47  ;;  %v1617_v40 = vmul.f32 %v3077_v22, %v4127_v47  ;;  %v2018_v31 = vmul.f32 %v4069_v56, %v1602_v20  ;;  %v4261_v61 = vpop.xlane.xlu1 %1099 }
 0x10e   : > { %v2019_v34 = vmul.f32 %v4071_v57, %v1603_v24  ;;  %2398 = vst [vmem:[%s4107_s28 + $0xc0] sm:$0xff] %v2014_v25  ;;  %2399 = vst [vmem:[%s4107_s28 + $0xc8] sm:$0xff] %v2015_v60  ;;  %v1618_v35 = vmul.f32 %v3078_v41, %v4127_v47  ;;  %v1619_v37 = vmul.f32 %v3079_v36, %v4127_v47  ;;  %v3089_v25 = vld [vmem:[%s3647_s5 + $0x1b8] sm:$0xff] }
 0x10f   : > { %2400 = vst [vmem:[%s4107_s28 + $0xd0] sm:$0xff] %v2016_v27  ;;  %2401 = vst [vmem:[%s4107_s28 + $0xd8] sm:$0xff] %v2017_v28  ;;  %v1620_v42 = vmul.f32 %v3080_v38, %v4127_v47  ;;  %v1621_v44 = vmul.f32 %v3081_v43, %v4127_v47  ;;  %v2032_v55 = vmul.f32 %v4061_v50, %v1616_v30  ;;  %v3083_v47 = vld [vmem:[%s3647_s5 + $0x128] sm:$0xff]  ;;  %v3090_v28 = vld [vmem:[%s3647_s5 + $0x1c0] sm:$0xff] }
 0x110   : > { %v2033_v45 = vmul.f32 %v4063_v51, %v1617_v40  ;;  %2402 = vst [vmem:[%s4107_s28 + $0xe0] sm:$0xff] %v2018_v31  ;;  %2403 = vst [vmem:[%s4107_s28 + $0xe8] sm:$0xff] %v2019_v34  ;;  %v2034_v48 = vmul.f32 %v4065_v53, %v1618_v35  ;;  %v2035_v12 = vmul.f32 %v4067_v54, %v1619_v37  ;;  %v3091_v30 = vld [vmem:[%s3647_s5 + $0x1c8] sm:$0xff]  ;;  %v4295_v40 = vpop.xlane.xlu0 %1092  ;;  %v3092_v31 = vld [vmem:[%s3647_s5 + $0x1d0] sm:$0xff] }
 0x111   : > { %v1610_v33 = vmul.f32 %v3082_v49, %v4137_v2  ;;  %v1611_v52 = vmul.f32 %v3083_v47, %v4137_v2  ;;  %v2036_v3 = vmul.f32 %v4069_v56, %v1620_v42  ;;  %v2037_v4 = vmul.f32 %v4071_v57, %v1621_v44  ;;  %2416 = vst [vmem:[%s4107_s28 + $0x150] sm:$0xff] %v2032_v55  ;;  %v3093_v41 = vld [vmem:[%s3647_s5 + $0x1d8] sm:$0xff]  ;;  %v3094_v43 = vld [vmem:[%s3647_s5 + $0x180] sm:$0xff]  ;;  %v3096_v49 = vld [vmem:[%s3647_s5 + $0x190] sm:$0xff] }
 0x112   : > { %2417 = vst [vmem:[%s4107_s28 + $0x158] sm:$0xff] %v2033_v45  ;;  %v1612_v6 = vmul.f32 %v3084_v5, %v4137_v2  ;;  %v1613_v32 = vmul.f32 %v3085_v7, %v4137_v2  ;;  %2418 = vst [vmem:[%s4107_s28 + $0x160] sm:$0xff] %v2034_v48  ;;  %v1614_v11 = vmul.f32 %v3086_v8, %v4137_v2  ;;  %v3097_v47 = vld [vmem:[%s3647_s5 + $0x198] sm:$0xff]  ;;  %v3099_v5 = vld [vmem:[%s3647_s5 + $0x1a8] sm:$0xff] }
 0x113   : > { %2419 = vst [vmem:[%s4107_s28 + $0x168] sm:$0xff] %v2035_v12  ;;  %v1615_v14 = vmul.f32 %v3087_v13, %v4137_v2  ;;  %v2026_v15 = vmul.f32 %v4061_v50, %v1610_v33  ;;  %v2027_v16 = vmul.f32 %v4063_v51, %v1611_v52  ;;  %2420 = vst [vmem:[%s4107_s28 + $0x170] sm:$0xff] %v2036_v3  ;;  %v1114_v45 = vpop.xlane.xlu1 %1113  ;;  %v3098_v3 = vld [vmem:[%s3647_s5 + $0x1a0] sm:$0xff]  ;;  %v1461_v13 = vadd.f32 1e-05, %v4081_v1 }
 0x114   : > { %2421 = vst [vmem:[%s4107_s28 + $0x178] sm:$0xff] %v2037_v4  ;;  %v2028_v19 = vmul.f32 %v4065_v53, %v1612_v6  ;;  %v2029_v20 = vmul.f32 %v4067_v54, %v1613_v32  ;;  %v1628_v24 = vmul.f32 %v3088_v23, %v4145_v10  ;;  %v1629_v2 = vmul.f32 %v3089_v25, %v4145_v10 }
 0x115   : > { %v2030_v60 = vmul.f32 %v4069_v56, %v1614_v11  ;;  %v2031_v27 = vmul.f32 %v4071_v57, %v1615_v14  ;;  %2410 = vst [vmem:[%s4107_s28 + $0x120] sm:$0xff] %v2026_v15  ;;  %2411 = vst [vmem:[%s4107_s28 + $0x128] sm:$0xff] %v2027_v16  ;;  %v1630_v29 = vmul.f32 %v3090_v28, %v4145_v10  ;;  %v1396_v15 = vmul.f32 0.0013020834, %v4091_v21  ;;  %v1107_v16 = vpop.xlane.xlu0 %1106 }
 0x116   : > { %v1631_v22 = vmul.f32 %v3091_v30, %v4145_v10  ;;  %2412 = vst [vmem:[%s4107_s28 + $0x130] sm:$0xff] %v2028_v19  ;;  %2413 = vst [vmem:[%s4107_s28 + $0x138] sm:$0xff] %v2029_v20  ;;  %v1632_v34 = vmul.f32 %v3092_v31, %v4145_v10  ;;  %v1633_v35 = vmul.f32 %v3093_v41, %v4145_v10  ;;  %v3095_v10 = vld [vmem:[%s3647_s5 + $0x188] sm:$0xff]  ;;  %v1398_v1 = vmul.f32 0.0013020834, %v4135_v62 }
 0x117   : > { %v2044_v36 = vmul.f32 %v4061_v50, %v1628_v24  ;;  %v2045_v37 = vmul.f32 %v4063_v51, %v1629_v2  ;;  %2414 = vst [vmem:[%s4107_s28 + $0x140] sm:$0xff] %v2030_v60  ;;  %2415 = vst [vmem:[%s4107_s28 + $0x148] sm:$0xff] %v2031_v27  ;;  %v2046_v38 = vmul.f32 %v4065_v53, %v1630_v29  ;;  %v1401_v19 = vmul.f32 0.0013020834, %v4165_v26 }
 0x118   : > { %v2047_v42 = vmul.f32 %v4067_v54, %v1631_v22  ;;  %v1622_v44 = vmul.f32 %v3094_v43, %v4155_v18  ;;  %v1623_v55 = vmul.f32 %v3095_v10, %v4155_v18  ;;  %v2048_v48 = vmul.f32 %v4069_v56, %v1632_v34  ;;  %v1128_v20 = vpop.xlane.xlu1 %1127  ;;  %v2933_v22 = vpop.eup %2932 }
 0x119   : > { %v2049_v12 = vmul.f32 %v4071_v57, %v1633_v35  ;;  %2428 = vst [vmem:[%s4107_s28 + $0x1b0] sm:$0xff] %v2044_v36  ;;  %2429 = vst [vmem:[%s4107_s28 + $0x1b8] sm:$0xff] %v2045_v37  ;;  %v1624_v33 = vmul.f32 %v3096_v49, %v4155_v18  ;;  %v1625_v52 = vmul.f32 %v3097_v47, %v4155_v18  ;;  %v1460_v23 = vadd.f32 1e-05, %v1396_v15  ;;  %v2935_v41 = vpop.eup %2934  ;;  %v3100_v35 = vld [vmem:[%s3647_s5 + $0x210] sm:$0xff]  ;;  %v3101_v37 = vld [vmem:[%s3647_s5 + $0x218] sm:$0xff] }
 0x11a   : > { %2430 = vst [vmem:[%s4107_s28 + $0x1c0] sm:$0xff] %v2046_v38  ;;  %2431 = vst [vmem:[%s4107_s28 + $0x1c8] sm:$0xff] %v2047_v42  ;;  %v1626_v4 = vmul.f32 %v3098_v3, %v4155_v18  ;;  %v1627_v6 = vmul.f32 %v3099_v5, %v4155_v18  ;;  %v2038_v7 = vmul.f32 %v4061_v50, %v1622_v44  ;;  %v1403_v21 = vmul.f32 0.0013020834, %v4217_v17  ;;  %v3102_v42 = vld [vmem:[%s3647_s5 + $0x220] sm:$0xff]  ;;  %v3103_v44 = vld [vmem:[%s3647_s5 + $0x228] sm:$0xff] }
 0x11b   : > { %v2039_v32 = vmul.f32 %v4063_v51, %v1623_v55  ;;  %2432 = vst [vmem:[%s4107_s28 + $0x1d0] sm:$0xff] %v2048_v48  ;;  %2433 = vst [vmem:[%s4107_s28 + $0x1d8] sm:$0xff] %v2049_v12  ;;  %v2040_v8 = vmul.f32 %v4065_v53, %v1624_v33  ;;  %v2041_v11 = vmul.f32 %v4067_v54, %v1625_v52  ;;  %2940 = vrsqrt.f32 %v1461_v13  ;;  %v1121_v46 = vpop.xlane.xlu0 %1120  ;;  %v2937_v55 = vpop.eup %2936  ;;  %v3105_v12 = vld [vmem:[%s3647_s5 + $0x238] sm:$0xff]  ;;  %v3106_v33 = vld [vmem:[%s3647_s5 + $0x1e0] sm:$0xff] }
 0x11c   : > { %v2042_v18 = vmul.f32 %v4069_v56, %v1626_v4  ;;  %v2043_v14 = vmul.f32 %v4071_v57, %v1627_v6  ;;  %2422 = vst [vmem:[%s4107_s28 + $0x180] sm:$0xff] %v2038_v7  ;;  %v1463_v24 = vadd.f32 1e-05, %v1399_v58  ;;  %v1462_v25 = vadd.f32 1e-05, %v1398_v1  ;;  %v3107_v52 = vld [vmem:[%s3647_s5 + $0x1e8] sm:$0xff]  ;;  %v4379_v4 = vpop.eup %2938 }
 0x11d   : > { %2423 = vst [vmem:[%s4107_s28 + $0x188] sm:$0xff] %v2039_v32  ;;  %2424 = vst [vmem:[%s4107_s28 + $0x190] sm:$0xff] %v2040_v8  ;;  %v1465_v63 = vadd.f32 1e-05, %v1401_v19  ;;  %2942 = vrsqrt.f32 %v1460_v23  ;;  %v1467_v2 = vadd.f32 1e-05, %v1403_v21  ;;  %v1640_v36 = vmul.f32 %v3100_v35, %v2933_v22 }
 0x11e   : > { %2425 = vst [vmem:[%s4107_s28 + $0x198] sm:$0xff] %v2041_v11  ;;  %2426 = vst [vmem:[%s4107_s28 + $0x1a0] sm:$0xff] %v2042_v18  ;;  %v1402_v62 = vmul.f32 0.0013020834, %v4243_v9  ;;  %2944 = vrsqrt.f32 %v1463_v24  ;;  %v1405_v26 = vmul.f32 0.0013020834, %v4261_v61  ;;  %v1142_v29 = vpop.xlane.xlu1 %1141  ;;  %v1641_v38 = vmul.f32 %v3101_v37, %v2933_v22 }
 0x11f   : > { %2427 = vst [vmem:[%s4107_s28 + $0x1a8] sm:$0xff] %v2043_v14  ;;  %v1404_v60 = vmul.f32 0.0013020834, %v4295_v40  ;;  %v1407_v0 = vmul.f32 0.0013020834, %v1114_v45  ;;  %2946 = vrsqrt.f32 %v1462_v25  ;;  %v1642_v43 = vmul.f32 %v3102_v42, %v2933_v22  ;;  %v3104_v45 = vld [vmem:[%s3647_s5 + $0x230] sm:$0xff] }
 0x120   : > { %v1406_v27 = vmul.f32 0.0013020834, %v1107_v16  ;;  %2948 = vrsqrt.f32 %v1465_v63  ;;  %v4355_v17 = vadd.f32 1e-05, %v1402_v62  ;;  %v4357_v28 = vmul.f32 0.0013020834, %v1128_v20 }
 0x121   : > { %2950 = vrsqrt.f32 %v1464_v39  ;;  %v4359_v9 = vadd.f32 1e-05, %v1405_v26  ;;  %v4361_v61 = vadd.f32 1e-05, %v1404_v60  ;;  %v4363_v30 = vadd.f32 1e-05, %v1407_v0 }
 0x122   : > { %2952 = vrsqrt.f32 %v1467_v2  ;;  %v4365_v40 = vadd.f32 1e-05, %v1406_v27  ;;  %v4367_v31 = vmul.f32 0.0013020834, %v1121_v46  ;;  %v4369_v34 = vmul.f32 0.0013020834, %v1142_v29 }
 0x123   : > { %v1643_v10 = vmul.f32 %v3103_v44, %v2933_v22  ;;  %v1644_v48 = vmul.f32 %v3104_v45, %v2933_v22  ;;  %v1645_v49 = vmul.f32 %v3105_v12, %v2933_v22  ;;  %v1634_v47 = vmul.f32 %v3106_v33, %v2935_v41  ;;  %v3108_v18 = vld [vmem:[%s3647_s5 + $0x1f0] sm:$0xff]  ;;  %v3109_v15 = vld [vmem:[%s3647_s5 + $0x1f8] sm:$0xff]  ;;  %v3110_v1 = vld [vmem:[%s3647_s5 + $0x200] sm:$0xff] }
 0x124   : > { %v1635_v3 = vmul.f32 %v3107_v52, %v2935_v41  ;;  %v2056_v5 = vmul.f32 %v4061_v50, %v1640_v36  ;;  %v2057_v6 = vmul.f32 %v4063_v51, %v1641_v38  ;;  %v2058_v7 = vmul.f32 %v4065_v53, %v1642_v43  ;;  %v3111_v20 = vld [vmem:[%s3647_s5 + $0x208] sm:$0xff]  ;;  %v3112_v39 = vld [vmem:[%s3647_s5 + $0x270] sm:$0xff]  ;;  %v3113_v62 = vld [vmem:[%s3647_s5 + $0x278] sm:$0xff] }
 0x125   : > { %v2059_v32 = vmul.f32 %v4067_v54, %v1643_v10  ;;  %v4385_v8 = vpop.eup %2940  ;;  %v2060_v11 = vmul.f32 %v4069_v56, %v1644_v48  ;;  %v2061_v13 = vmul.f32 %v4071_v57, %v1645_v49  ;;  %v1636_v14 = vmul.f32 %v3108_v18, %v2935_v41  ;;  %v3114_v46 = vld [vmem:[%s3647_s5 + $0x280] sm:$0xff]  ;;  %v3115_v22 = vld [vmem:[%s3647_s5 + $0x288] sm:$0xff]  ;;  %v3116_v36 = vld [vmem:[%s3647_s5 + $0x290] sm:$0xff] }
 0x126   : > { %v1637_v16 = vmul.f32 %v3109_v15, %v2935_v41  ;;  %2440 = vst [vmem:[%s4107_s28 + $0x210] sm:$0xff] %v2056_v5  ;;  %2441 = vst [vmem:[%s4107_s28 + $0x218] sm:$0xff] %v2057_v6  ;;  %v1638_v19 = vmul.f32 %v3110_v1, %v2935_v41  ;;  %v1639_v23 = vmul.f32 %v3111_v20, %v2935_v41  ;;  %v3117_v38 = vld [vmem:[%s3647_s5 + $0x298] sm:$0xff]  ;;  %v3118_v12 = vld [vmem:[%s3647_s5 + $0x240] sm:$0xff]  ;;  %2954 = vrsqrt.f32 %v4355_v17 }
 0x127   : > { %v4391_v58 = vpop.eup %2942  ;;  %2442 = vst [vmem:[%s4107_s28 + $0x220] sm:$0xff] %v2058_v7  ;;  %2443 = vst [vmem:[%s4107_s28 + $0x228] sm:$0xff] %v2059_v32  ;;  %v2050_v59 = vmul.f32 %v4061_v50, %v1634_v47  ;;  %v2051_v21 = vmul.f32 %v4063_v51, %v1635_v3  ;;  %v2052_v25 = vmul.f32 %v4065_v53, %v1636_v14  ;;  %v3119_v49 = vld [vmem:[%s3647_s5 + $0x248] sm:$0xff]  ;;  %v4435_v47 = vpop.xlane.xlu0 %1134  ;;  %v3120_v6 = vld [vmem:[%s3647_s5 + $0x250] sm:$0xff]  ;;  %2956 = vrsqrt.f32 %v4359_v9 }
 0x128   : > { %v4401_v24 = vpop.eup %2944  ;;  %2444 = vst [vmem:[%s4107_s28 + $0x230] sm:$0xff] %v2060_v11  ;;  %2445 = vst [vmem:[%s4107_s28 + $0x238] sm:$0xff] %v2061_v13  ;;  %v2053_v63 = vmul.f32 %v4067_v54, %v1637_v16  ;;  %v1652_v2 = vmul.f32 %v3112_v39, %v2937_v55  ;;  %v1653_v26 = vmul.f32 %v3113_v62, %v2937_v55  ;;  %v3121_v32 = vld [vmem:[%s3647_s5 + $0x258] sm:$0xff]  ;;  %v4447_v13 = vpop.xlane.xlu1 %1155  ;;  %v3122_v18 = vld [vmem:[%s3647_s5 + $0x260] sm:$0xff]  ;;  %2958 = vrsqrt.f32 %v4361_v61 }
 0x129   : > { %v4409_v60 = vpop.eup %2946  ;;  %v2054_v0 = vmul.f32 %v4069_v56, %v1638_v19  ;;  %v2055_v27 = vmul.f32 %v4071_v57, %v1639_v23  ;;  %2434 = vst [vmem:[%s4107_s28 + $0x1e0] sm:$0xff] %v2050_v59  ;;  %2435 = vst [vmem:[%s4107_s28 + $0x1e8] sm:$0xff] %v2051_v21  ;;  %v1654_v29 = vmul.f32 %v3114_v46, %v2937_v55  ;;  %v3123_v15 = vld [vmem:[%s3647_s5 + $0x268] sm:$0xff]  ;;  %v3124_v59 = vld [vmem:[%s3647_s5 + $0x2d0] sm:$0xff]  ;;  %v1410_v17 = vmul.f32 0.0013020834, %v4435_v47 }
 0x12a   : > { %v1655_v41 = vmul.f32 %v3115_v22, %v2937_v55  ;;  %v4417_v35 = vpop.eup %2948  ;;  %2436 = vst [vmem:[%s4107_s28 + $0x1f0] sm:$0xff] %v2052_v25  ;;  %2437 = vst [vmem:[%s4107_s28 + $0x1f8] sm:$0xff] %v2053_v63  ;;  %v1656_v37 = vmul.f32 %v3116_v36, %v2937_v55  ;;  %v1657_v42 = vmul.f32 %v3117_v38, %v2937_v55  ;;  %v3125_v25 = vld [vmem:[%s3647_s5 + $0x2d8] sm:$0xff]  ;;  %2960 = vrsqrt.f32 %v4363_v30 }
 0x12b   : > { %v2068_v43 = vmul.f32 %v4061_v50, %v1652_v2  ;;  %v2069_v44 = vmul.f32 %v4063_v51, %v1653_v26  ;;  %v4425_v10 = vpop.eup %2950  ;;  %2438 = vst [vmem:[%s4107_s28 + $0x200] sm:$0xff] %v2054_v0  ;;  %2439 = vst [vmem:[%s4107_s28 + $0x208] sm:$0xff] %v2055_v27  ;;  %v2070_v45 = vmul.f32 %v4065_v53, %v1654_v29  ;;  %v3126_v2 = vld [vmem:[%s3647_s5 + $0x2e0] sm:$0xff]  ;;  %v3127_v26 = vld [vmem:[%s3647_s5 + $0x2e8] sm:$0xff]  ;;  %2962 = vrsqrt.f32 %v4365_v40 }
 0x12c   : > { %v2071_v48 = vmul.f32 %v4067_v54, %v1655_v41  ;;  %v1646_v55 = vmul.f32 %v3118_v12, %v4379_v4  ;;  %v1647_v33 = vmul.f32 %v3119_v49, %v4379_v4  ;;  %v4437_v52 = vpop.eup %2952  ;;  %v2072_v3 = vmul.f32 %v4069_v56, %v1656_v37  ;;  %v3128_v27 = vld [vmem:[%s3647_s5 + $0x2f0] sm:$0xff]  ;;  %v3129_v29 = vld [vmem:[%s3647_s5 + $0x2f8] sm:$0xff] }
 0x12d   : > { %v2073_v5 = vmul.f32 %v4071_v57, %v1657_v42  ;;  %2452 = vst [vmem:[%s4107_s28 + $0x270] sm:$0xff] %v2068_v43  ;;  %2453 = vst [vmem:[%s4107_s28 + $0x278] sm:$0xff] %v2069_v44  ;;  %v1648_v7 = vmul.f32 %v3120_v6, %v4379_v4  ;;  %v1649_v11 = vmul.f32 %v3121_v32, %v4379_v4  ;;  %v3130_v42 = vld [vmem:[%s3647_s5 + $0x2a0] sm:$0xff]  ;;  %v3131_v44 = vld [vmem:[%s3647_s5 + $0x2a8] sm:$0xff] }
 0x12e   : > { %2454 = vst [vmem:[%s4107_s28 + $0x280] sm:$0xff] %v2070_v45  ;;  %2455 = vst [vmem:[%s4107_s28 + $0x288] sm:$0xff] %v2071_v48  ;;  %v1650_v14 = vmul.f32 %v3122_v18, %v4379_v4  ;;  %v1651_v16 = vmul.f32 %v3123_v15, %v4379_v4  ;;  %v2062_v1 = vmul.f32 %v4061_v50, %v1646_v55  ;;  %v4489_v45 = vpop.xlane.xlu0 %1148  ;;  %v3132_v55 = vld [vmem:[%s3647_s5 + $0x2b0] sm:$0xff]  ;;  %v3134_v6 = vld [vmem:[%s3647_s5 + $0x2c0] sm:$0xff] }
 0x12f   : > { %v2063_v19 = vmul.f32 %v4063_v51, %v1647_v33  ;;  %2456 = vst [vmem:[%s4107_s28 + $0x290] sm:$0xff] %v2072_v3  ;;  %2457 = vst [vmem:[%s4107_s28 + $0x298] sm:$0xff] %v2073_v5  ;;  %v2064_v20 = vmul.f32 %v4065_v53, %v1648_v7  ;;  %v2065_v23 = vmul.f32 %v4067_v54, %v1649_v11  ;;  %v3133_v33 = vld [vmem:[%s3647_s5 + $0x2b8] sm:$0xff]  ;;  %v4499_v5 = vpop.xlane.xlu1 %1169  ;;  %v3135_v32 = vld [vmem:[%s3647_s5 + $0x2c8] sm:$0xff] }
 0x130   : > { %v1664_v21 = vmul.f32 %v3124_v59, %v4385_v8  ;;  %v1665_v4 = vmul.f32 %v3125_v25, %v4385_v8  ;;  %v2066_v63 = vmul.f32 %v4069_v56, %v1650_v14  ;;  %v2067_v39 = vmul.f32 %v4071_v57, %v1651_v16  ;;  %2446 = vst [vmem:[%s4107_s28 + $0x240] sm:$0xff] %v2062_v1  ;;  %v3136_v1 = vld [vmem:[%s3647_s5 + $0x330] sm:$0xff] }
 0x131   : > { %2447 = vst [vmem:[%s4107_s28 + $0x248] sm:$0xff] %v2063_v19  ;;  %v1666_v62 = vmul.f32 %v3126_v2, %v4385_v8  ;;  %v1667_v0 = vmul.f32 %v3127_v26, %v4385_v8  ;;  %2448 = vst [vmem:[%s4107_s28 + $0x250] sm:$0xff] %v2064_v20  ;;  %v1668_v46 = vmul.f32 %v3128_v27, %v4385_v8  ;;  %v3137_v20 = vld [vmem:[%s3647_s5 + $0x338] sm:$0xff]  ;;  %v1415_v9 = vmul.f32 0.0013020834, %v4499_v5 }
 0x132   : > { %2449 = vst [vmem:[%s4107_s28 + $0x258] sm:$0xff] %v2065_v23  ;;  %v1669_v22 = vmul.f32 %v3129_v29, %v4385_v8  ;;  %v2080_v41 = vmul.f32 %v4061_v50, %v1664_v21  ;;  %v2081_v36 = vmul.f32 %v4063_v51, %v1665_v4  ;;  %2450 = vst [vmem:[%s4107_s28 + $0x260] sm:$0xff] %v2066_v63  ;;  %v3138_v21 = vld [vmem:[%s3647_s5 + $0x340] sm:$0xff]  ;;  %v3139_v4 = vld [vmem:[%s3647_s5 + $0x348] sm:$0xff] }
 0x133   : > { %2451 = vst [vmem:[%s4107_s28 + $0x268] sm:$0xff] %v2067_v39  ;;  %v2082_v37 = vmul.f32 %v4065_v53, %v1666_v62  ;;  %v2083_v38 = vmul.f32 %v4067_v54, %v1667_v0  ;;  %v1658_v43 = vmul.f32 %v3130_v42, %v4391_v58  ;;  %v1659_v8 = vmul.f32 %v3131_v44, %v4391_v58  ;;  %v3140_v39 = vld [vmem:[%s3647_s5 + $0x350] sm:$0xff]  ;;  %v3141_v62 = vld [vmem:[%s3647_s5 + $0x358] sm:$0xff] }
 0x134   : > { %v2084_v48 = vmul.f32 %v4069_v56, %v1668_v46  ;;  %v2085_v12 = vmul.f32 %v4071_v57, %v1669_v22  ;;  %2464 = vst [vmem:[%s4107_s28 + $0x2d0] sm:$0xff] %v2080_v41  ;;  %2465 = vst [vmem:[%s4107_s28 + $0x2d8] sm:$0xff] %v2081_v36  ;;  %v1660_v49 = vmul.f32 %v3132_v55, %v4391_v58  ;;  %v3142_v22 = vld [vmem:[%s3647_s5 + $0x300] sm:$0xff]  ;;  %v3143_v36 = vld [vmem:[%s3647_s5 + $0x308] sm:$0xff]  ;;  %v4665_v40 = vadd.f32 1e-05, %v1415_v9 }
 0x135   : > { %v1661_v3 = vmul.f32 %v3133_v33, %v4391_v58  ;;  %2466 = vst [vmem:[%s4107_s28 + $0x2e0] sm:$0xff] %v2082_v37  ;;  %2467 = vst [vmem:[%s4107_s28 + $0x2e8] sm:$0xff] %v2083_v38  ;;  %v1662_v7 = vmul.f32 %v3134_v6, %v4391_v58  ;;  %v1663_v11 = vmul.f32 %v3135_v32, %v4391_v58  ;;  %v4541_v37 = vpop.xlane.xlu0 %1162  ;;  %v3146_v55 = vld [vmem:[%s3647_s5 + $0x320] sm:$0xff]  ;;  %v3147_v33 = vld [vmem:[%s3647_s5 + $0x328] sm:$0xff] }
 0x136   : > { %v2074_v18 = vmul.f32 %v4061_v50, %v1658_v43  ;;  %v2075_v14 = vmul.f32 %v4063_v51, %v1659_v8  ;;  %2468 = vst [vmem:[%s4107_s28 + $0x2f0] sm:$0xff] %v2084_v48  ;;  %2469 = vst [vmem:[%s4107_s28 + $0x2f8] sm:$0xff] %v2085_v12  ;;  %v2076_v15 = vmul.f32 %v4065_v53, %v1660_v49  ;;  %v3144_v43 = vld [vmem:[%s3647_s5 + $0x310] sm:$0xff]  ;;  %v3145_v8 = vld [vmem:[%s3647_s5 + $0x318] sm:$0xff]  ;;  %v4551_v12 = vpop.xlane.xlu1 %1183 }
 0x137   : > { %v2077_v16 = vmul.f32 %v4067_v54, %v1661_v3  ;;  %v1676_v19 = vmul.f32 %v3136_v1, %v4401_v24  ;;  %v1677_v58 = vmul.f32 %v3137_v20, %v4401_v24  ;;  %v2078_v23 = vmul.f32 %v4069_v56, %v1662_v7 }
 0x138   : > { %v2079_v59 = vmul.f32 %v4071_v57, %v1663_v11  ;;  %2458 = vst [vmem:[%s4107_s28 + $0x2a0] sm:$0xff] %v2074_v18  ;;  %2459 = vst [vmem:[%s4107_s28 + $0x2a8] sm:$0xff] %v2075_v14  ;;  %v1678_v25 = vmul.f32 %v3138_v21, %v4401_v24  ;;  %v1679_v63 = vmul.f32 %v3139_v4, %v4401_v24  ;;  %v3148_v18 = vld [vmem:[%s3647_s5 + $0x390] sm:$0xff]  ;;  %v1417_v61 = vmul.f32 0.0013020834, %v4551_v12 }
 0x139   : > { %2460 = vst [vmem:[%s4107_s28 + $0x2b0] sm:$0xff] %v2076_v15  ;;  %2461 = vst [vmem:[%s4107_s28 + $0x2b8] sm:$0xff] %v2077_v16  ;;  %v1680_v2 = vmul.f32 %v3140_v39, %v4401_v24  ;;  %v1681_v26 = vmul.f32 %v3141_v62, %v4401_v24  ;;  %v2092_v0 = vmul.f32 %v4061_v50, %v1676_v19  ;;  %v3149_v15 = vld [vmem:[%s3647_s5 + $0x398] sm:$0xff]  ;;  %v3150_v19 = vld [vmem:[%s3647_s5 + $0x3a0] sm:$0xff] }
 0x13a   : > { %v2093_v27 = vmul.f32 %v4063_v51, %v1677_v58  ;;  %2462 = vst [vmem:[%s4107_s28 + $0x2c0] sm:$0xff] %v2078_v23  ;;  %2463 = vst [vmem:[%s4107_s28 + $0x2c8] sm:$0xff] %v2079_v59  ;;  %v2094_v46 = vmul.f32 %v4065_v53, %v1678_v25  ;;  %v2095_v29 = vmul.f32 %v4067_v54, %v1679_v63  ;;  %v3151_v58 = vld [vmem:[%s3647_s5 + $0x3a8] sm:$0xff]  ;;  %v3152_v59 = vld [vmem:[%s3647_s5 + $0x3b0] sm:$0xff] }
 0x13b   : > { %v1670_v41 = vmul.f32 %v3142_v22, %v4409_v60  ;;  %v1671_v24 = vmul.f32 %v3143_v36, %v4409_v60  ;;  %v2096_v38 = vmul.f32 %v4069_v56, %v1680_v2  ;;  %v2097_v42 = vmul.f32 %v4071_v57, %v1681_v26  ;;  %2476 = vst [vmem:[%s4107_s28 + $0x330] sm:$0xff] %v2092_v0  ;;  %v3153_v25 = vld [vmem:[%s3647_s5 + $0x3b8] sm:$0xff]  ;;  %v3154_v26 = vld [vmem:[%s3647_s5 + $0x360] sm:$0xff] }
 0x13c   : > { %2477 = vst [vmem:[%s4107_s28 + $0x338] sm:$0xff] %v2093_v27  ;;  %v1672_v44 = vmul.f32 %v3144_v43, %v4409_v60  ;;  %v1673_v48 = vmul.f32 %v3145_v8, %v4409_v60  ;;  %2478 = vst [vmem:[%s4107_s28 + $0x340] sm:$0xff] %v2094_v46  ;;  %v1674_v49 = vmul.f32 %v3146_v55, %v4409_v60  ;;  %v3155_v27 = vld [vmem:[%s3647_s5 + $0x368] sm:$0xff]  ;;  %v4593_v46 = vpop.xlane.xlu0 %1176  ;;  %v3158_v43 = vld [vmem:[%s3647_s5 + $0x380] sm:$0xff] }
 0x13d   : > { %2479 = vst [vmem:[%s4107_s28 + $0x348] sm:$0xff] %v2095_v29  ;;  %v1675_v3 = vmul.f32 %v3147_v33, %v4409_v60  ;;  %v2086_v6 = vmul.f32 %v4061_v50, %v1670_v41  ;;  %v2087_v7 = vmul.f32 %v4063_v51, %v1671_v24  ;;  %2480 = vst [vmem:[%s4107_s28 + $0x350] sm:$0xff] %v2096_v38  ;;  %v3156_v41 = vld [vmem:[%s3647_s5 + $0x370] sm:$0xff]  ;;  %v3157_v24 = vld [vmem:[%s3647_s5 + $0x378] sm:$0xff] }
 0x13e   : > { %2481 = vst [vmem:[%s4107_s28 + $0x358] sm:$0xff] %v2097_v42  ;;  %v2088_v32 = vmul.f32 %v4065_v53, %v1672_v44  ;;  %v2089_v11 = vmul.f32 %v4067_v54, %v1673_v48  ;;  %v1688_v14 = vmul.f32 %v3148_v18, %v4417_v35  ;;  %v1689_v60 = vmul.f32 %v3149_v15, %v4417_v35  ;;  %v4603_v42 = vpop.xlane.xlu1 %1197  ;;  %v3159_v8 = vld [vmem:[%s3647_s5 + $0x388] sm:$0xff] }
 0x13f   : > { %v2090_v16 = vmul.f32 %v4069_v56, %v1674_v49  ;;  %v2091_v1 = vmul.f32 %v4071_v57, %v1675_v3  ;;  %2470 = vst [vmem:[%s4107_s28 + $0x300] sm:$0xff] %v2086_v6  ;;  %2471 = vst [vmem:[%s4107_s28 + $0x308] sm:$0xff] %v2087_v7  ;;  %v1690_v20 = vmul.f32 %v3150_v19, %v4417_v35  ;;  %v3160_v6 = vld [vmem:[%s3647_s5 + $0x3f0] sm:$0xff] }
 0x140   : > { %v1691_v23 = vmul.f32 %v3151_v58, %v4417_v35  ;;  %2472 = vst [vmem:[%s4107_s28 + $0x310] sm:$0xff] %v2088_v32  ;;  %2473 = vst [vmem:[%s4107_s28 + $0x318] sm:$0xff] %v2089_v11  ;;  %v1692_v21 = vmul.f32 %v3152_v59, %v4417_v35  ;;  %v1693_v4 = vmul.f32 %v3153_v25, %v4417_v35  ;;  %v3161_v32 = vld [vmem:[%s3647_s5 + $0x3f8] sm:$0xff] }
 0x141   : > { %v2104_v63 = vmul.f32 %v4061_v50, %v1688_v14  ;;  %v2105_v39 = vmul.f32 %v4063_v51, %v1689_v60  ;;  %2474 = vst [vmem:[%s4107_s28 + $0x320] sm:$0xff] %v2090_v16  ;;  %2475 = vst [vmem:[%s4107_s28 + $0x328] sm:$0xff] %v2091_v1  ;;  %v2106_v2 = vmul.f32 %v4065_v53, %v1690_v20  ;;  %v3162_v14 = vld [vmem:[%s3647_s5 + $0x400] sm:$0xff]  ;;  %v3163_v60 = vld [vmem:[%s3647_s5 + $0x408] sm:$0xff] }
 0x142   : > { %v2107_v62 = vmul.f32 %v4067_v54, %v1691_v23  ;;  %v1682_v0 = vmul.f32 %v3154_v26, %v4425_v10  ;;  %v1683_v35 = vmul.f32 %v3155_v27, %v4425_v10  ;;  %v2108_v29 = vmul.f32 %v4069_v56, %v1692_v21  ;;  %v3164_v1 = vld [vmem:[%s3647_s5 + $0x410] sm:$0xff]  ;;  %v3165_v20 = vld [vmem:[%s3647_s5 + $0x418] sm:$0xff] }
 0x143   : > { %v2109_v22 = vmul.f32 %v4071_v57, %v1693_v4  ;;  %2488 = vst [vmem:[%s4107_s28 + $0x390] sm:$0xff] %v2104_v63  ;;  %2489 = vst [vmem:[%s4107_s28 + $0x398] sm:$0xff] %v2105_v39  ;;  %v1684_v36 = vmul.f32 %v3156_v41, %v4425_v10  ;;  %v1685_v38 = vmul.f32 %v3157_v24, %v4425_v10  ;;  %v1473_v4 = vadd.f32 1e-05, %v4357_v28  ;;  %v1191_v63 = vpop.xlane.xlu0 %1190 }
 0x144   : > { %2490 = vst [vmem:[%s4107_s28 + $0x3a0] sm:$0xff] %v2106_v2  ;;  %2491 = vst [vmem:[%s4107_s28 + $0x3a8] sm:$0xff] %v2107_v62  ;;  %v1686_v44 = vmul.f32 %v3158_v43, %v4425_v10  ;;  %v1687_v48 = vmul.f32 %v3159_v8, %v4425_v10  ;;  %v2098_v55 = vmul.f32 %v4061_v50, %v1682_v0  ;;  %v1472_v2 = vadd.f32 1e-05, %v4367_v31  ;;  %v1212_v62 = vpop.xlane.xlu1 %1211 }
 0x145   : > { %v2099_v49 = vmul.f32 %v4063_v51, %v1683_v35  ;;  %2492 = vst [vmem:[%s4107_s28 + $0x3b0] sm:$0xff] %v2108_v29  ;;  %2493 = vst [vmem:[%s4107_s28 + $0x3b8] sm:$0xff] %v2109_v22  ;;  %v2100_v33 = vmul.f32 %v4065_v53, %v1684_v36  ;;  %v2101_v3 = vmul.f32 %v4067_v54, %v1685_v38  ;;  %v1413_v28 = vmul.f32 0.0013020834, %v4447_v13  ;;  %v2955_v22 = vpop.eup %2954 }
 0x146   : > { %v1700_v7 = vmul.f32 %v3160_v6, %v4437_v52  ;;  %v1701_v10 = vmul.f32 %v3161_v32, %v4437_v52  ;;  %v2102_v11 = vmul.f32 %v4069_v56, %v1686_v44  ;;  %v2103_v18 = vmul.f32 %v4071_v57, %v1687_v48  ;;  %2482 = vst [vmem:[%s4107_s28 + $0x360] sm:$0xff] %v2098_v55  ;;  %v2957_v38 = vpop.eup %2956  ;;  %v3167_v44 = vld [vmem:[%s3647_s5 + $0x3c8] sm:$0xff]  ;;  %v3168_v48 = vld [vmem:[%s3647_s5 + $0x3d0] sm:$0xff]  ;;  %v3170_v6 = vld [vmem:[%s3647_s5 + $0x3e0] sm:$0xff] }
 0x147   : > { %2483 = vst [vmem:[%s4107_s28 + $0x368] sm:$0xff] %v2099_v49  ;;  %v1702_v15 = vmul.f32 %v3162_v14, %v4437_v52  ;;  %v1703_v16 = vmul.f32 %v3163_v60, %v4437_v52  ;;  %2484 = vst [vmem:[%s4107_s28 + $0x370] sm:$0xff] %v2100_v33  ;;  %v1704_v19 = vmul.f32 %v3164_v1, %v4437_v52  ;;  %v1412_v26 = vmul.f32 0.0013020834, %v4489_v45  ;;  %v1205_v30 = vpop.xlane.xlu0 %1204  ;;  %v3169_v49 = vld [vmem:[%s3647_s5 + $0x3d8] sm:$0xff]  ;;  %v3171_v32 = vld [vmem:[%s3647_s5 + $0x3e8] sm:$0xff] }
 0x148   : > { %2485 = vst [vmem:[%s4107_s28 + $0x378] sm:$0xff] %v2101_v3  ;;  %v1705_v58 = vmul.f32 %v3165_v20, %v4437_v52  ;;  %v2116_v23 = vmul.f32 %v4061_v50, %v1700_v7  ;;  %v2117_v59 = vmul.f32 %v4063_v51, %v1701_v10  ;;  %2486 = vst [vmem:[%s4107_s28 + $0x380] sm:$0xff] %v2102_v11  ;;  %v1475_v0 = vadd.f32 1e-05, %v4369_v34  ;;  %v1226_v34 = vpop.xlane.xlu1 %1225  ;;  %v2959_v3 = vpop.eup %2958  ;;  %v3172_v11 = vld [vmem:[%s3647_s5 + $0x450] sm:$0xff]  ;;  %v3173_v14 = vld [vmem:[%s3647_s5 + $0x458] sm:$0xff] }
 0x149   : > { %2487 = vst [vmem:[%s4107_s28 + $0x388] sm:$0xff] %v2103_v18  ;;  %v2118_v21 = vmul.f32 %v4065_v53, %v1702_v15  ;;  %v2119_v25 = vmul.f32 %v4067_v54, %v1703_v16  ;;  %v2120_v52 = vmul.f32 %v4069_v56, %v1704_v19  ;;  %v1474_v31 = vadd.f32 1e-05, %v1410_v17  ;;  %v4691_v60 = vpop.eup %2960 }
 0x14a   : > { %v2121_v39 = vmul.f32 %v4071_v57, %v1705_v58  ;;  %2500 = vst [vmem:[%s4107_s28 + $0x3f0] sm:$0xff] %v2116_v23  ;;  %2501 = vst [vmem:[%s4107_s28 + $0x3f8] sm:$0xff] %v2117_v59  ;;  %v1414_v27 = vmul.f32 0.0013020834, %v4541_v37  ;;  %2964 = vrsqrt.f32 %v1473_v4  ;;  %v1477_v47 = vadd.f32 1e-05, %v1413_v28  ;;  %v4697_v58 = vpop.eup %2962 }
 0x14b   : > { %2502 = vst [vmem:[%s4107_s28 + $0x400] sm:$0xff] %v2118_v21  ;;  %2503 = vst [vmem:[%s4107_s28 + $0x408] sm:$0xff] %v2119_v25  ;;  %2966 = vrsqrt.f32 %v1472_v2  ;;  %v1476_v13 = vadd.f32 1e-05, %v1412_v26  ;;  %v1416_v45 = vmul.f32 0.0013020834, %v4593_v46  ;;  %v1695_v8 = vmul.f32 %v3167_v44, %v2955_v22 }
 0x14c   : > { %2504 = vst [vmem:[%s4107_s28 + $0x410] sm:$0xff] %v2120_v52  ;;  %2505 = vst [vmem:[%s4107_s28 + $0x418] sm:$0xff] %v2121_v39  ;;  %v1419_v35 = vmul.f32 0.0013020834, %v4603_v42  ;;  %2968 = vrsqrt.f32 %v1475_v0  ;;  %v4667_v5 = vadd.f32 1e-05, %v1414_v27  ;;  %v1696_v55 = vmul.f32 %v3168_v48, %v2955_v22 }
 0x14d   : > { %2970 = vrsqrt.f32 %v1474_v31  ;;  %v4669_v37 = vadd.f32 1e-05, %v1417_v61  ;;  %v4671_v12 = vmul.f32 0.0013020834, %v1191_v63  ;;  %v4673_v46 = vmul.f32 0.0013020834, %v1212_v62 }
 0x14e   : > { %2972 = vrsqrt.f32 %v1477_v47  ;;  %v4675_v29 = vmul.f32 0.0013020834, %v1205_v30  ;;  %v4677_v41 = vadd.f32 1e-05, %v1416_v45  ;;  %v4679_v36 = vadd.f32 1e-05, %v1419_v35 }
 0x14f   : > { %2974 = vrsqrt.f32 %v1476_v13  ;;  %v4681_v24 = vmul.f32 0.0013020834, %v1226_v34  ;;  %v3166_v42 = vld [vmem:[%s3647_s5 + $0x3c0] sm:$0xff]  ;;  %v1697_v33 = vmul.f32 %v3169_v49, %v2955_v22  ;;  %v1698_v7 = vmul.f32 %v3170_v6, %v2955_v22  ;;  %v3175_v4 = vld [vmem:[%s3647_s5 + $0x468] sm:$0xff]  ;;  %v3176_v39 = vld [vmem:[%s3647_s5 + $0x470] sm:$0xff] }
 0x150   : > { %v1694_v43 = vmul.f32 %v3166_v42, %v2955_v22  ;;  %v1699_v10 = vmul.f32 %v3171_v32, %v2955_v22  ;;  %v1712_v18 = vmul.f32 %v3172_v11, %v2957_v38  ;;  %v1713_v15 = vmul.f32 %v3173_v14, %v2957_v38  ;;  %v3174_v21 = vld [vmem:[%s3647_s5 + $0x460] sm:$0xff]  ;;  %v3177_v62 = vld [vmem:[%s3647_s5 + $0x478] sm:$0xff]  ;;  %v3179_v47 = vld [vmem:[%s3647_s5 + $0x428] sm:$0xff] }
 0x151   : > { %v2111_v1 = vmul.f32 %v4063_v51, %v1695_v8  ;;  %v2112_v19 = vmul.f32 %v4065_v53, %v1696_v55  ;;  %v2113_v20 = vmul.f32 %v4067_v54, %v1697_v33  ;;  %v2114_v23 = vmul.f32 %v4069_v56, %v1698_v7  ;;  %v3178_v27 = vld [vmem:[%s3647_s5 + $0x420] sm:$0xff]  ;;  %v3180_v34 = vld [vmem:[%s3647_s5 + $0x430] sm:$0xff]  ;;  %v3183_v48 = vld [vmem:[%s3647_s5 + $0x448] sm:$0xff] }
 0x152   : > { %v2110_v16 = vmul.f32 %v4061_v50, %v1694_v43  ;;  %v2115_v59 = vmul.f32 %v4071_v57, %v1699_v10  ;;  %v1714_v25 = vmul.f32 %v3174_v21, %v2957_v38  ;;  %v1715_v63 = vmul.f32 %v3175_v4, %v2957_v38  ;;  %v3182_v44 = vld [vmem:[%s3647_s5 + $0x440] sm:$0xff]  ;;  %v3184_v10 = vld [vmem:[%s3647_s5 + $0x4b0] sm:$0xff]  ;;  %v3185_v11 = vld [vmem:[%s3647_s5 + $0x4b8] sm:$0xff] }
 0x153   : > { %2495 = vst [vmem:[%s4107_s28 + $0x3c8] sm:$0xff] %v2111_v1  ;;  %2496 = vst [vmem:[%s4107_s28 + $0x3d0] sm:$0xff] %v2112_v19  ;;  %v1716_v2 = vmul.f32 %v3176_v39, %v2957_v38  ;;  %v1717_v17 = vmul.f32 %v3177_v62, %v2957_v38  ;;  %v2128_v28 = vmul.f32 %v4061_v50, %v1712_v18  ;;  %v3181_v38 = vld [vmem:[%s3647_s5 + $0x438] sm:$0xff]  ;;  %v3186_v1 = vld [vmem:[%s3647_s5 + $0x4c0] sm:$0xff]  ;;  %2976 = vrsqrt.f32 %v4665_v40 }
 0x154   : > { %v4703_v52 = vpop.eup %2964  ;;  %2494 = vst [vmem:[%s4107_s28 + $0x3c0] sm:$0xff] %v2110_v16  ;;  %2497 = vst [vmem:[%s4107_s28 + $0x3d8] sm:$0xff] %v2113_v20  ;;  %v2129_v26 = vmul.f32 %v4063_v51, %v1713_v15  ;;  %v2130_v9 = vmul.f32 %v4065_v53, %v1714_v25  ;;  %v2131_v31 = vmul.f32 %v4067_v54, %v1715_v63  ;;  %v3187_v20 = vld [vmem:[%s3647_s5 + $0x4c8] sm:$0xff]  ;;  %v3189_v25 = vld [vmem:[%s3647_s5 + $0x4d8] sm:$0xff]  ;;  %2978 = vrsqrt.f32 %v4667_v5 }
 0x155   : > { %v4713_v0 = vpop.eup %2966  ;;  %2498 = vst [vmem:[%s4107_s28 + $0x3e0] sm:$0xff] %v2114_v23  ;;  %2499 = vst [vmem:[%s4107_s28 + $0x3e8] sm:$0xff] %v2115_v59  ;;  %v1706_v61 = vmul.f32 %v3178_v27, %v2959_v3  ;;  %v1707_v13 = vmul.f32 %v3179_v47, %v2959_v3  ;;  %v2132_v35 = vmul.f32 %v4069_v56, %v1716_v2  ;;  %v3188_v59 = vld [vmem:[%s3647_s5 + $0x4d0] sm:$0xff]  ;;  %v3193_v47 = vld [vmem:[%s3647_s5 + $0x498] sm:$0xff]  ;;  %2980 = vrsqrt.f32 %v4669_v37 }
 0x156   : > { %v4721_v45 = vpop.eup %2968  ;;  %v2133_v30 = vmul.f32 %v4071_v57, %v1717_v17  ;;  %2512 = vst [vmem:[%s4107_s28 + $0x450] sm:$0xff] %v2128_v28  ;;  %2513 = vst [vmem:[%s4107_s28 + $0x458] sm:$0xff] %v2129_v26  ;;  %v1708_v22 = vmul.f32 %v3180_v34, %v2959_v3  ;;  %v1709_v42 = vmul.f32 %v3181_v38, %v2959_v3  ;;  %v3190_v17 = vld [vmem:[%s3647_s5 + $0x480] sm:$0xff]  ;;  %v3191_v26 = vld [vmem:[%s3647_s5 + $0x488] sm:$0xff]  ;;  %v1485_v40 = vadd.f32 1e-05, %v4673_v46 }
 0x157   : > { %v4729_v43 = vpop.eup %2970  ;;  %2514 = vst [vmem:[%s4107_s28 + $0x460] sm:$0xff] %v2130_v9  ;;  %2515 = vst [vmem:[%s4107_s28 + $0x468] sm:$0xff] %v2131_v31  ;;  %v1710_v8 = vmul.f32 %v3182_v44, %v2959_v3  ;;  %v1711_v55 = vmul.f32 %v3183_v48, %v2959_v3  ;;  %v2122_v49 = vmul.f32 %v4061_v50, %v1706_v61  ;;  %v3192_v27 = vld [vmem:[%s3647_s5 + $0x490] sm:$0xff]  ;;  %v3195_v34 = vld [vmem:[%s3647_s5 + $0x4a8] sm:$0xff]  ;;  %2982 = vrsqrt.f32 %v4677_v41 }
 0x158   : > { %v2123_v33 = vmul.f32 %v4063_v51, %v1707_v13  ;;  %v4737_v6 = vpop.eup %2972  ;;  %2516 = vst [vmem:[%s4107_s28 + $0x470] sm:$0xff] %v2132_v35  ;;  %2517 = vst [vmem:[%s4107_s28 + $0x478] sm:$0xff] %v2133_v30  ;;  %v2124_v7 = vmul.f32 %v4065_v53, %v1708_v22  ;;  %v2125_v32 = vmul.f32 %v4067_v54, %v1709_v42  ;;  %v3194_v35 = vld [vmem:[%s3647_s5 + $0x4a0] sm:$0xff]  ;;  %v3196_v48 = vld [vmem:[%s3647_s5 + $0x510] sm:$0xff]  ;;  %2984 = vrsqrt.f32 %v4679_v36 }
 0x159   : > { %v1724_v3 = vmul.f32 %v3184_v10, %v4691_v60  ;;  %v1725_v18 = vmul.f32 %v3185_v11, %v4691_v60  ;;  %v4747_v14 = vpop.eup %2974  ;;  %v2126_v15 = vmul.f32 %v4069_v56, %v1710_v8  ;;  %v2127_v16 = vmul.f32 %v4071_v57, %v1711_v55  ;;  %2506 = vst [vmem:[%s4107_s28 + $0x420] sm:$0xff] %v2122_v49  ;;  %v3197_v49 = vld [vmem:[%s3647_s5 + $0x518] sm:$0xff]  ;;  %v3198_v10 = vld [vmem:[%s3647_s5 + $0x520] sm:$0xff]  ;;  %v3199_v11 = vld [vmem:[%s3647_s5 + $0x528] sm:$0xff] }
 0x15a   : > { %2507 = vst [vmem:[%s4107_s28 + $0x428] sm:$0xff] %v2123_v33  ;;  %v1726_v19 = vmul.f32 %v3186_v1, %v4691_v60  ;;  %v1727_v23 = vmul.f32 %v3187_v20, %v4691_v60  ;;  %2508 = vst [vmem:[%s4107_s28 + $0x430] sm:$0xff] %v2124_v7  ;;  %v1728_v21 = vmul.f32 %v3188_v59, %v4691_v60  ;;  %v4797_v33 = vpop.xlane.xlu0 %1218  ;;  %v1487_v5 = vadd.f32 1e-05, %v4681_v24 }
 0x15b   : > { %2509 = vst [vmem:[%s4107_s28 + $0x438] sm:$0xff] %v2125_v32  ;;  %v1729_v4 = vmul.f32 %v3189_v25, %v4691_v60  ;;  %v2140_v63 = vmul.f32 %v4061_v50, %v1724_v3  ;;  %v2141_v39 = vmul.f32 %v4063_v51, %v1725_v18  ;;  %2510 = vst [vmem:[%s4107_s28 + $0x440] sm:$0xff] %v2126_v15  ;;  %v4807_v15 = vpop.xlane.xlu1 %1239 }
 0x15c   : > { %2511 = vst [vmem:[%s4107_s28 + $0x448] sm:$0xff] %v2127_v16  ;;  %v2142_v2 = vmul.f32 %v4065_v53, %v1726_v19  ;;  %v2143_v62 = vmul.f32 %v4067_v54, %v1727_v23  ;;  %v1718_v28 = vmul.f32 %v3190_v17, %v4697_v58  ;;  %v1719_v60 = vmul.f32 %v3191_v26, %v4697_v58  ;;  %v3200_v16 = vld [vmem:[%s3647_s5 + $0x530] sm:$0xff]  ;;  %v3201_v19 = vld [vmem:[%s3647_s5 + $0x538] sm:$0xff] }
 0x15d   : > { %v2144_v9 = vmul.f32 %v4069_v56, %v1728_v21  ;;  %v2145_v31 = vmul.f32 %v4071_v57, %v1729_v4  ;;  %2524 = vst [vmem:[%s4107_s28 + $0x4b0] sm:$0xff] %v2140_v63  ;;  %2525 = vst [vmem:[%s4107_s28 + $0x4b8] sm:$0xff] %v2141_v39  ;;  %v1720_v61 = vmul.f32 %v3192_v27, %v4697_v58  ;;  %v3202_v4 = vld [vmem:[%s3647_s5 + $0x4e0] sm:$0xff]  ;;  %v3203_v39 = vld [vmem:[%s3647_s5 + $0x4e8] sm:$0xff] }
 0x15e   : > { %v1721_v13 = vmul.f32 %v3193_v47, %v4697_v58  ;;  %2526 = vst [vmem:[%s4107_s28 + $0x4c0] sm:$0xff] %v2142_v2  ;;  %2527 = vst [vmem:[%s4107_s28 + $0x4c8] sm:$0xff] %v2143_v62  ;;  %v1722_v30 = vmul.f32 %v3194_v35, %v4697_v58  ;;  %v1723_v22 = vmul.f32 %v3195_v34, %v4697_v58  ;;  %v3204_v17 = vld [vmem:[%s3647_s5 + $0x4f0] sm:$0xff]  ;;  %v3205_v26 = vld [vmem:[%s3647_s5 + $0x4f8] sm:$0xff] }
 0x15f   : > { %v2134_v38 = vmul.f32 %v4061_v50, %v1718_v28  ;;  %v2135_v42 = vmul.f32 %v4063_v51, %v1719_v60  ;;  %2528 = vst [vmem:[%s4107_s28 + $0x4d0] sm:$0xff] %v2144_v9  ;;  %2529 = vst [vmem:[%s4107_s28 + $0x4d8] sm:$0xff] %v2145_v31  ;;  %v2136_v44 = vmul.f32 %v4065_v53, %v1720_v61  ;;  %v3206_v9 = vld [vmem:[%s3647_s5 + $0x500] sm:$0xff]  ;;  %v3207_v27 = vld [vmem:[%s3647_s5 + $0x508] sm:$0xff] }
 0x160   : > { %v2137_v8 = vmul.f32 %v4067_v54, %v1721_v13  ;;  %v1736_v55 = vmul.f32 %v3196_v48, %v4703_v52  ;;  %v1737_v58 = vmul.f32 %v3197_v49, %v4703_v52  ;;  %v2138_v7 = vmul.f32 %v4069_v56, %v1722_v30  ;;  %v3208_v34 = vld [vmem:[%s3647_s5 + $0x570] sm:$0xff]  ;;  %v3210_v48 = vld [vmem:[%s3647_s5 + $0x580] sm:$0xff]  ;;  %v3211_v49 = vld [vmem:[%s3647_s5 + $0x588] sm:$0xff] }
 0x161   : > { %v2139_v32 = vmul.f32 %v4071_v57, %v1723_v22  ;;  %2518 = vst [vmem:[%s4107_s28 + $0x480] sm:$0xff] %v2134_v38  ;;  %2519 = vst [vmem:[%s4107_s28 + $0x488] sm:$0xff] %v2135_v42  ;;  %v1738_v3 = vmul.f32 %v3198_v10, %v4703_v52  ;;  %v1739_v18 = vmul.f32 %v3199_v11, %v4703_v52  ;;  %v3209_v38 = vld [vmem:[%s3647_s5 + $0x578] sm:$0xff]  ;;  %v4849_v42 = vpop.xlane.xlu0 %1232 }
 0x162   : > { %2520 = vst [vmem:[%s4107_s28 + $0x490] sm:$0xff] %v2136_v44  ;;  %2521 = vst [vmem:[%s4107_s28 + $0x498] sm:$0xff] %v2137_v8  ;;  %v1740_v1 = vmul.f32 %v3200_v16, %v4703_v52  ;;  %v1741_v20 = vmul.f32 %v3201_v19, %v4703_v52  ;;  %v2152_v23 = vmul.f32 %v4061_v50, %v1736_v55 }
 0x163   : > { %v2153_v59 = vmul.f32 %v4063_v51, %v1737_v58  ;;  %2522 = vst [vmem:[%s4107_s28 + $0x4a0] sm:$0xff] %v2138_v7  ;;  %2523 = vst [vmem:[%s4107_s28 + $0x4a8] sm:$0xff] %v2139_v32  ;;  %v2154_v21 = vmul.f32 %v4065_v53, %v1738_v3  ;;  %v2155_v25 = vmul.f32 %v4067_v54, %v1739_v18  ;;  %v4859_v7 = vpop.xlane.xlu1 %1253  ;;  %v3212_v32 = vld [vmem:[%s3647_s5 + $0x590] sm:$0xff]  ;;  %v3213_v3 = vld [vmem:[%s3647_s5 + $0x598] sm:$0xff] }
 0x164   : > { %v1730_v63 = vmul.f32 %v3202_v4, %v4713_v0  ;;  %v1731_v52 = vmul.f32 %v3203_v39, %v4713_v0  ;;  %v2156_v2 = vmul.f32 %v4069_v56, %v1740_v1  ;;  %v2157_v62 = vmul.f32 %v4071_v57, %v1741_v20  ;;  %2536 = vst [vmem:[%s4107_s28 + $0x510] sm:$0xff] %v2152_v23  ;;  %v3214_v20 = vld [vmem:[%s3647_s5 + $0x540] sm:$0xff]  ;;  %v3216_v4 = vld [vmem:[%s3647_s5 + $0x550] sm:$0xff]  ;;  %v3217_v39 = vld [vmem:[%s3647_s5 + $0x558] sm:$0xff] }
 0x165   : > { %2537 = vst [vmem:[%s4107_s28 + $0x518] sm:$0xff] %v2153_v59  ;;  %v1732_v28 = vmul.f32 %v3204_v17, %v4713_v0  ;;  %v1733_v60 = vmul.f32 %v3205_v26, %v4713_v0  ;;  %2538 = vst [vmem:[%s4107_s28 + $0x520] sm:$0xff] %v2154_v21  ;;  %v1734_v31 = vmul.f32 %v3206_v9, %v4713_v0  ;;  %v3215_v59 = vld [vmem:[%s3647_s5 + $0x548] sm:$0xff] }
 0x166   : > { %2539 = vst [vmem:[%s4107_s28 + $0x528] sm:$0xff] %v2155_v25  ;;  %v1735_v61 = vmul.f32 %v3207_v27, %v4713_v0  ;;  %v2146_v47 = vmul.f32 %v4061_v50, %v1730_v63  ;;  %v2147_v13 = vmul.f32 %v4063_v51, %v1731_v52  ;;  %2540 = vst [vmem:[%s4107_s28 + $0x530] sm:$0xff] %v2156_v2  ;;  %v3218_v2 = vld [vmem:[%s3647_s5 + $0x560] sm:$0xff]  ;;  %v3219_v17 = vld [vmem:[%s3647_s5 + $0x568] sm:$0xff] }
 0x167   : > { %2541 = vst [vmem:[%s4107_s28 + $0x538] sm:$0xff] %v2157_v62  ;;  %v2148_v35 = vmul.f32 %v4065_v53, %v1732_v28  ;;  %v2149_v30 = vmul.f32 %v4067_v54, %v1733_v60  ;;  %v1748_v22 = vmul.f32 %v3208_v34, %v4721_v45  ;;  %v1749_v0 = vmul.f32 %v3209_v38, %v4721_v45  ;;  %v3220_v27 = vld [vmem:[%s3647_s5 + $0x5d0] sm:$0xff]  ;;  %v3222_v34 = vld [vmem:[%s3647_s5 + $0x5e0] sm:$0xff]  ;;  %v3223_v38 = vld [vmem:[%s3647_s5 + $0x5e8] sm:$0xff] }
 0x168   : > { %v2150_v44 = vmul.f32 %v4069_v56, %v1734_v31  ;;  %v2151_v8 = vmul.f32 %v4071_v57, %v1735_v61  ;;  %2530 = vst [vmem:[%s4107_s28 + $0x4e0] sm:$0xff] %v2146_v47  ;;  %2531 = vst [vmem:[%s4107_s28 + $0x4e8] sm:$0xff] %v2147_v13  ;;  %v1750_v55 = vmul.f32 %v3210_v48, %v4721_v45  ;;  %v3221_v47 = vld [vmem:[%s3647_s5 + $0x5d8] sm:$0xff]  ;;  %v4901_v13 = vpop.xlane.xlu0 %1246 }
 0x169   : > { %v1751_v58 = vmul.f32 %v3211_v49, %v4721_v45  ;;  %2532 = vst [vmem:[%s4107_s28 + $0x4f0] sm:$0xff] %v2148_v35  ;;  %2533 = vst [vmem:[%s4107_s28 + $0x4f8] sm:$0xff] %v2149_v30  ;;  %v1752_v10 = vmul.f32 %v3212_v32, %v4721_v45  ;;  %v1753_v11 = vmul.f32 %v3213_v3, %v4721_v45  ;;  %v1426_v46 = vmul.f32 0.0013020834, %v4901_v13 }
 0x16a   : > { %v2164_v18 = vmul.f32 %v4061_v50, %v1748_v22  ;;  %v2165_v16 = vmul.f32 %v4063_v51, %v1749_v0  ;;  %2534 = vst [vmem:[%s4107_s28 + $0x500] sm:$0xff] %v2150_v44  ;;  %2535 = vst [vmem:[%s4107_s28 + $0x508] sm:$0xff] %v2151_v8  ;;  %v2166_v1 = vmul.f32 %v4065_v53, %v1750_v55  ;;  %v1268_v44 = vpop.xlane.xlu1 %1267  ;;  %v3224_v8 = vld [vmem:[%s3647_s5 + $0x5f0] sm:$0xff]  ;;  %v3225_v55 = vld [vmem:[%s3647_s5 + $0x5f8] sm:$0xff] }
 0x16b   : > { %v2167_v19 = vmul.f32 %v4067_v54, %v1751_v58  ;;  %v1742_v23 = vmul.f32 %v3214_v20, %v4729_v43  ;;  %v1743_v45 = vmul.f32 %v3215_v59, %v4729_v43  ;;  %v2168_v21 = vmul.f32 %v4069_v56, %v1752_v10  ;;  %v3228_v20 = vld [vmem:[%s3647_s5 + $0x5b0] sm:$0xff]  ;;  %v3229_v59 = vld [vmem:[%s3647_s5 + $0x5b8] sm:$0xff] }
 0x16c   : > { %v2169_v25 = vmul.f32 %v4071_v57, %v1753_v11  ;;  %2548 = vst [vmem:[%s4107_s28 + $0x570] sm:$0xff] %v2164_v18  ;;  %2549 = vst [vmem:[%s4107_s28 + $0x578] sm:$0xff] %v2165_v16  ;;  %v1744_v63 = vmul.f32 %v3216_v4, %v4729_v43  ;;  %v1745_v52 = vmul.f32 %v3217_v39, %v4729_v43  ;;  %v3226_v11 = vld [vmem:[%s3647_s5 + $0x5a0] sm:$0xff]  ;;  %v3227_v16 = vld [vmem:[%s3647_s5 + $0x5a8] sm:$0xff] }
 0x16d   : > { %2550 = vst [vmem:[%s4107_s28 + $0x580] sm:$0xff] %v2166_v1  ;;  %2551 = vst [vmem:[%s4107_s28 + $0x588] sm:$0xff] %v2167_v19  ;;  %v1746_v62 = vmul.f32 %v3218_v2, %v4729_v43  ;;  %v1747_v28 = vmul.f32 %v3219_v17, %v4729_v43  ;;  %v2158_v26 = vmul.f32 %v4061_v50, %v1742_v23  ;;  %v3231_v4 = vld [vmem:[%s3647_s5 + $0x5c8] sm:$0xff]  ;;  %v1482_v17 = vadd.f32 1e-05, %v4671_v12 }
 0x16e   : > { %v2159_v60 = vmul.f32 %v4063_v51, %v1743_v45  ;;  %2552 = vst [vmem:[%s4107_s28 + $0x590] sm:$0xff] %v2168_v21  ;;  %2553 = vst [vmem:[%s4107_s28 + $0x598] sm:$0xff] %v2169_v25  ;;  %v2160_v9 = vmul.f32 %v4065_v53, %v1744_v63  ;;  %v2161_v31 = vmul.f32 %v4067_v54, %v1745_v52  ;;  %v3230_v21 = vld [vmem:[%s3647_s5 + $0x5c0] sm:$0xff]  ;;  %v1425_v12 = vmul.f32 0.0013020834, %v4807_v15 }
 0x16f   : > { %v1760_v61 = vmul.f32 %v3220_v27, %v4737_v6  ;;  %v1761_v43 = vmul.f32 %v3221_v47, %v4737_v6  ;;  %v2162_v35 = vmul.f32 %v4069_v56, %v1746_v62  ;;  %v2163_v30 = vmul.f32 %v4071_v57, %v1747_v28  ;;  %2542 = vst [vmem:[%s4107_s28 + $0x540] sm:$0xff] %v2158_v26  ;;  %v1261_v28 = vpop.xlane.xlu0 %1260 }
 0x170   : > { %2543 = vst [vmem:[%s4107_s28 + $0x548] sm:$0xff] %v2159_v60  ;;  %v1762_v22 = vmul.f32 %v3222_v34, %v4737_v6  ;;  %v1763_v0 = vmul.f32 %v3223_v38, %v4737_v6  ;;  %2544 = vst [vmem:[%s4107_s28 + $0x550] sm:$0xff] %v2160_v9  ;;  %v1764_v48 = vmul.f32 %v3224_v8, %v4737_v6  ;;  %v1422_v60 = vmul.f32 0.0013020834, %v4797_v33  ;;  %v1282_v9 = vpop.xlane.xlu1 %1281  ;;  %v3233_v8 = vld [vmem:[%s3647_s5 + $0x638] sm:$0xff] }
 0x171   : > { %2545 = vst [vmem:[%s4107_s28 + $0x558] sm:$0xff] %v2161_v31  ;;  %v1765_v49 = vmul.f32 %v3225_v55, %v4737_v6  ;;  %v2176_v58 = vmul.f32 %v4061_v50, %v1760_v61  ;;  %v2177_v32 = vmul.f32 %v4063_v51, %v1761_v43  ;;  %2546 = vst [vmem:[%s4107_s28 + $0x560] sm:$0xff] %v2162_v35  ;;  %v1484_v31 = vadd.f32 1e-05, %v4675_v29  ;;  %v2977_v35 = vpop.eup %2976  ;;  %v3234_v55 = vld [vmem:[%s3647_s5 + $0x640] sm:$0xff] }
 0x172   : > { %2547 = vst [vmem:[%s4107_s28 + $0x568] sm:$0xff] %v2163_v30  ;;  %v2178_v10 = vmul.f32 %v4065_v53, %v1762_v22  ;;  %v2179_v3 = vmul.f32 %v4067_v54, %v1763_v0  ;;  %v1754_v18 = vmul.f32 %v3226_v11, %v4747_v14  ;;  %v1755_v6 = vmul.f32 %v3227_v16, %v4747_v14  ;;  %v2979_v38 = vpop.eup %2978  ;;  %v3232_v0 = vld [vmem:[%s3647_s5 + $0x630] sm:$0xff] }
 0x173   : > { %v2180_v1 = vmul.f32 %v4069_v56, %v1764_v48  ;;  %v2181_v19 = vmul.f32 %v4071_v57, %v1765_v49  ;;  %2560 = vst [vmem:[%s4107_s28 + $0x5d0] sm:$0xff] %v2176_v58  ;;  %2561 = vst [vmem:[%s4107_s28 + $0x5d8] sm:$0xff] %v2177_v32  ;;  %v1756_v23 = vmul.f32 %v3228_v20, %v4747_v14  ;;  %v1424_v33 = vmul.f32 0.0013020834, %v4849_v42  ;;  %v1275_v41 = vpop.xlane.xlu0 %1274  ;;  %v3235_v58 = vld [vmem:[%s3647_s5 + $0x648] sm:$0xff] }
 0x174   : > { %v1757_v45 = vmul.f32 %v3229_v59, %v4747_v14  ;;  %2562 = vst [vmem:[%s4107_s28 + $0x5e0] sm:$0xff] %v2178_v10  ;;  %2563 = vst [vmem:[%s4107_s28 + $0x5e8] sm:$0xff] %v2179_v3  ;;  %v1758_v25 = vmul.f32 %v3230_v21, %v4747_v14  ;;  %v1759_v63 = vmul.f32 %v3231_v4, %v4747_v14  ;;  %v1427_v27 = vmul.f32 0.0013020834, %v4859_v7  ;;  %v1296_v29 = vpop.xlane.xlu1 %1295  ;;  %v2981_v10 = vpop.eup %2980  ;;  %v3236_v3 = vld [vmem:[%s3647_s5 + $0x650] sm:$0xff] }
 0x175   : > { %v2170_v39 = vmul.f32 %v4061_v50, %v1754_v18  ;;  %v2171_v52 = vmul.f32 %v4063_v51, %v1755_v6  ;;  %2564 = vst [vmem:[%s4107_s28 + $0x5f0] sm:$0xff] %v2180_v1  ;;  %2565 = vst [vmem:[%s4107_s28 + $0x5f8] sm:$0xff] %v2181_v19  ;;  %v2172_v2 = vmul.f32 %v4065_v53, %v1756_v23  ;;  %2986 = vrsqrt.f32 %v1482_v17  ;;  %v3237_v18 = vld [vmem:[%s3647_s5 + $0x658] sm:$0xff]  ;;  %v3238_v6 = vld [vmem:[%s3647_s5 + $0x600] sm:$0xff]  ;;  %v4993_v23 = vpop.eup %2982 }
 0x176   : > { %v2173_v62 = vmul.f32 %v4067_v54, %v1757_v45  ;;  %v2174_v14 = vmul.f32 %v4069_v56, %v1758_v25  ;;  %v2175_v26 = vmul.f32 %v4071_v57, %v1759_v63  ;;  %v1486_v37 = vadd.f32 1e-05, %v1422_v60  ;;  %v3239_v19 = vld [vmem:[%s3647_s5 + $0x608] sm:$0xff]  ;;  %v4999_v4 = vpop.eup %2984 }
 0x177   : > { %2554 = vst [vmem:[%s4107_s28 + $0x5a0] sm:$0xff] %v2170_v39  ;;  %2555 = vst [vmem:[%s4107_s28 + $0x5a8] sm:$0xff] %v2171_v52  ;;  %v1429_v61 = vmul.f32 0.0013020834, %v1268_v44  ;;  %2988 = vrsqrt.f32 %v1485_v40  ;;  %v1489_v15 = vadd.f32 1e-05, %v1425_v12  ;;  %v1772_v44 = vmul.f32 %v3232_v0, %v2977_v35 }
 0x178   : > { %2556 = vst [vmem:[%s4107_s28 + $0x5b0] sm:$0xff] %v2172_v2  ;;  %2557 = vst [vmem:[%s4107_s28 + $0x5b8] sm:$0xff] %v2173_v62  ;;  %v1428_v47 = vmul.f32 0.0013020834, %v1261_v28  ;;  %v1431_v43 = vmul.f32 0.0013020834, %v1282_v9  ;;  %2990 = vrsqrt.f32 %v1484_v31  ;;  %v1773_v48 = vmul.f32 %v3233_v8, %v2977_v35 }
 0x179   : > { %2558 = vst [vmem:[%s4107_s28 + $0x5c0] sm:$0xff] %v2174_v14  ;;  %2559 = vst [vmem:[%s4107_s28 + $0x5c8] sm:$0xff] %v2175_v26  ;;  %2992 = vrsqrt.f32 %v1487_v5  ;;  %v4969_v36 = vadd.f32 1e-05, %v1424_v33  ;;  %v4971_v24 = vadd.f32 1e-05, %v1427_v27  ;;  %v1774_v49 = vmul.f32 %v3234_v55, %v2977_v35 }
 0x17a   : > { %2994 = vrsqrt.f32 %v1486_v37  ;;  %v4973_v42 = vadd.f32 1e-05, %v1426_v46  ;;  %v4975_v7 = vadd.f32 1e-05, %v1429_v61  ;;  %v4977_v13 = vmul.f32 0.0013020834, %v1275_v41 }
 0x17b   : > { %2996 = vrsqrt.f32 %v1489_v15  ;;  %v4979_v30 = vadd.f32 1e-05, %v1428_v47  ;;  %v4981_v34 = vadd.f32 1e-05, %v1431_v43  ;;  %v4983_v22 = vmul.f32 0.0013020834, %v1296_v29 }
 0x17c   : > { %v1775_v32 = vmul.f32 %v3235_v58, %v2977_v35  ;;  %v1776_v11 = vmul.f32 %v3236_v3, %v2977_v35  ;;  %v1777_v16 = vmul.f32 %v3237_v18, %v2977_v35  ;;  %v1766_v1 = vmul.f32 %v3238_v6, %v2979_v38  ;;  %v3240_v52 = vld [vmem:[%s3647_s5 + $0x610] sm:$0xff]  ;;  %v3241_v62 = vld [vmem:[%s3647_s5 + $0x618] sm:$0xff]  ;;  %v3242_v14 = vld [vmem:[%s3647_s5 + $0x620] sm:$0xff] }
 0x17d   : > { %v1767_v20 = vmul.f32 %v3239_v19, %v2979_v38  ;;  %v2188_v59 = vmul.f32 %v4061_v50, %v1772_v44  ;;  %v2189_v45 = vmul.f32 %v4063_v51, %v1773_v48  ;;  %v2190_v21 = vmul.f32 %v4065_v53, %v1774_v49  ;;  %v3243_v60 = vld [vmem:[%s3647_s5 + $0x628] sm:$0xff]  ;;  %v3244_v27 = vld [vmem:[%s3647_s5 + $0x690] sm:$0xff]  ;;  %v3245_v46 = vld [vmem:[%s3647_s5 + $0x698] sm:$0xff] }
 0x17e   : > { %v2191_v25 = vmul.f32 %v4067_v54, %v1775_v32  ;;  %v2192_v63 = vmul.f32 %v4069_v56, %v1776_v11  ;;  %v2193_v39 = vmul.f32 %v4071_v57, %v1777_v16  ;;  %v1768_v2 = vmul.f32 %v3240_v52, %v2979_v38  ;;  %v3246_v41 = vld [vmem:[%s3647_s5 + $0x6a0] sm:$0xff]  ;;  %v3247_v35 = vld [vmem:[%s3647_s5 + $0x6a8] sm:$0xff]  ;;  %v3248_v44 = vld [vmem:[%s3647_s5 + $0x6b0] sm:$0xff] }
 0x17f   : > { %v1769_v17 = vmul.f32 %v3241_v62, %v2979_v38  ;;  %v5005_v28 = vpop.eup %2986  ;;  %2572 = vst [vmem:[%s4107_s28 + $0x630] sm:$0xff] %v2188_v59  ;;  %2573 = vst [vmem:[%s4107_s28 + $0x638] sm:$0xff] %v2189_v45  ;;  %v1770_v26 = vmul.f32 %v3242_v14, %v2979_v38  ;;  %v1771_v9 = vmul.f32 %v3243_v60, %v2979_v38  ;;  %v3249_v48 = vld [vmem:[%s3647_s5 + $0x6b8] sm:$0xff]  ;;  %v3250_v18 = vld [vmem:[%s3647_s5 + $0x660] sm:$0xff]  ;;  %2998 = vrsqrt.f32 %v4969_v36 }
 0x180   : > { %2574 = vst [vmem:[%s4107_s28 + $0x640] sm:$0xff] %v2190_v21  ;;  %2575 = vst [vmem:[%s4107_s28 + $0x648] sm:$0xff] %v2191_v25  ;;  %v2182_v40 = vmul.f32 %v4061_v50, %v1766_v1  ;;  %v2183_v12 = vmul.f32 %v4063_v51, %v1767_v20  ;;  %v2184_v5 = vmul.f32 %v4065_v53, %v1768_v2  ;;  %v3251_v16 = vld [vmem:[%s3647_s5 + $0x668] sm:$0xff]  ;;  %v3252_v59 = vld [vmem:[%s3647_s5 + $0x670] sm:$0xff]  ;;  %3000 = vrsqrt.f32 %v4971_v24 }
 0x181   : > { %v5015_v31 = vpop.eup %2988  ;;  %2576 = vst [vmem:[%s4107_s28 + $0x650] sm:$0xff] %v2192_v63  ;;  %2577 = vst [vmem:[%s4107_s28 + $0x658] sm:$0xff] %v2193_v39  ;;  %v2185_v33 = vmul.f32 %v4067_v54, %v1769_v17  ;;  %v1784_v37 = vmul.f32 %v3244_v27, %v2981_v10  ;;  %v1785_v61 = vmul.f32 %v3245_v46, %v2981_v10  ;;  %v3253_v21 = vld [vmem:[%s3647_s5 + $0x678] sm:$0xff]  ;;  %v5059_v63 = vpop.xlane.xlu0 %1288  ;;  %v3254_v39 = vld [vmem:[%s3647_s5 + $0x680] sm:$0xff]  ;;  %3002 = vrsqrt.f32 %v4973_v42 }
 0x182   : > { %v5023_v15 = vpop.eup %2990  ;;  %v2186_v47 = vmul.f32 %v4069_v56, %v1770_v26  ;;  %v2187_v43 = vmul.f32 %v4071_v57, %v1771_v9  ;;  %2566 = vst [vmem:[%s4107_s28 + $0x600] sm:$0xff] %v2182_v40  ;;  %2567 = vst [vmem:[%s4107_s28 + $0x608] sm:$0xff] %v2183_v12  ;;  %v1786_v29 = vmul.f32 %v3246_v41, %v2981_v10  ;;  %v3255_v2 = vld [vmem:[%s3647_s5 + $0x688] sm:$0xff]  ;;  %v3256_v9 = vld [vmem:[%s3647_s5 + $0x6f0] sm:$0xff]  ;;  %v1494_v36 = vadd.f32 1e-05, %v4977_v13 }
 0x183   : > { %v1787_v38 = vmul.f32 %v3247_v35, %v2981_v10  ;;  %v5031_v0 = vpop.eup %2992  ;;  %2568 = vst [vmem:[%s4107_s28 + $0x610] sm:$0xff] %v2184_v5  ;;  %2569 = vst [vmem:[%s4107_s28 + $0x618] sm:$0xff] %v2185_v33  ;;  %v1788_v8 = vmul.f32 %v3248_v44, %v2981_v10  ;;  %v1789_v55 = vmul.f32 %v3249_v48, %v2981_v10  ;;  %v3257_v12 = vld [vmem:[%s3647_s5 + $0x6f8] sm:$0xff]  ;;  %v3258_v27 = vld [vmem:[%s3647_s5 + $0x700] sm:$0xff]  ;;  %3004 = vrsqrt.f32 %v4975_v7 }
 0x184   : > { %v2200_v49 = vmul.f32 %v4061_v50, %v1784_v37  ;;  %v2201_v58 = vmul.f32 %v4063_v51, %v1785_v61  ;;  %v5039_v32 = vpop.eup %2994  ;;  %2570 = vst [vmem:[%s4107_s28 + $0x620] sm:$0xff] %v2186_v47  ;;  %2571 = vst [vmem:[%s4107_s28 + $0x628] sm:$0xff] %v2187_v43  ;;  %v2202_v3 = vmul.f32 %v4065_v53, %v1786_v29  ;;  %v3259_v46 = vld [vmem:[%s3647_s5 + $0x708] sm:$0xff]  ;;  %v3260_v47 = vld [vmem:[%s3647_s5 + $0x710] sm:$0xff]  ;;  %3006 = vrsqrt.f32 %v4979_v30 }
 0x185   : > { %v2203_v11 = vmul.f32 %v4067_v54, %v1787_v38  ;;  %v1778_v10 = vmul.f32 %v3250_v18, %v4993_v23  ;;  %v1779_v6 = vmul.f32 %v3251_v16, %v4993_v23  ;;  %v5049_v1 = vpop.eup %2996  ;;  %v2204_v19 = vmul.f32 %v4069_v56, %v1788_v8  ;;  %v3261_v41 = vld [vmem:[%s3647_s5 + $0x718] sm:$0xff]  ;;  %v3262_v48 = vld [vmem:[%s3647_s5 + $0x6c0] sm:$0xff] }
 0x186   : > { %v2205_v20 = vmul.f32 %v4071_v57, %v1789_v55  ;;  %2584 = vst [vmem:[%s4107_s28 + $0x690] sm:$0xff] %v2200_v49  ;;  %2585 = vst [vmem:[%s4107_s28 + $0x698] sm:$0xff] %v2201_v58  ;;  %v1780_v45 = vmul.f32 %v3252_v59, %v4993_v23  ;;  %v1781_v25 = vmul.f32 %v3253_v21, %v4993_v23  ;;  %v3263_v49 = vld [vmem:[%s3647_s5 + $0x6c8] sm:$0xff]  ;;  %3008 = vrsqrt.f32 %v4981_v34 }
 0x187   : > { %2586 = vst [vmem:[%s4107_s28 + $0x6a0] sm:$0xff] %v2202_v3  ;;  %2587 = vst [vmem:[%s4107_s28 + $0x6a8] sm:$0xff] %v2203_v11  ;;  %v1782_v52 = vmul.f32 %v3254_v39, %v4993_v23  ;;  %v1783_v62 = vmul.f32 %v3255_v2, %v4993_v23  ;;  %v2194_v17 = vmul.f32 %v4061_v50, %v1778_v10  ;;  %v3264_v11 = vld [vmem:[%s3647_s5 + $0x6d0] sm:$0xff]  ;;  %v3265_v10 = vld [vmem:[%s3647_s5 + $0x6d8] sm:$0xff]  ;;  %3010 = vrsqrt.f32 %v1494_v36 }
 0x188   : > { %v2195_v14 = vmul.f32 %v4063_v51, %v1779_v6  ;;  %2588 = vst [vmem:[%s4107_s28 + $0x6b0] sm:$0xff] %v2204_v19  ;;  %2589 = vst [vmem:[%s4107_s28 + $0x6b8] sm:$0xff] %v2205_v20  ;;  %v2196_v26 = vmul.f32 %v4065_v53, %v1780_v45  ;;  %v2197_v60 = vmul.f32 %v4067_v54, %v1781_v25  ;;  %v5109_v6 = vpop.xlane.xlu1 %1309  ;;  %v5111_v19 = vpop.xlane.xlu0 %1302  ;;  %v3266_v20 = vld [vmem:[%s3647_s5 + $0x6e0] sm:$0xff]  ;;  %v3267_v45 = vld [vmem:[%s3647_s5 + $0x6e8] sm:$0xff] }
 0x189   : > { %v1796_v40 = vmul.f32 %v3256_v9, %v4999_v4  ;;  %v1797_v23 = vmul.f32 %v3257_v12, %v4999_v4  ;;  %v2198_v5 = vmul.f32 %v4069_v56, %v1782_v52  ;;  %v2199_v33 = vmul.f32 %v4071_v57, %v1783_v62  ;;  %2578 = vst [vmem:[%s4107_s28 + $0x660] sm:$0xff] %v2194_v17  ;;  %v3268_v62 = vld [vmem:[%s3647_s5 + $0x750] sm:$0xff]  ;;  %v3270_v9 = vld [vmem:[%s3647_s5 + $0x760] sm:$0xff]  ;;  %v3271_v12 = vld [vmem:[%s3647_s5 + $0x768] sm:$0xff] }
 0x18a   : > { %2579 = vst [vmem:[%s4107_s28 + $0x668] sm:$0xff] %v2195_v14  ;;  %v1798_v37 = vmul.f32 %v3258_v27, %v4999_v4  ;;  %v1799_v61 = vmul.f32 %v3259_v46, %v4999_v4  ;;  %2580 = vst [vmem:[%s4107_s28 + $0x670] sm:$0xff] %v2196_v26  ;;  %v1800_v43 = vmul.f32 %v3260_v47, %v4999_v4  ;;  %v3269_v14 = vld [vmem:[%s3647_s5 + $0x758] sm:$0xff] }
 0x18b   : > { %2581 = vst [vmem:[%s4107_s28 + $0x678] sm:$0xff] %v2197_v60  ;;  %v1801_v29 = vmul.f32 %v3261_v41, %v4999_v4  ;;  %v2212_v35 = vmul.f32 %v4061_v50, %v1796_v40  ;;  %v2213_v38 = vmul.f32 %v4063_v51, %v1797_v23  ;;  %2582 = vst [vmem:[%s4107_s28 + $0x680] sm:$0xff] %v2198_v5  ;;  %v3272_v5 = vld [vmem:[%s3647_s5 + $0x770] sm:$0xff]  ;;  %v3273_v27 = vld [vmem:[%s3647_s5 + $0x778] sm:$0xff] }
 0x18c   : > { %2583 = vst [vmem:[%s4107_s28 + $0x688] sm:$0xff] %v2199_v33  ;;  %v2214_v44 = vmul.f32 %v4065_v53, %v1798_v37  ;;  %v2215_v8 = vmul.f32 %v4067_v54, %v1799_v61  ;;  %v1790_v55 = vmul.f32 %v3262_v48, %v5005_v28  ;;  %v1791_v4 = vmul.f32 %v3263_v49, %v5005_v28  ;;  %v3274_v41 = vld [vmem:[%s3647_s5 + $0x720] sm:$0xff] }
 0x18d   : > { %v2216_v58 = vmul.f32 %v4069_v56, %v1800_v43  ;;  %v2217_v3 = vmul.f32 %v4071_v57, %v1801_v29  ;;  %2596 = vst [vmem:[%s4107_s28 + $0x6f0] sm:$0xff] %v2212_v35  ;;  %2597 = vst [vmem:[%s4107_s28 + $0x6f8] sm:$0xff] %v2213_v38  ;;  %v1792_v18 = vmul.f32 %v3264_v11, %v5005_v28  ;;  %v3275_v35 = vld [vmem:[%s3647_s5 + $0x728] sm:$0xff] }
 0x18e   : > { %v1793_v16 = vmul.f32 %v3265_v10, %v5005_v28  ;;  %2598 = vst [vmem:[%s4107_s28 + $0x700] sm:$0xff] %v2214_v44  ;;  %2599 = vst [vmem:[%s4107_s28 + $0x708] sm:$0xff] %v2215_v8  ;;  %v1794_v59 = vmul.f32 %v3266_v20, %v5005_v28  ;;  %v1795_v21 = vmul.f32 %v3267_v45, %v5005_v28  ;;  %v3276_v8 = vld [vmem:[%s3647_s5 + $0x730] sm:$0xff] }
 0x18f   : > { %v2206_v25 = vmul.f32 %v4061_v50, %v1790_v55  ;;  %v2207_v39 = vmul.f32 %v4063_v51, %v1791_v4  ;;  %2600 = vst [vmem:[%s4107_s28 + $0x710] sm:$0xff] %v2216_v58  ;;  %2601 = vst [vmem:[%s4107_s28 + $0x718] sm:$0xff] %v2217_v3  ;;  %v2208_v52 = vmul.f32 %v4065_v53, %v1792_v18  ;;  %v3277_v55 = vld [vmem:[%s3647_s5 + $0x738] sm:$0xff]  ;;  %v5161_v4 = vpop.xlane.xlu1 %1323  ;;  %v5163_v58 = vpop.xlane.xlu0 %1316  ;;  %v3278_v3 = vld [vmem:[%s3647_s5 + $0x740] sm:$0xff] }
 0x190   : > { %v2209_v2 = vmul.f32 %v4067_v54, %v1793_v16  ;;  %v1808_v17 = vmul.f32 %v3268_v62, %v5015_v31  ;;  %v1809_v28 = vmul.f32 %v3269_v14, %v5015_v31  ;;  %v2210_v26 = vmul.f32 %v4069_v56, %v1794_v59  ;;  %v3279_v18 = vld [vmem:[%s3647_s5 + $0x748] sm:$0xff]  ;;  %v3282_v62 = vld [vmem:[%s3647_s5 + $0x7c0] sm:$0xff] }
 0x191   : > { %v2211_v60 = vmul.f32 %v4071_v57, %v1795_v21  ;;  %2590 = vst [vmem:[%s4107_s28 + $0x6c0] sm:$0xff] %v2206_v25  ;;  %2591 = vst [vmem:[%s4107_s28 + $0x6c8] sm:$0xff] %v2207_v39  ;;  %v1810_v40 = vmul.f32 %v3270_v9, %v5015_v31  ;;  %v1811_v23 = vmul.f32 %v3271_v12, %v5015_v31  ;;  %v3280_v21 = vld [vmem:[%s3647_s5 + $0x7b0] sm:$0xff]  ;;  %v3281_v39 = vld [vmem:[%s3647_s5 + $0x7b8] sm:$0xff] }
 0x192   : > { %2592 = vst [vmem:[%s4107_s28 + $0x6d0] sm:$0xff] %v2208_v52  ;;  %2593 = vst [vmem:[%s4107_s28 + $0x6d8] sm:$0xff] %v2209_v2  ;;  %v1812_v33 = vmul.f32 %v3272_v5, %v5015_v31  ;;  %v1813_v37 = vmul.f32 %v3273_v27, %v5015_v31  ;;  %v2224_v46 = vmul.f32 %v4061_v50, %v1808_v17  ;;  %v3283_v14 = vld [vmem:[%s3647_s5 + $0x7c8] sm:$0xff]  ;;  %v3285_v9 = vld [vmem:[%s3647_s5 + $0x7d8] sm:$0xff] }
 0x193   : > { %v2225_v61 = vmul.f32 %v4063_v51, %v1809_v28  ;;  %2594 = vst [vmem:[%s4107_s28 + $0x6e0] sm:$0xff] %v2210_v26  ;;  %2595 = vst [vmem:[%s4107_s28 + $0x6e8] sm:$0xff] %v2211_v60  ;;  %v2226_v47 = vmul.f32 %v4065_v53, %v1810_v40  ;;  %v2227_v43 = vmul.f32 %v4067_v54, %v1811_v23  ;;  %v3284_v26 = vld [vmem:[%s3647_s5 + $0x7d0] sm:$0xff]  ;;  %v3286_v27 = vld [vmem:[%s3647_s5 + $0x780] sm:$0xff] }
 0x194   : > { %v1802_v29 = vmul.f32 %v3274_v41, %v5023_v15  ;;  %v1803_v31 = vmul.f32 %v3275_v35, %v5023_v15  ;;  %v2228_v38 = vmul.f32 %v4069_v56, %v1812_v33  ;;  %v2229_v44 = vmul.f32 %v4071_v57, %v1813_v37  ;;  %2608 = vst [vmem:[%s4107_s28 + $0x750] sm:$0xff] %v2224_v46  ;;  %v3287_v46 = vld [vmem:[%s3647_s5 + $0x788] sm:$0xff] }
 0x195   : > { %2609 = vst [vmem:[%s4107_s28 + $0x758] sm:$0xff] %v2225_v61  ;;  %v1804_v48 = vmul.f32 %v3276_v8, %v5023_v15  ;;  %v1805_v49 = vmul.f32 %v3277_v55, %v5023_v15  ;;  %2610 = vst [vmem:[%s4107_s28 + $0x760] sm:$0xff] %v2226_v47  ;;  %v1806_v11 = vmul.f32 %v3278_v3, %v5023_v15 }
 0x196   : > { %2611 = vst [vmem:[%s4107_s28 + $0x768] sm:$0xff] %v2227_v43  ;;  %v1807_v10 = vmul.f32 %v3279_v18, %v5023_v15  ;;  %v2218_v16 = vmul.f32 %v4061_v50, %v1802_v29  ;;  %v2219_v20 = vmul.f32 %v4063_v51, %v1803_v31  ;;  %2612 = vst [vmem:[%s4107_s28 + $0x770] sm:$0xff] %v2228_v38  ;;  %v3288_v43 = vld [vmem:[%s3647_s5 + $0x790] sm:$0xff]  ;;  %v3289_v29 = vld [vmem:[%s3647_s5 + $0x798] sm:$0xff]  ;;  %v1338_v31 = vpop.xlane.xlu1 %1337  ;;  %v1331_v38 = vpop.xlane.xlu0 %1330 }
 0x197   : > { %2613 = vst [vmem:[%s4107_s28 + $0x778] sm:$0xff] %v2229_v44  ;;  %v2220_v59 = vmul.f32 %v4065_v53, %v1804_v48  ;;  %v2221_v45 = vmul.f32 %v4067_v54, %v1805_v49  ;;  %v1820_v25 = vmul.f32 %v3280_v21, %v5031_v0  ;;  %v1821_v15 = vmul.f32 %v3281_v39, %v5031_v0  ;;  %v3290_v44 = vld [vmem:[%s3647_s5 + $0x7a0] sm:$0xff]  ;;  %v3291_v48 = vld [vmem:[%s3647_s5 + $0x7a8] sm:$0xff] }
 0x198   : > { %v2222_v52 = vmul.f32 %v4069_v56, %v1806_v11  ;;  %v2223_v2 = vmul.f32 %v4071_v57, %v1807_v10  ;;  %2602 = vst [vmem:[%s4107_s28 + $0x720] sm:$0xff] %v2218_v16  ;;  %2603 = vst [vmem:[%s4107_s28 + $0x728] sm:$0xff] %v2219_v20  ;;  %v1822_v17 = vmul.f32 %v3282_v62, %v5031_v0  ;;  %v3292_v10 = vld [vmem:[%s3647_s5 + $0x810] sm:$0xff]  ;;  %v3293_v20 = vld [vmem:[%s3647_s5 + $0x818] sm:$0xff]  ;;  %v1438_v13 = vmul.f32 0.0013020834, %v1331_v38 }
 0x199   : > { %v1823_v28 = vmul.f32 %v3283_v14, %v5031_v0  ;;  %2604 = vst [vmem:[%s4107_s28 + $0x730] sm:$0xff] %v2220_v59  ;;  %2605 = vst [vmem:[%s4107_s28 + $0x738] sm:$0xff] %v2221_v45  ;;  %v1824_v60 = vmul.f32 %v3284_v26, %v5031_v0  ;;  %v1825_v40 = vmul.f32 %v3285_v9, %v5031_v0  ;;  %v3294_v21 = vld [vmem:[%s3647_s5 + $0x820] sm:$0xff]  ;;  %v3295_v39 = vld [vmem:[%s3647_s5 + $0x828] sm:$0xff]  ;;  %v1432_v9 = vmul.f32 0.0013020834, %v5059_v63 }
 0x19a   : > { %v2236_v12 = vmul.f32 %v4061_v50, %v1820_v25  ;;  %v2237_v23 = vmul.f32 %v4063_v51, %v1821_v15  ;;  %2606 = vst [vmem:[%s4107_s28 + $0x740] sm:$0xff] %v2222_v52  ;;  %2607 = vst [vmem:[%s4107_s28 + $0x748] sm:$0xff] %v2223_v2  ;;  %v2238_v5 = vmul.f32 %v4065_v53, %v1822_v17  ;;  %v3296_v52 = vld [vmem:[%s3647_s5 + $0x830] sm:$0xff]  ;;  %v3297_v62 = vld [vmem:[%s3647_s5 + $0x838] sm:$0xff]  ;;  %v1434_v63 = vmul.f32 0.0013020834, %v5111_v19 }
 0x19b   : > { %v2239_v33 = vmul.f32 %v4067_v54, %v1823_v28  ;;  %v1814_v37 = vmul.f32 %v3286_v27, %v5039_v32  ;;  %v1815_v0 = vmul.f32 %v3287_v46, %v5039_v32  ;;  %v2240_v61 = vmul.f32 %v4069_v56, %v1824_v60 }
 0x19c   : > { %v2241_v47 = vmul.f32 %v4071_v57, %v1825_v40  ;;  %2620 = vst [vmem:[%s4107_s28 + $0x7b0] sm:$0xff] %v2236_v12  ;;  %2621 = vst [vmem:[%s4107_s28 + $0x7b8] sm:$0xff] %v2237_v23  ;;  %v1816_v41 = vmul.f32 %v3288_v43, %v5039_v32  ;;  %v1817_v35 = vmul.f32 %v3289_v29, %v5039_v32  ;;  %v1435_v12 = vmul.f32 0.0013020834, %v5109_v6  ;;  %v1352_v23 = vpop.xlane.xlu1 %1351  ;;  %v3298_v29 = vld [vmem:[%s3647_s5 + $0x7e0] sm:$0xff] }
 0x19d   : > { %2622 = vst [vmem:[%s4107_s28 + $0x7c0] sm:$0xff] %v2238_v5  ;;  %2623 = vst [vmem:[%s4107_s28 + $0x7c8] sm:$0xff] %v2239_v33  ;;  %v1818_v8 = vmul.f32 %v3290_v44, %v5039_v32  ;;  %v1819_v55 = vmul.f32 %v3291_v48, %v5039_v32  ;;  %v2230_v49 = vmul.f32 %v4061_v50, %v1814_v37  ;;  %v1345_v5 = vpop.xlane.xlu0 %1344  ;;  %v1497_v33 = vadd.f32 1e-05, %v4983_v22  ;;  %v3300_v44 = vld [vmem:[%s3647_s5 + $0x7f0] sm:$0xff]  ;;  %v3301_v48 = vld [vmem:[%s3647_s5 + $0x7f8] sm:$0xff] }
 0x19e   : > { %v2231_v3 = vmul.f32 %v4063_v51, %v1815_v0  ;;  %2624 = vst [vmem:[%s4107_s28 + $0x7d0] sm:$0xff] %v2240_v61  ;;  %2625 = vst [vmem:[%s4107_s28 + $0x7d8] sm:$0xff] %v2241_v47  ;;  %v2232_v11 = vmul.f32 %v4065_v53, %v1816_v41  ;;  %v2233_v18 = vmul.f32 %v4067_v54, %v1817_v35  ;;  %v1496_v24 = vadd.f32 1e-05, %v1432_v9  ;;  %v2999_v0 = vpop.eup %2998  ;;  %v3308_v9 = vld [vmem:[%s3647_s5 + $0x890] sm:$0xff] }
 0x19f   : > { %v1832_v16 = vmul.f32 %v3292_v10, %v5049_v1  ;;  %v1833_v32 = vmul.f32 %v3293_v20, %v5049_v1  ;;  %v2234_v59 = vmul.f32 %v4069_v56, %v1818_v8  ;;  %v2235_v45 = vmul.f32 %v4071_v57, %v1819_v55  ;;  %2614 = vst [vmem:[%s4107_s28 + $0x780] sm:$0xff] %v2230_v49  ;;  %v3001_v41 = vpop.eup %3000 }
 0x1a0   : > { %2615 = vst [vmem:[%s4107_s28 + $0x788] sm:$0xff] %v2231_v3  ;;  %v1834_v25 = vmul.f32 %v3294_v21, %v5049_v1  ;;  %v1835_v15 = vmul.f32 %v3295_v39, %v5049_v1  ;;  %2616 = vst [vmem:[%s4107_s28 + $0x790] sm:$0xff] %v2232_v11  ;;  %v1836_v2 = vmul.f32 %v3296_v52, %v5049_v1  ;;  %v1437_v6 = vmul.f32 0.0013020834, %v5161_v4  ;;  %v1366_v46 = vpop.xlane.xlu1 %1365  ;;  %v3003_v49 = vpop.eup %3002  ;;  %v3302_v3 = vld [vmem:[%s3647_s5 + $0x800] sm:$0xff] }
 0x1a1   : > { %2617 = vst [vmem:[%s4107_s28 + $0x798] sm:$0xff] %v2233_v18  ;;  %v1837_v17 = vmul.f32 %v3297_v62, %v5049_v1  ;;  %v2248_v14 = vmul.f32 %v4061_v50, %v1832_v16  ;;  %v2249_v28 = vmul.f32 %v4063_v51, %v1833_v32  ;;  %2618 = vst [vmem:[%s4107_s28 + $0x7a0] sm:$0xff] %v2234_v59  ;;  %v1436_v27 = vmul.f32 0.0013020834, %v5163_v58  ;;  %v1359_v7 = vpop.xlane.xlu0 %1358  ;;  %v3303_v18 = vld [vmem:[%s3647_s5 + $0x808] sm:$0xff]  ;;  %v3304_v16 = vld [vmem:[%s3647_s5 + $0x870] sm:$0xff] }
 0x1a2   : > { %2619 = vst [vmem:[%s4107_s28 + $0x7a8] sm:$0xff] %v2235_v45  ;;  %v2250_v26 = vmul.f32 %v4065_v53, %v1834_v25  ;;  %v2251_v60 = vmul.f32 %v4067_v54, %v1835_v15  ;;  %v2252_v1 = vmul.f32 %v4069_v56, %v1836_v2  ;;  %v1499_v42 = vadd.f32 1e-05, %v1435_v12  ;;  %v3305_v32 = vld [vmem:[%s3647_s5 + $0x878] sm:$0xff]  ;;  %v5294_v45 = vpop.eup %3004 }
 0x1a3   : > { %v2253_v40 = vmul.f32 %v4071_v57, %v1837_v17  ;;  %2632 = vst [vmem:[%s4107_s28 + $0x810] sm:$0xff] %v2248_v14  ;;  %2633 = vst [vmem:[%s4107_s28 + $0x818] sm:$0xff] %v2249_v28  ;;  %v1439_v37 = vmul.f32 0.0013020834, %v1338_v31  ;;  %v1498_v19 = vadd.f32 1e-05, %v1434_v63  ;;  %3012 = vrsqrt.f32 %v1497_v33  ;;  %v5300_v52 = vpop.eup %3006 }
 0x1a4   : > { %2634 = vst [vmem:[%s4107_s28 + $0x820] sm:$0xff] %v2250_v26  ;;  %2635 = vst [vmem:[%s4107_s28 + $0x828] sm:$0xff] %v2251_v60  ;;  %3014 = vrsqrt.f32 %v1496_v24  ;;  %v5270_v22 = vadd.f32 1e-05, %v1437_v6  ;;  %v5272_v30 = vadd.f32 1e-05, %v1436_v27  ;;  %v1826_v35 = vmul.f32 %v3298_v29, %v2999_v0  ;;  %v5306_v60 = vpop.eup %3008 }
 0x1a5   : > { %2636 = vst [vmem:[%s4107_s28 + $0x830] sm:$0xff] %v2252_v1  ;;  %2637 = vst [vmem:[%s4107_s28 + $0x838] sm:$0xff] %v2253_v40  ;;  %3016 = vrsqrt.f32 %v1499_v42  ;;  %v5274_v4 = vadd.f32 1e-05, %v1439_v37  ;;  %v5276_v34 = vadd.f32 1e-05, %v1438_v13  ;;  %v1828_v8 = vmul.f32 %v3300_v44, %v2999_v0  ;;  %v5316_v36 = vpop.eup %3010 }
 0x1a6   : > { %v5278_v58 = vmul.f32 0.0013020834, %v1352_v23  ;;  %3018 = vrsqrt.f32 %v1498_v19  ;;  %v5280_v61 = vmul.f32 0.0013020834, %v1345_v5  ;;  %v5282_v47 = vmul.f32 0.0013020834, %v1366_v46 }
 0x1a7   : > { %v5284_v43 = vmul.f32 0.0013020834, %v1359_v7  ;;  %v3299_v31 = vld [vmem:[%s3647_s5 + $0x7e8] sm:$0xff]  ;;  %v1829_v55 = vmul.f32 %v3301_v48, %v2999_v0  ;;  %v1830_v11 = vmul.f32 %v3302_v3, %v2999_v0  ;;  %v1831_v10 = vmul.f32 %v3303_v18, %v2999_v0  ;;  %v3306_v17 = vld [vmem:[%s3647_s5 + $0x880] sm:$0xff]  ;;  %v3309_v40 = vld [vmem:[%s3647_s5 + $0x898] sm:$0xff] }
 0x1a8   : > { %v1827_v38 = vmul.f32 %v3299_v31, %v2999_v0  ;;  %v1844_v20 = vmul.f32 %v3304_v16, %v3001_v41  ;;  %v1845_v59 = vmul.f32 %v3305_v32, %v3001_v41  ;;  %v2242_v21 = vmul.f32 %v4061_v50, %v1826_v35  ;;  %v3307_v28 = vld [vmem:[%s3647_s5 + $0x888] sm:$0xff]  ;;  %v3310_v24 = vld [vmem:[%s3647_s5 + $0x840] sm:$0xff]  ;;  %v3312_v46 = vld [vmem:[%s3647_s5 + $0x850] sm:$0xff] }
 0x1a9   : > { %v2244_v39 = vmul.f32 %v4065_v53, %v1828_v8  ;;  %v2245_v15 = vmul.f32 %v4067_v54, %v1829_v55  ;;  %v2246_v2 = vmul.f32 %v4069_v56, %v1830_v11  ;;  %v2247_v62 = vmul.f32 %v4071_v57, %v1831_v10  ;;  %v3311_v27 = vld [vmem:[%s3647_s5 + $0x848] sm:$0xff]  ;;  %v3313_v0 = vld [vmem:[%s3647_s5 + $0x858] sm:$0xff]  ;;  %v3314_v35 = vld [vmem:[%s3647_s5 + $0x860] sm:$0xff] }
 0x1aa   : > { %v2243_v25 = vmul.f32 %v4063_v51, %v1827_v38  ;;  %v1846_v14 = vmul.f32 %v3306_v17, %v3001_v41  ;;  %v1847_v26 = vmul.f32 %v3307_v28, %v3001_v41  ;;  %2626 = vst [vmem:[%s4107_s28 + $0x7e0] sm:$0xff] %v2242_v21  ;;  %v1848_v1 = vmul.f32 %v3308_v9, %v3001_v41  ;;  %v3315_v38 = vld [vmem:[%s3647_s5 + $0x868] sm:$0xff]  ;;  %v3316_v18 = vld [vmem:[%s3647_s5 + $0x8d0] sm:$0xff]  ;;  %v3317_v10 = vld [vmem:[%s3647_s5 + $0x8d8] sm:$0xff] }
 0x1ab   : > { %2628 = vst [vmem:[%s4107_s28 + $0x7f0] sm:$0xff] %v2244_v39  ;;  %2629 = vst [vmem:[%s4107_s28 + $0x7f8] sm:$0xff] %v2245_v15  ;;  %v1849_v12 = vmul.f32 %v3309_v40, %v3001_v41  ;;  %v2260_v23 = vmul.f32 %v4061_v50, %v1844_v20  ;;  %v2261_v5 = vmul.f32 %v4063_v51, %v1845_v59  ;;  %v3318_v21 = vld [vmem:[%s3647_s5 + $0x8e0] sm:$0xff]  ;;  %v3319_v39 = vld [vmem:[%s3647_s5 + $0x8e8] sm:$0xff]  ;;  %3020 = vrsqrt.f32 %v5270_v22 }
 0x1ac   : > { %2627 = vst [vmem:[%s4107_s28 + $0x7e8] sm:$0xff] %v2243_v25  ;;  %2630 = vst [vmem:[%s4107_s28 + $0x800] sm:$0xff] %v2246_v2  ;;  %v2262_v63 = vmul.f32 %v4065_v53, %v1846_v14  ;;  %v2263_v33 = vmul.f32 %v4067_v54, %v1847_v26  ;;  %v1838_v6 = vmul.f32 %v3310_v24, %v3003_v49  ;;  %v3320_v2 = vld [vmem:[%s3647_s5 + $0x8f0] sm:$0xff]  ;;  %v3321_v17 = vld [vmem:[%s3647_s5 + $0x8f8] sm:$0xff]  ;;  %3022 = vrsqrt.f32 %v5272_v30 }
 0x1ad   : > { %2631 = vst [vmem:[%s4107_s28 + $0x808] sm:$0xff] %v2247_v62  ;;  %v1839_v42 = vmul.f32 %v3311_v27, %v3003_v49  ;;  %v5324_v37 = vpop.eup %3012  ;;  %v2264_v13 = vmul.f32 %v4069_v56, %v1848_v1  ;;  %v2265_v19 = vmul.f32 %v4071_v57, %v1849_v12  ;;  %2644 = vst [vmem:[%s4107_s28 + $0x870] sm:$0xff] %v2260_v23  ;;  %v3322_v40 = vld [vmem:[%s3647_s5 + $0x8a0] sm:$0xff]  ;;  %v3323_v23 = vld [vmem:[%s3647_s5 + $0x8a8] sm:$0xff]  ;;  %3024 = vrsqrt.f32 %v5274_v4 }
 0x1ae   : > { %2645 = vst [vmem:[%s4107_s28 + $0x878] sm:$0xff] %v2261_v5  ;;  %v1840_v7 = vmul.f32 %v3312_v46, %v3003_v49  ;;  %v1841_v41 = vmul.f32 %v3313_v0, %v3003_v49  ;;  %v5332_v29 = vpop.eup %3014  ;;  %2646 = vst [vmem:[%s4107_s28 + $0x880] sm:$0xff] %v2262_v63  ;;  %v1842_v31 = vmul.f32 %v3314_v35, %v3003_v49  ;;  %v1507_v22 = vadd.f32 1e-05, %v5282_v47 }
 0x1af   : > { %2647 = vst [vmem:[%s4107_s28 + $0x888] sm:$0xff] %v2263_v33  ;;  %v1843_v44 = vmul.f32 %v3315_v38, %v3003_v49  ;;  %v2254_v8 = vmul.f32 %v4061_v50, %v1838_v6  ;;  %v2255_v48 = vmul.f32 %v4063_v51, %v1839_v42  ;;  %v5340_v55 = vpop.eup %3016  ;;  %2648 = vst [vmem:[%s4107_s28 + $0x890] sm:$0xff] %v2264_v13  ;;  %v3324_v33 = vld [vmem:[%s3647_s5 + $0x8b0] sm:$0xff]  ;;  %v3325_v6 = vld [vmem:[%s3647_s5 + $0x8b8] sm:$0xff]  ;;  %3026 = vrsqrt.f32 %v5276_v34 }
 0x1b0   : > { %2649 = vst [vmem:[%s4107_s28 + $0x898] sm:$0xff] %v2265_v19  ;;  %v2256_v3 = vmul.f32 %v4065_v53, %v1840_v7  ;;  %v2257_v11 = vmul.f32 %v4067_v54, %v1841_v41  ;;  %v1856_v49 = vmul.f32 %v3316_v18, %v5294_v45  ;;  %v1857_v16 = vmul.f32 %v3317_v10, %v5294_v45  ;;  %v5350_v20 = vpop.eup %3018  ;;  %v3326_v42 = vld [vmem:[%s3647_s5 + $0x8c0] sm:$0xff]  ;;  %v3327_v19 = vld [vmem:[%s3647_s5 + $0x8c8] sm:$0xff]  ;;  %v3332_v10 = vld [vmem:[%s3647_s5 + $0x950] sm:$0xff] }
 0x1b1   : > { %v2258_v32 = vmul.f32 %v4069_v56, %v1842_v31  ;;  %v2259_v59 = vmul.f32 %v4071_v57, %v1843_v44  ;;  %2638 = vst [vmem:[%s4107_s28 + $0x840] sm:$0xff] %v2254_v8  ;;  %2639 = vst [vmem:[%s4107_s28 + $0x848] sm:$0xff] %v2255_v48  ;;  %v1858_v25 = vmul.f32 %v3318_v21, %v5294_v45  ;;  %v3328_v31 = vld [vmem:[%s3647_s5 + $0x930] sm:$0xff]  ;;  %v3329_v44 = vld [vmem:[%s3647_s5 + $0x938] sm:$0xff]  ;;  %v1506_v30 = vadd.f32 1e-05, %v5284_v43 }
 0x1b2   : > { %v1859_v15 = vmul.f32 %v3319_v39, %v5294_v45  ;;  %2640 = vst [vmem:[%s4107_s28 + $0x850] sm:$0xff] %v2256_v3  ;;  %2641 = vst [vmem:[%s4107_s28 + $0x858] sm:$0xff] %v2257_v11  ;;  %v1860_v62 = vmul.f32 %v3320_v2, %v5294_v45  ;;  %v1861_v14 = vmul.f32 %v3321_v17, %v5294_v45  ;;  %v3330_v3 = vld [vmem:[%s3647_s5 + $0x940] sm:$0xff]  ;;  %v3331_v18 = vld [vmem:[%s3647_s5 + $0x948] sm:$0xff] }
 0x1b3   : > { %v2272_v28 = vmul.f32 %v4061_v50, %v1856_v49  ;;  %v2273_v26 = vmul.f32 %v4063_v51, %v1857_v16  ;;  %2642 = vst [vmem:[%s4107_s28 + $0x860] sm:$0xff] %v2258_v32  ;;  %2643 = vst [vmem:[%s4107_s28 + $0x868] sm:$0xff] %v2259_v59  ;;  %v2274_v9 = vmul.f32 %v4065_v53, %v1858_v25  ;;  %v3333_v32 = vld [vmem:[%s3647_s5 + $0x958] sm:$0xff]  ;;  %v3334_v2 = vld [vmem:[%s3647_s5 + $0x900] sm:$0xff] }
 0x1b4   : > { %v2275_v1 = vmul.f32 %v4067_v54, %v1859_v15  ;;  %v1850_v12 = vmul.f32 %v3322_v40, %v5300_v52  ;;  %v1851_v45 = vmul.f32 %v3323_v23, %v5300_v52  ;;  %v2276_v5 = vmul.f32 %v4069_v56, %v1860_v62  ;;  %v3335_v17 = vld [vmem:[%s3647_s5 + $0x908] sm:$0xff]  ;;  %v3366_v43 = vld [vmem:[%s3647_s5 + $0xa60] sm:$0xff] }
 0x1b5   : > { %v2277_v63 = vmul.f32 %v4071_v57, %v1861_v14  ;;  %2656 = vst [vmem:[%s4107_s28 + $0x8d0] sm:$0xff] %v2272_v28  ;;  %2657 = vst [vmem:[%s4107_s28 + $0x8d8] sm:$0xff] %v2273_v26  ;;  %v1852_v24 = vmul.f32 %v3324_v33, %v5300_v52  ;;  %v1853_v27 = vmul.f32 %v3325_v6, %v5300_v52  ;;  %v3336_v26 = vld [vmem:[%s3647_s5 + $0x910] sm:$0xff]  ;;  %v3021_v4 = vpop.eup %3020 }
 0x1b6   : > { %2658 = vst [vmem:[%s4107_s28 + $0x8e0] sm:$0xff] %v2274_v9  ;;  %2659 = vst [vmem:[%s4107_s28 + $0x8e8] sm:$0xff] %v2275_v1  ;;  %v1854_v13 = vmul.f32 %v3326_v42, %v5300_v52  ;;  %v1855_v46 = vmul.f32 %v3327_v19, %v5300_v52  ;;  %v2266_v7 = vmul.f32 %v4061_v50, %v1850_v12  ;;  %v3337_v1 = vld [vmem:[%s3647_s5 + $0x918] sm:$0xff]  ;;  %v3338_v12 = vld [vmem:[%s3647_s5 + $0x920] sm:$0xff]  ;;  %v3023_v47 = vpop.eup %3022 }
 0x1b7   : > { %v2267_v0 = vmul.f32 %v4063_v51, %v1851_v45  ;;  %2660 = vst [vmem:[%s4107_s28 + $0x8f0] sm:$0xff] %v2276_v5  ;;  %2661 = vst [vmem:[%s4107_s28 + $0x8f8] sm:$0xff] %v2277_v63  ;;  %v2268_v41 = vmul.f32 %v4065_v53, %v1852_v24  ;;  %v2269_v35 = vmul.f32 %v4067_v54, %v1853_v27  ;;  %v3339_v45 = vld [vmem:[%s3647_s5 + $0x928] sm:$0xff]  ;;  %v3340_v27 = vld [vmem:[%s3647_s5 + $0x990] sm:$0xff] }
 0x1b8   : > { %v1868_v38 = vmul.f32 %v3328_v31, %v5306_v60  ;;  %v1869_v52 = vmul.f32 %v3329_v44, %v5306_v60  ;;  %v2270_v8 = vmul.f32 %v4069_v56, %v1854_v13  ;;  %v2271_v48 = vmul.f32 %v4071_v57, %v1855_v46  ;;  %2650 = vst [vmem:[%s4107_s28 + $0x8a0] sm:$0xff] %v2266_v7  ;;  %v3341_v13 = vld [vmem:[%s3647_s5 + $0x998] sm:$0xff]  ;;  %v3342_v7 = vld [vmem:[%s3647_s5 + $0x9a0] sm:$0xff]  ;;  %v3344_v31 = vld [vmem:[%s3647_s5 + $0x9b0] sm:$0xff] }
 0x1b9   : > { %2651 = vst [vmem:[%s4107_s28 + $0x8a8] sm:$0xff] %v2267_v0  ;;  %v1870_v11 = vmul.f32 %v3330_v3, %v5306_v60  ;;  %v1871_v49 = vmul.f32 %v3331_v18, %v5306_v60  ;;  %2652 = vst [vmem:[%s4107_s28 + $0x8b0] sm:$0xff] %v2268_v41  ;;  %v1872_v16 = vmul.f32 %v3332_v10, %v5306_v60  ;;  %v3343_v41 = vld [vmem:[%s3647_s5 + $0x9a8] sm:$0xff]  ;;  %v3345_v44 = vld [vmem:[%s3647_s5 + $0x9b8] sm:$0xff] }
 0x1ba   : > { %2653 = vst [vmem:[%s4107_s28 + $0x8b8] sm:$0xff] %v2269_v35  ;;  %v1873_v59 = vmul.f32 %v3333_v32, %v5306_v60  ;;  %v2284_v21 = vmul.f32 %v4061_v50, %v1868_v38  ;;  %v2285_v25 = vmul.f32 %v4063_v51, %v1869_v52  ;;  %2654 = vst [vmem:[%s4107_s28 + $0x8c0] sm:$0xff] %v2270_v8  ;;  %v3346_v18 = vld [vmem:[%s3647_s5 + $0x960] sm:$0xff]  ;;  %v3347_v10 = vld [vmem:[%s3647_s5 + $0x968] sm:$0xff] }
 0x1bb   : > { %2655 = vst [vmem:[%s4107_s28 + $0x8c8] sm:$0xff] %v2271_v48  ;;  %v2286_v39 = vmul.f32 %v4065_v53, %v1870_v11  ;;  %v2287_v15 = vmul.f32 %v4067_v54, %v1871_v49  ;;  %v1862_v62 = vmul.f32 %v3334_v2, %v5316_v36  ;;  %v1863_v60 = vmul.f32 %v3335_v17, %v5316_v36 }
 0x1bc   : > { %v2288_v14 = vmul.f32 %v4069_v56, %v1872_v16  ;;  %v2289_v28 = vmul.f32 %v4071_v57, %v1873_v59  ;;  %2668 = vst [vmem:[%s4107_s28 + $0x930] sm:$0xff] %v2284_v21  ;;  %2669 = vst [vmem:[%s4107_s28 + $0x938] sm:$0xff] %v2285_v25  ;;  %v1864_v9 = vmul.f32 %v3336_v26, %v5316_v36  ;;  %v3348_v59 = vld [vmem:[%s3647_s5 + $0x970] sm:$0xff]  ;;  %v3349_v25 = vld [vmem:[%s3647_s5 + $0x978] sm:$0xff] }
 0x1bd   : > { %v1865_v40 = vmul.f32 %v3337_v1, %v5316_v36  ;;  %2670 = vst [vmem:[%s4107_s28 + $0x940] sm:$0xff] %v2286_v39  ;;  %2671 = vst [vmem:[%s4107_s28 + $0x948] sm:$0xff] %v2287_v15  ;;  %v1866_v23 = vmul.f32 %v3338_v12, %v5316_v36  ;;  %v1867_v5 = vmul.f32 %v3339_v45, %v5316_v36  ;;  %v3350_v15 = vld [vmem:[%s3647_s5 + $0x980] sm:$0xff] }
 0x1be   : > { %v2278_v63 = vmul.f32 %v4061_v50, %v1862_v62  ;;  %v2279_v33 = vmul.f32 %v4063_v51, %v1863_v60  ;;  %2672 = vst [vmem:[%s4107_s28 + $0x950] sm:$0xff] %v2288_v14  ;;  %2673 = vst [vmem:[%s4107_s28 + $0x958] sm:$0xff] %v2289_v28  ;;  %v2280_v24 = vmul.f32 %v4065_v53, %v1864_v9  ;;  %v3351_v62 = vld [vmem:[%s3647_s5 + $0x988] sm:$0xff]  ;;  %v3352_v9 = vld [vmem:[%s3647_s5 + $0x9f0] sm:$0xff] }
 0x1bf   : > { %v2281_v6 = vmul.f32 %v4067_v54, %v1865_v40  ;;  %v1880_v42 = vmul.f32 %v3340_v27, %v5324_v37  ;;  %v1881_v36 = vmul.f32 %v3341_v13, %v5324_v37  ;;  %v2282_v19 = vmul.f32 %v4069_v56, %v1866_v23  ;;  %v3353_v40 = vld [vmem:[%s3647_s5 + $0x9f8] sm:$0xff]  ;;  %v3354_v45 = vld [vmem:[%s3647_s5 + $0xa00] sm:$0xff] }
 0x1c0   : > { %v2283_v46 = vmul.f32 %v4071_v57, %v1867_v5  ;;  %2662 = vst [vmem:[%s4107_s28 + $0x900] sm:$0xff] %v2278_v63  ;;  %2663 = vst [vmem:[%s4107_s28 + $0x908] sm:$0xff] %v2279_v33  ;;  %v1882_v0 = vmul.f32 %v3342_v7, %v5324_v37  ;;  %v1883_v35 = vmul.f32 %v3343_v41, %v5324_v37  ;;  %v3355_v63 = vld [vmem:[%s3647_s5 + $0xa08] sm:$0xff]  ;;  %v3357_v27 = vld [vmem:[%s3647_s5 + $0xa18] sm:$0xff] }
 0x1c1   : > { %2664 = vst [vmem:[%s4107_s28 + $0x910] sm:$0xff] %v2280_v24  ;;  %2665 = vst [vmem:[%s4107_s28 + $0x918] sm:$0xff] %v2281_v6  ;;  %v1884_v38 = vmul.f32 %v3344_v31, %v5324_v37  ;;  %v1885_v52 = vmul.f32 %v3345_v44, %v5324_v37  ;;  %v2296_v8 = vmul.f32 %v4061_v50, %v1880_v42  ;;  %v3356_v24 = vld [vmem:[%s3647_s5 + $0xa10] sm:$0xff]  ;;  %v3358_v7 = vld [vmem:[%s3647_s5 + $0x9c0] sm:$0xff] }
 0x1c2   : > { %v2297_v48 = vmul.f32 %v4063_v51, %v1881_v36  ;;  %2666 = vst [vmem:[%s4107_s28 + $0x920] sm:$0xff] %v2282_v19  ;;  %2667 = vst [vmem:[%s4107_s28 + $0x928] sm:$0xff] %v2283_v46  ;;  %v2298_v3 = vmul.f32 %v4065_v53, %v1882_v0  ;;  %v2299_v11 = vmul.f32 %v4067_v54, %v1883_v35  ;;  %v1380_v35 = vpop.xlane.xlu1 %1379  ;;  %v3360_v44 = vld [vmem:[%s3647_s5 + $0x9d0] sm:$0xff] }
 0x1c3   : > { %v1874_v49 = vmul.f32 %v3346_v18, %v5332_v29  ;;  %v1875_v37 = vmul.f32 %v3347_v10, %v5332_v29  ;;  %v2300_v16 = vmul.f32 %v4069_v56, %v1884_v38  ;;  %v2301_v32 = vmul.f32 %v4071_v57, %v1885_v52  ;;  %2680 = vst [vmem:[%s4107_s28 + $0x990] sm:$0xff] %v2296_v8  ;;  %v3361_v8 = vld [vmem:[%s3647_s5 + $0x9d8] sm:$0xff]  ;;  %v3363_v18 = vld [vmem:[%s3647_s5 + $0x9e8] sm:$0xff] }
 0x1c4   : > { %2681 = vst [vmem:[%s4107_s28 + $0x998] sm:$0xff] %v2297_v48  ;;  %v1876_v21 = vmul.f32 %v3348_v59, %v5332_v29  ;;  %v1877_v39 = vmul.f32 %v3349_v25, %v5332_v29  ;;  %2682 = vst [vmem:[%s4107_s28 + $0x9a0] sm:$0xff] %v2298_v3  ;;  %v1878_v2 = vmul.f32 %v3350_v15, %v5332_v29  ;;  %v3362_v3 = vld [vmem:[%s3647_s5 + $0x9e0] sm:$0xff]  ;;  %v1504_v15 = vadd.f32 1e-05, %v5280_v61 }
 0x1c5   : > { %2683 = vst [vmem:[%s4107_s28 + $0x9a8] sm:$0xff] %v2299_v11  ;;  %v1879_v17 = vmul.f32 %v3351_v62, %v5332_v29  ;;  %v2290_v60 = vmul.f32 %v4061_v50, %v1874_v49  ;;  %v2291_v14 = vmul.f32 %v4063_v51, %v1875_v37  ;;  %2684 = vst [vmem:[%s4107_s28 + $0x9b0] sm:$0xff] %v2300_v16  ;;  %v1373_v16 = vpop.xlane.xlu0 %1372  ;;  %v3364_v62 = vld [vmem:[%s3647_s5 + $0xa50] sm:$0xff] }
 0x1c6   : > { %2685 = vst [vmem:[%s4107_s28 + $0x9b8] sm:$0xff] %v2301_v32  ;;  %v2292_v28 = vmul.f32 %v4065_v53, %v1876_v21  ;;  %v2293_v26 = vmul.f32 %v4067_v54, %v1877_v39  ;;  %v1892_v1 = vmul.f32 %v3352_v9, %v5340_v55  ;;  %v1893_v29 = vmul.f32 %v3353_v40, %v5340_v55  ;;  %v3368_v9 = vld [vmem:[%s3647_s5 + $0xa70] sm:$0xff]  ;;  %v3369_v40 = vld [vmem:[%s3647_s5 + $0xa78] sm:$0xff] }
 0x1c7   : > { %v2294_v12 = vmul.f32 %v4069_v56, %v1878_v2  ;;  %v2295_v23 = vmul.f32 %v4071_v57, %v1879_v17  ;;  %2674 = vst [vmem:[%s4107_s28 + $0x960] sm:$0xff] %v2290_v60  ;;  %2675 = vst [vmem:[%s4107_s28 + $0x968] sm:$0xff] %v2291_v14  ;;  %v1894_v5 = vmul.f32 %v3354_v45, %v5340_v55  ;;  %v1445_v21 = vmul.f32 0.0013020834, %v1380_v35  ;;  %v3365_v17 = vld [vmem:[%s3647_s5 + $0xa58] sm:$0xff]  ;;  %v3371_v45 = vld [vmem:[%s3647_s5 + $0xa28] sm:$0xff] }
 0x1c8   : > { %v1895_v33 = vmul.f32 %v3355_v63, %v5340_v55  ;;  %2676 = vst [vmem:[%s4107_s28 + $0x970] sm:$0xff] %v2292_v28  ;;  %2677 = vst [vmem:[%s4107_s28 + $0x978] sm:$0xff] %v2293_v26  ;;  %v1896_v6 = vmul.f32 %v3356_v24, %v5340_v55  ;;  %v1897_v42 = vmul.f32 %v3357_v27, %v5340_v55  ;;  %v3359_v55 = vld [vmem:[%s3647_s5 + $0x9c8] sm:$0xff]  ;;  %v1505_v39 = vadd.f32 1e-05, %v5278_v58  ;;  %v3025_v63 = vpop.eup %3024 }
 0x1c9   : > { %v2308_v13 = vmul.f32 %v4061_v50, %v1892_v1  ;;  %v2309_v36 = vmul.f32 %v4063_v51, %v1893_v29  ;;  %2678 = vst [vmem:[%s4107_s28 + $0x980] sm:$0xff] %v2294_v12  ;;  %2679 = vst [vmem:[%s4107_s28 + $0x988] sm:$0xff] %v2295_v23  ;;  %v2310_v19 = vmul.f32 %v4065_v53, %v1894_v5  ;;  %v1444_v2 = vmul.f32 0.0013020834, %v1373_v16  ;;  %v3367_v28 = vld [vmem:[%s3647_s5 + $0xa68] sm:$0xff]  ;;  %v3370_v12 = vld [vmem:[%s3647_s5 + $0xa20] sm:$0xff] }
 0x1ca   : > { %v2311_v46 = vmul.f32 %v4067_v54, %v1895_v33  ;;  %v1886_v0 = vmul.f32 %v3358_v7, %v5350_v20  ;;  %v1887_v41 = vmul.f32 %v3359_v55, %v5350_v20  ;;  %v2312_v31 = vmul.f32 %v4069_v56, %v1896_v6  ;;  %v3373_v7 = vld [vmem:[%s3647_s5 + $0xa38] sm:$0xff] }
 0x1cb   : > { %v2313_v38 = vmul.f32 %v4071_v57, %v1897_v42  ;;  %2692 = vst [vmem:[%s4107_s28 + $0x9f0] sm:$0xff] %v2308_v13  ;;  %2693 = vst [vmem:[%s4107_s28 + $0x9f8] sm:$0xff] %v2309_v36  ;;  %v1888_v52 = vmul.f32 %v3360_v44, %v5350_v20  ;;  %v1889_v48 = vmul.f32 %v3361_v8, %v5350_v20  ;;  %3028 = vrsqrt.f32 %v1505_v39  ;;  %v5568_v42 = vpop.eup %3026 }
 0x1cc   : > { %2694 = vst [vmem:[%s4107_s28 + $0xa00] sm:$0xff] %v2310_v19  ;;  %2695 = vst [vmem:[%s4107_s28 + $0xa08] sm:$0xff] %v2311_v46  ;;  %v1890_v11 = vmul.f32 %v3362_v3, %v5350_v20  ;;  %v1891_v49 = vmul.f32 %v3363_v18, %v5350_v20  ;;  %v2302_v10 = vmul.f32 %v4061_v50, %v1886_v0  ;;  %v1509_v58 = vadd.f32 1e-05, %v1445_v21  ;;  %v3372_v19 = vld [vmem:[%s3647_s5 + $0xa30] sm:$0xff] }
 0x1cd   : > { %v2303_v37 = vmul.f32 %v4063_v51, %v1887_v41  ;;  %2696 = vst [vmem:[%s4107_s28 + $0xa10] sm:$0xff] %v2312_v31  ;;  %2697 = vst [vmem:[%s4107_s28 + $0xa18] sm:$0xff] %v2313_v38  ;;  %v2304_v32 = vmul.f32 %v4065_v53, %v1888_v52  ;;  %v2305_v59 = vmul.f32 %v4067_v54, %v1889_v48  ;;  %3030 = vrsqrt.f32 %v1504_v15  ;;  %v3374_v41 = vld [vmem:[%s3647_s5 + $0xa40] sm:$0xff]  ;;  %v3375_v31 = vld [vmem:[%s3647_s5 + $0xa48] sm:$0xff] }
 0x1ce   : > { %v2306_v20 = vmul.f32 %v4069_v56, %v1890_v11  ;;  %v2307_v25 = vmul.f32 %v4071_v57, %v1891_v49  ;;  %2686 = vst [vmem:[%s4107_s28 + $0x9c0] sm:$0xff] %v2302_v10  ;;  %v1508_v61 = vadd.f32 1e-05, %v1444_v2  ;;  %3032 = vrsqrt.f32 %v1507_v22  ;;  %v3376_v11 = vld [vmem:[%s3647_s5 + $0xab0] sm:$0xff]  ;;  %v3377_v49 = vld [vmem:[%s3647_s5 + $0xab8] sm:$0xff] }
 0x1cf   : > { %2687 = vst [vmem:[%s4107_s28 + $0x9c8] sm:$0xff] %v2303_v37  ;;  %2688 = vst [vmem:[%s4107_s28 + $0x9d0] sm:$0xff] %v2304_v32  ;;  %3034 = vrsqrt.f32 %v1506_v30  ;;  %v1904_v34 = vmul.f32 %v3364_v62, %v3021_v4  ;;  %v1905_v60 = vmul.f32 %v3365_v17, %v3021_v4  ;;  %v1906_v14 = vmul.f32 %v3366_v43, %v3021_v4  ;;  %v3380_v15 = vld [vmem:[%s3647_s5 + $0xad0] sm:$0xff]  ;;  %v3381_v22 = vld [vmem:[%s3647_s5 + $0xad8] sm:$0xff] }
 0x1d0   : > { %2689 = vst [vmem:[%s4107_s28 + $0x9d8] sm:$0xff] %v2305_v59  ;;  %2690 = vst [vmem:[%s4107_s28 + $0x9e0] sm:$0xff] %v2306_v20  ;;  %3036 = vrsqrt.f32 %v1509_v58  ;;  %v1907_v26 = vmul.f32 %v3367_v28, %v3021_v4  ;;  %v1908_v1 = vmul.f32 %v3368_v9, %v3021_v4  ;;  %v1909_v29 = vmul.f32 %v3369_v40, %v3021_v4  ;;  %v3378_v59 = vld [vmem:[%s3647_s5 + $0xac0] sm:$0xff]  ;;  %v3379_v20 = vld [vmem:[%s3647_s5 + $0xac8] sm:$0xff] }
 0x1d1   : > { %2691 = vst [vmem:[%s4107_s28 + $0x9e8] sm:$0xff] %v2307_v25  ;;  %3038 = vrsqrt.f32 %v1508_v61  ;;  %v1898_v23 = vmul.f32 %v3370_v12, %v3023_v47  ;;  %v1899_v5 = vmul.f32 %v3371_v45, %v3023_v47  ;;  %v2320_v33 = vmul.f32 %v4061_v50, %v1904_v34  ;;  %v3382_v34 = vld [vmem:[%s3647_s5 + $0xa80] sm:$0xff]  ;;  %v3384_v9 = vld [vmem:[%s3647_s5 + $0xa90] sm:$0xff]  ;;  %v3385_v40 = vld [vmem:[%s3647_s5 + $0xa98] sm:$0xff] }
 0x1d2   : > { %v2321_v24 = vmul.f32 %v4063_v51, %v1905_v60  ;;  %v2322_v6 = vmul.f32 %v4065_v53, %v1906_v14  ;;  %v2323_v27 = vmul.f32 %v4067_v54, %v1907_v26  ;;  %v2324_v13 = vmul.f32 %v4069_v56, %v1908_v1  ;;  %v3383_v60 = vld [vmem:[%s3647_s5 + $0xa88] sm:$0xff]  ;;  %v3386_v12 = vld [vmem:[%s3647_s5 + $0xaa0] sm:$0xff] }
 0x1d3   : > { %v2325_v36 = vmul.f32 %v4071_v57, %v1909_v29  ;;  %v1900_v46 = vmul.f32 %v3372_v19, %v3023_v47  ;;  %v1901_v0 = vmul.f32 %v3373_v7, %v3023_v47  ;;  %2704 = vst [vmem:[%s4107_s28 + $0xa50] sm:$0xff] %v2320_v33  ;;  %v1902_v35 = vmul.f32 %v3374_v41, %v3023_v47  ;;  %v3387_v45 = vld [vmem:[%s3647_s5 + $0xaa8] sm:$0xff]  ;;  %v3390_v7 = vld [vmem:[%s3647_s5 + $0xb20] sm:$0xff] }
 0x1d4   : > { %2705 = vst [vmem:[%s4107_s28 + $0xa58] sm:$0xff] %v2321_v24  ;;  %2706 = vst [vmem:[%s4107_s28 + $0xa60] sm:$0xff] %v2322_v6  ;;  %v1903_v38 = vmul.f32 %v3375_v31, %v3023_v47  ;;  %v2314_v44 = vmul.f32 %v4061_v50, %v1898_v23  ;;  %v2315_v52 = vmul.f32 %v4063_v51, %v1899_v5  ;;  %v3391_v41 = vld [vmem:[%s3647_s5 + $0xb28] sm:$0xff]  ;;  %v3392_v31 = vld [vmem:[%s3647_s5 + $0xb30] sm:$0xff] }
 0x1d5   : > { %v5574_v55 = vpop.eup %3028  ;;  %2707 = vst [vmem:[%s4107_s28 + $0xa68] sm:$0xff] %v2323_v27  ;;  %2708 = vst [vmem:[%s4107_s28 + $0xa70] sm:$0xff] %v2324_v13  ;;  %v2316_v48 = vmul.f32 %v4065_v53, %v1900_v46  ;;  %v2317_v3 = vmul.f32 %v4067_v54, %v1901_v0  ;;  %v1916_v18 = vmul.f32 %v3376_v11, %v3025_v63  ;;  %v3388_v27 = vld [vmem:[%s3647_s5 + $0xb10] sm:$0xff] }
 0x1d6   : > { %2709 = vst [vmem:[%s4107_s28 + $0xa78] sm:$0xff] %v2325_v36  ;;  %v1917_v10 = vmul.f32 %v3377_v49, %v3025_v63  ;;  %v2318_v16 = vmul.f32 %v4069_v56, %v1902_v35  ;;  %v2319_v32 = vmul.f32 %v4071_v57, %v1903_v38  ;;  %2698 = vst [vmem:[%s4107_s28 + $0xa20] sm:$0xff] %v2314_v44  ;;  %v3389_v36 = vld [vmem:[%s3647_s5 + $0xb18] sm:$0xff]  ;;  %v3394_v49 = vld [vmem:[%s3647_s5 + $0xae0] sm:$0xff] }
 0x1d7   : > { %v5584_v8 = vpop.eup %3030  ;;  %2699 = vst [vmem:[%s4107_s28 + $0xa28] sm:$0xff] %v2315_v52  ;;  %v1918_v21 = vmul.f32 %v3378_v59, %v3025_v63  ;;  %v1919_v25 = vmul.f32 %v3379_v20, %v3025_v63  ;;  %2700 = vst [vmem:[%s4107_s28 + $0xa30] sm:$0xff] %v2316_v48  ;;  %v1920_v2 = vmul.f32 %v3380_v15, %v3025_v63  ;;  %v3393_v44 = vld [vmem:[%s3647_s5 + $0xb38] sm:$0xff] }
 0x1d8   : > { %v5592_v37 = vpop.eup %3032  ;;  %2701 = vst [vmem:[%s4107_s28 + $0xa38] sm:$0xff] %v2317_v3  ;;  %v1921_v30 = vmul.f32 %v3381_v22, %v3025_v63  ;;  %v2332_v58 = vmul.f32 %v4061_v50, %v1916_v18  ;;  %v2333_v61 = vmul.f32 %v4063_v51, %v1917_v10  ;;  %2702 = vst [vmem:[%s4107_s28 + $0xa40] sm:$0xff] %v2318_v16  ;;  %v3395_v16 = vld [vmem:[%s3647_s5 + $0xae8] sm:$0xff] }
 0x1d9   : > { %v5600_v39 = vpop.eup %3034  ;;  %2703 = vst [vmem:[%s4107_s28 + $0xa48] sm:$0xff] %v2319_v32  ;;  %v2334_v47 = vmul.f32 %v4065_v53, %v1918_v21  ;;  %v2335_v62 = vmul.f32 %v4067_v54, %v1919_v25  ;;  %v1910_v17 = vmul.f32 %v3382_v34, %v5568_v42  ;;  %v1911_v43 = vmul.f32 %v3383_v60, %v5568_v42  ;;  %v3396_v21 = vld [vmem:[%s3647_s5 + $0xaf0] sm:$0xff]  ;;  %v3397_v25 = vld [vmem:[%s3647_s5 + $0xaf8] sm:$0xff] }
 0x1da   : > { %v5608_v4 = vpop.eup %3036  ;;  %v2336_v28 = vmul.f32 %v4069_v56, %v1920_v2  ;;  %v2337_v26 = vmul.f32 %v4071_v57, %v1921_v30  ;;  %2716 = vst [vmem:[%s4107_s28 + $0xab0] sm:$0xff] %v2332_v58  ;;  %2717 = vst [vmem:[%s4107_s28 + $0xab8] sm:$0xff] %v2333_v61  ;;  %v1912_v1 = vmul.f32 %v3384_v9, %v5568_v42  ;;  %v3398_v2 = vld [vmem:[%s3647_s5 + $0xb00] sm:$0xff]  ;;  %v3399_v30 = vld [vmem:[%s3647_s5 + $0xb08] sm:$0xff] }
 0x1db   : > { %v5618_v14 = vpop.eup %3038  ;;  %v1913_v29 = vmul.f32 %v3385_v40, %v5568_v42  ;;  %2718 = vst [vmem:[%s4107_s28 + $0xac0] sm:$0xff] %v2334_v47  ;;  %2719 = vst [vmem:[%s4107_s28 + $0xac8] sm:$0xff] %v2335_v62  ;;  %v1914_v23 = vmul.f32 %v3386_v12, %v5568_v42  ;;  %v1915_v5 = vmul.f32 %v3387_v45, %v5568_v42  ;;  %v3402_v9 = vld [vmem:[%s3647_s5 + $0xb80] sm:$0xff]  ;;  %v3403_v40 = vld [vmem:[%s3647_s5 + $0xb88] sm:$0xff] }
 0x1dc   : > { %v2326_v63 = vmul.f32 %v4061_v50, %v1910_v17  ;;  %v2327_v33 = vmul.f32 %v4063_v51, %v1911_v43  ;;  %2720 = vst [vmem:[%s4107_s28 + $0xad0] sm:$0xff] %v2336_v28  ;;  %2721 = vst [vmem:[%s4107_s28 + $0xad8] sm:$0xff] %v2337_v26  ;;  %v2328_v24 = vmul.f32 %v4065_v53, %v1912_v1  ;;  %v3400_v17 = vld [vmem:[%s3647_s5 + $0xb70] sm:$0xff]  ;;  %v3401_v43 = vld [vmem:[%s3647_s5 + $0xb78] sm:$0xff] }
 0x1dd   : > { %v2329_v6 = vmul.f32 %v4067_v54, %v1913_v29  ;;  %v1928_v13 = vmul.f32 %v3388_v27, %v5574_v55  ;;  %v1929_v42 = vmul.f32 %v3389_v36, %v5574_v55  ;;  %v2330_v19 = vmul.f32 %v4069_v56, %v1914_v23  ;;  %v3404_v12 = vld [vmem:[%s3647_s5 + $0xb90] sm:$0xff]  ;;  %v3405_v45 = vld [vmem:[%s3647_s5 + $0xb98] sm:$0xff]  ;;  %v3406_v27 = vld [vmem:[%s3647_s5 + $0xb40] sm:$0xff] }
 0x1de   : > { %v2331_v46 = vmul.f32 %v4071_v57, %v1915_v5  ;;  %2710 = vst [vmem:[%s4107_s28 + $0xa80] sm:$0xff] %v2326_v63  ;;  %2711 = vst [vmem:[%s4107_s28 + $0xa88] sm:$0xff] %v2327_v33  ;;  %v1930_v0 = vmul.f32 %v3390_v7, %v5574_v55  ;;  %v1931_v35 = vmul.f32 %v3391_v41, %v5574_v55  ;;  %v3407_v36 = vld [vmem:[%s3647_s5 + $0xb48] sm:$0xff] }
 0x1df   : > { %2712 = vst [vmem:[%s4107_s28 + $0xa90] sm:$0xff] %v2328_v24  ;;  %2713 = vst [vmem:[%s4107_s28 + $0xa98] sm:$0xff] %v2329_v6  ;;  %v1932_v38 = vmul.f32 %v3392_v31, %v5574_v55  ;;  %v1933_v52 = vmul.f32 %v3393_v44, %v5574_v55  ;;  %v2344_v48 = vmul.f32 %v4061_v50, %v1928_v13 }
 0x1e0   : > { %v2345_v3 = vmul.f32 %v4063_v51, %v1929_v42  ;;  %2714 = vst [vmem:[%s4107_s28 + $0xaa0] sm:$0xff] %v2330_v19  ;;  %2715 = vst [vmem:[%s4107_s28 + $0xaa8] sm:$0xff] %v2331_v46  ;;  %v2346_v11 = vmul.f32 %v4065_v53, %v1930_v0  ;;  %v2347_v18 = vmul.f32 %v4067_v54, %v1931_v35  ;;  %v3408_v46 = vld [vmem:[%s3647_s5 + $0xb50] sm:$0xff]  ;;  %v3409_v0 = vld [vmem:[%s3647_s5 + $0xb58] sm:$0xff] }
 0x1e1   : > { %v1922_v10 = vmul.f32 %v3394_v49, %v5584_v8  ;;  %v1923_v55 = vmul.f32 %v3395_v16, %v5584_v8  ;;  %v2348_v32 = vmul.f32 %v4069_v56, %v1932_v38  ;;  %v2349_v59 = vmul.f32 %v4071_v57, %v1933_v52  ;;  %2728 = vst [vmem:[%s4107_s28 + $0xb10] sm:$0xff] %v2344_v48  ;;  %v3410_v35 = vld [vmem:[%s3647_s5 + $0xb60] sm:$0xff]  ;;  %v3411_v38 = vld [vmem:[%s3647_s5 + $0xb68] sm:$0xff] }
 0x1e2   : > { %2729 = vst [vmem:[%s4107_s28 + $0xb18] sm:$0xff] %v2345_v3  ;;  %v1924_v20 = vmul.f32 %v3396_v21, %v5584_v8  ;;  %v1925_v15 = vmul.f32 %v3397_v25, %v5584_v8  ;;  %2730 = vst [vmem:[%s4107_s28 + $0xb20] sm:$0xff] %v2346_v11  ;;  %v1926_v22 = vmul.f32 %v3398_v2, %v5584_v8  ;;  %v3415_v21 = vld [vmem:[%s3647_s5 + $0xbe8] sm:$0xff]  ;;  %v3416_v25 = vld [vmem:[%s3647_s5 + $0xbf0] sm:$0xff] }
 0x1e3   : > { %2731 = vst [vmem:[%s4107_s28 + $0xb28] sm:$0xff] %v2347_v18  ;;  %v1927_v58 = vmul.f32 %v3399_v30, %v5584_v8  ;;  %v2338_v61 = vmul.f32 %v4061_v50, %v1922_v10  ;;  %v2339_v47 = vmul.f32 %v4063_v51, %v1923_v55  ;;  %2732 = vst [vmem:[%s4107_s28 + $0xb30] sm:$0xff] %v2348_v32  ;;  %v3412_v18 = vld [vmem:[%s3647_s5 + $0xbd0] sm:$0xff]  ;;  %v3413_v10 = vld [vmem:[%s3647_s5 + $0xbd8] sm:$0xff] }
 0x1e4   : > { %2733 = vst [vmem:[%s4107_s28 + $0xb38] sm:$0xff] %v2349_v59  ;;  %v2340_v62 = vmul.f32 %v4065_v53, %v1924_v20  ;;  %v2341_v34 = vmul.f32 %v4067_v54, %v1925_v15  ;;  %v1940_v60 = vmul.f32 %v3400_v17, %v5592_v37  ;;  %v1941_v8 = vmul.f32 %v3401_v43, %v5592_v37  ;;  %v3414_v32 = vld [vmem:[%s3647_s5 + $0xbe0] sm:$0xff]  ;;  %v3417_v2 = vld [vmem:[%s3647_s5 + $0xbf8] sm:$0xff] }
 0x1e5   : > { %v2342_v28 = vmul.f32 %v4069_v56, %v1926_v22  ;;  %v2343_v26 = vmul.f32 %v4071_v57, %v1927_v58  ;;  %2722 = vst [vmem:[%s4107_s28 + $0xae0] sm:$0xff] %v2338_v61  ;;  %2723 = vst [vmem:[%s4107_s28 + $0xae8] sm:$0xff] %v2339_v47  ;;  %v1942_v1 = vmul.f32 %v3402_v9, %v5592_v37 }
 0x1e6   : > { %v1943_v29 = vmul.f32 %v3403_v40, %v5592_v37  ;;  %2724 = vst [vmem:[%s4107_s28 + $0xaf0] sm:$0xff] %v2340_v62  ;;  %2725 = vst [vmem:[%s4107_s28 + $0xaf8] sm:$0xff] %v2341_v34  ;;  %v1944_v23 = vmul.f32 %v3404_v12, %v5592_v37  ;;  %v1945_v5 = vmul.f32 %v3405_v45, %v5592_v37  ;;  %v3418_v62 = vld [vmem:[%s3647_s5 + $0xba0] sm:$0xff]  ;;  %v3419_v34 = vld [vmem:[%s3647_s5 + $0xba8] sm:$0xff] }
 0x1e7   : > { %v2356_v63 = vmul.f32 %v4061_v50, %v1940_v60  ;;  %v2357_v33 = vmul.f32 %v4063_v51, %v1941_v8  ;;  %2726 = vst [vmem:[%s4107_s28 + $0xb00] sm:$0xff] %v2342_v28  ;;  %2727 = vst [vmem:[%s4107_s28 + $0xb08] sm:$0xff] %v2343_v26  ;;  %v2358_v24 = vmul.f32 %v4065_v53, %v1942_v1  ;;  %v3420_v8 = vld [vmem:[%s3647_s5 + $0xbb0] sm:$0xff]  ;;  %v3421_v26 = vld [vmem:[%s3647_s5 + $0xbb8] sm:$0xff] }
 0x1e8   : > { %v2359_v6 = vmul.f32 %v4067_v54, %v1943_v29  ;;  %v1934_v13 = vmul.f32 %v3406_v27, %v5600_v39  ;;  %v1935_v37 = vmul.f32 %v3407_v36, %v5600_v39  ;;  %v2360_v42 = vmul.f32 %v4069_v56, %v1944_v23  ;;  %v3422_v1 = vld [vmem:[%s3647_s5 + $0xbc0] sm:$0xff]  ;;  %v3423_v29 = vld [vmem:[%s3647_s5 + $0xbc8] sm:$0xff] }
 0x1e9   : > { %v2361_v19 = vmul.f32 %v4071_v57, %v1945_v5  ;;  %2740 = vst [vmem:[%s4107_s28 + $0xb70] sm:$0xff] %v2356_v63  ;;  %2741 = vst [vmem:[%s4107_s28 + $0xb78] sm:$0xff] %v2357_v33  ;;  %v1936_v7 = vmul.f32 %v3408_v46, %v5600_v39  ;;  %v1937_v41 = vmul.f32 %v3409_v0, %v5600_v39 }
 0x1ea   : > { %2742 = vst [vmem:[%s4107_s28 + $0xb80] sm:$0xff] %v2358_v24  ;;  %2743 = vst [vmem:[%s4107_s28 + $0xb88] sm:$0xff] %v2359_v6  ;;  %v1938_v31 = vmul.f32 %v3410_v35, %v5600_v39  ;;  %v1939_v44 = vmul.f32 %v3411_v38, %v5600_v39  ;;  %v2350_v52 = vmul.f32 %v4061_v50, %v1934_v13 }
 0x1eb   : > { %v2351_v48 = vmul.f32 %v4063_v51, %v1935_v37  ;;  %2744 = vst [vmem:[%s4107_s28 + $0xb90] sm:$0xff] %v2360_v42  ;;  %2745 = vst [vmem:[%s4107_s28 + $0xb98] sm:$0xff] %v2361_v19  ;;  %v2352_v3 = vmul.f32 %v4065_v53, %v1936_v7  ;;  %v2353_v11 = vmul.f32 %v4067_v54, %v1937_v41 }
 0x1ec   : > { %v1952_v49 = vmul.f32 %v3412_v18, %v5608_v4  ;;  %v1953_v39 = vmul.f32 %v3413_v10, %v5608_v4  ;;  %v2354_v16 = vmul.f32 %v4069_v56, %v1938_v31  ;;  %v2355_v55 = vmul.f32 %v4071_v57, %v1939_v44  ;;  %2734 = vst [vmem:[%s4107_s28 + $0xb40] sm:$0xff] %v2350_v52 }
 0x1ed   : > { %2735 = vst [vmem:[%s4107_s28 + $0xb48] sm:$0xff] %v2351_v48  ;;  %v1954_v59 = vmul.f32 %v3414_v32, %v5608_v4  ;;  %v1955_v20 = vmul.f32 %v3415_v21, %v5608_v4  ;;  %2736 = vst [vmem:[%s4107_s28 + $0xb50] sm:$0xff] %v2352_v3  ;;  %v1956_v15 = vmul.f32 %v3416_v25, %v5608_v4 }
 0x1ee   : > { %2737 = vst [vmem:[%s4107_s28 + $0xb58] sm:$0xff] %v2353_v11  ;;  %v1957_v22 = vmul.f32 %v3417_v2, %v5608_v4  ;;  %v2368_v30 = vmul.f32 %v4061_v50, %v1952_v49  ;;  %v2369_v58 = vmul.f32 %v4063_v51, %v1953_v39  ;;  %2738 = vst [vmem:[%s4107_s28 + $0xb60] sm:$0xff] %v2354_v16 }
 0x1ef   : > { %2739 = vst [vmem:[%s4107_s28 + $0xb68] sm:$0xff] %v2355_v55  ;;  %v2370_v61 = vmul.f32 %v4065_v53, %v1954_v59  ;;  %v2371_v47 = vmul.f32 %v4067_v54, %v1955_v20  ;;  %v1946_v4 = vmul.f32 %v3418_v62, %v5618_v14  ;;  %v1947_v17 = vmul.f32 %v3419_v34, %v5618_v14 }
 0x1f0   : > { %v2372_v60 = vmul.f32 %v4069_v56, %v1956_v15  ;;  %v2373_v43 = vmul.f32 %v4071_v57, %v1957_v22  ;;  %2752 = vst [vmem:[%s4107_s28 + $0xbd0] sm:$0xff] %v2368_v30  ;;  %2753 = vst [vmem:[%s4107_s28 + $0xbd8] sm:$0xff] %v2369_v58  ;;  %v1948_v28 = vmul.f32 %v3420_v8, %v5618_v14 }
 0x1f1   : > { %v1949_v9 = vmul.f32 %v3421_v26, %v5618_v14  ;;  %2754 = vst [vmem:[%s4107_s28 + $0xbe0] sm:$0xff] %v2370_v61  ;;  %2755 = vst [vmem:[%s4107_s28 + $0xbe8] sm:$0xff] %v2371_v47  ;;  %v1950_v40 = vmul.f32 %v3422_v1, %v5618_v14  ;;  %v1951_v12 = vmul.f32 %v3423_v29, %v5618_v14 }
 0x1f2   : > { %v2362_v23 = vmul.f32 %v4061_v50, %v1946_v4  ;;  %v2363_v45 = vmul.f32 %v4063_v51, %v1947_v17  ;;  %2756 = vst [vmem:[%s4107_s28 + $0xbf0] sm:$0xff] %v2372_v60  ;;  %2757 = vst [vmem:[%s4107_s28 + $0xbf8] sm:$0xff] %v2373_v43  ;;  %v2364_v5 = vmul.f32 %v4065_v53, %v1948_v28 }
 0x1f3   : > { %v2365_v63 = vmul.f32 %v4067_v54, %v1949_v9  ;;  %v2366_v50 = vmul.f32 %v4069_v56, %v1950_v40  ;;  %v2367_v51 = vmul.f32 %v4071_v57, %v1951_v12 }
 0x1f4   : > { %2746 = vst [vmem:[%s4107_s28 + $0xba0] sm:$0xff] %v2362_v23  ;;  %2747 = vst [vmem:[%s4107_s28 + $0xba8] sm:$0xff] %v2363_v45 }
 0x1f5   : > { %2748 = vst [vmem:[%s4107_s28 + $0xbb0] sm:$0xff] %v2364_v5  ;;  %2749 = vst [vmem:[%s4107_s28 + $0xbb8] sm:$0xff] %v2365_v63 }
 0x1f6   : > { %2750 = vst [vmem:[%s4107_s28 + $0xbc0] sm:$0xff] %v2366_v50  ;;  %2751 = vst [vmem:[%s4107_s28 + $0xbc8] sm:$0xff] %v2367_v51 }
 0x1f7   : > { %3467 = shalt.err (!%p3464_p2)
}
 0x1f8   : > { %s3468_s23 = scalar_lea.hbm %s5791_s8, 49152  ;;  %s3472_s29 = scalar_lea.hbm %s5847_s2, 98304 }
 0x1f9   : > { %p3469_p4 = scmp.ne.s32.totalorder %s5791_s8, %s3468_s23  ;;  %p3473_p9 = scmp.lt.u32.totalorder %s5791_s8, %s5847_s2 }
 0x1fa   : > { %p3474_p1 = scmp.lt.u32.totalorder %s3472_s29, %s3468_s23  ;;  %p3476_p6 = scmp.lt.u32.totalorder %s3468_s23, %s5791_s8 }
 0x1fb   : > { %p3470_p5 = pnand %p3469_p4, %p5853_p11 }
 0x1fc   : > { %p3475_p3 = por %p3474_p1, %p3473_p9 }
 0x1fd   : > { %p3471_p7 = pneg %p3470_p5 }
 0x1fe   : > { %p3477_p12 = por %p3476_p6, %p3475_p3 }
 0x200   : > { %p3478_p13 = pnand %p3477_p12, %p3471_p7 }
 0x202   : > { %3481 = shalt.err (!%p3478_p13)
}
 0x203   : > { %s3526_s19 = smov 768   ;;  %s3527_s27 = smov 48  }
 0x204   : > { %2864 = dma.vmem_to_hbm [thread:$0]  (%p5853_p11), %s5793_s3, 49152, %s5791_s8, %s2759_s13, %s3526_s19, %s3526_s19, %s3527_s27  }
 0x205 PF: > { %s2788_s28 = sand.u32 1, %s3508_s9   ;;  %p5854_p8 = scmp.ne.s32.totalorder %s5851_s21, 0 }
 0x206   : > { %p5855_p10 = scmp.ge.s32.totalorder %s3520_s12, 2  ;;  %s2789_s30 = scalar_lea.sflag [#allocation4], %s2788_s28 }
 0x208   : > { %p2871_p0 = pnand %p5855_p10, %p5854_p8 }
 0x20a   : > { %3503 = dma.done.wait (!%p2871_p0), %s2789_s30, 49152  }
 0x20b   : > { %3505 = vsyncadd (!%p2871_p0), %s2789_s30, 4294918144  ;;  %p15_p2 = scmp.ge.s32.totalorder %s3568_s15, 4   ;;  %s5856_s9 = smov %s3512_s10 }
 0x20c   : > { %s5857_s10 = smov %s3516_s11  ;;  %s5858_s11 = smov %s3580_s18 }
 0x20d   : > { %s5859_s12 = smov %s3568_s15  ;;  %17 = sbr.rel (!%p15_p2) target bundleno = 5 (0x5), region = 73 }
 0x214   :  { %2794 = vsyncpa [#allocation3], 1 }
 0x215   :  { %2796 = vsyncpa [#allocation3 + $0x1], 1 }
 0x216   :  { %2797 = vsyncpa [#allocation4], 1 }
 0x217   :  { %2799 = vsyncpa [#allocation4 + $0x1], 1 }

</bundles_post_ra>
